<compile_context>
chip_gen: v5e
topology: v5e:2x2
jax: 0.10.0
libtpu: 0.0.40
codegen_flags: <defaults>
</compile_context>

<pallas_src>
import functools

import jax
import jax.numpy as jnp
from jax import lax
from jax.experimental import pallas as pl
from jax.experimental.pallas import tpu as pltpu

EPS = 1e-5    # nn.BatchNorm2d default eps
LANE = 128


# ---------------------------------------------------------------------------
# small helpers
# ---------------------------------------------------------------------------
def _round_up(x, m):
    return (x + m - 1) // m * m


def _pick_m_tile(M, cap=1024):
    """Rows per M-tile: multiple of 8, bounded so (TM, 128) tiles stay VMEM-friendly."""
    if M >= cap:
        return cap
    return max(8, _round_up(M, 8))


def _vmem_capacity():
    try:
        return int(pltpu.get_tpu_info().vmem_capacity_bytes)
    except Exception:
        return 64 * 2 ** 20          # conservative fallback (v7x per-TC VMEM)


def _vmem_limit(block_bytes, cap):
    # double-buffered tiles + headroom, capped at 80% of physical VMEM.
    need = 2 * block_bytes + (2 << 20)
    return int(min(int(cap * 0.8), max(16 << 20, need)))


def _im2col(x_nhwc, K, dilation):
    """Reflect-pad (SAME, stride 1) + gather the K*K taps into the channel dim.

    Returns (N*H*W, K*K*C) with lane order (tap-major, channel-minor), matching
    _pack_weight.
    """
    N, H, W, C = x_nhwc.shape
    pad = (K - 1) * dilation
    l, r = pad // 2, pad - pad // 2
    xp = jnp.pad(x_nhwc, ((0, 0), (l, r), (l, r), (0, 0)), mode="reflect")
    slabs = []
    for ki in range(K):
        for kj in range(K):
            slabs.append(lax.slice(xp, (0, ki * dilation, kj * dilation, 0),
                                   (N, ki * dilation + H, kj * dilation + W, C)))
    cols = jnp.concatenate(slabs, axis=-1)
    return cols.reshape(N * H * W, K * K * C)


def _pad_rows_lanes(a, rows, lanes):
    return jnp.pad(a, ((0, rows - a.shape[0]), (0, lanes - a.shape[1])))


def _pack_weight(w_oihw, K, Ck_p, Co_p):
    """[C_out, C_in, K, K] -> (K*K*C_in, C_out), zero-padded to (Ck_p, Co_p)."""
    Co, Ci = w_oihw.shape[0], w_oihw.shape[1]
    w = jnp.transpose(w_oihw, (2, 3, 1, 0)).reshape(K * K * Ci, Co)
    return jnp.pad(w, ((0, Ck_p - K * K * Ci), (0, Co_p - Co)))


def _tile_taps(v_c, K, Ck_p):
    """Per-channel (C,) affine value tiled over the K*K taps of the packed layout."""
    t = jnp.tile(v_c, K * K)
    return jnp.pad(t, (0, Ck_p - t.shape[0]))[None, :].astype(jnp.float32)


# ---------------------------------------------------------------------------
# Pallas kernels
# ---------------------------------------------------------------------------
def _write_tile_stats(y, stats_ref, *, TM, M_true):
    """Per-tile BatchNorm partials: row0 = sum, row1 = centered sum-of-squares.

    Tail rows beyond M_true are masked out, so padded rows never bias the statistics.
    The per-tile partials are merged globally with a parallel-Welford combine in JAX.
    """
    i = pl.program_id(0)
    cnt = jnp.minimum(TM, M_true - i * TM)                        # valid rows, >= 1
    valid = lax.broadcasted_iota(jnp.int32, y.shape, 0) < cnt
    yv = jnp.where(valid, y, 0.0)
    s = jnp.sum(yv, axis=0, keepdims=True)
    mean_t = s / cnt.astype(jnp.float32)
    d = jnp.where(valid, y - mean_t, 0.0)
    c2 = jnp.sum(d * d, axis=0, keepdims=True)
    stats_ref[...] = jnp.concatenate(
        [s, c2, jnp.zeros((6, y.shape[1]), jnp.float32)], axis=0)


def _conv_stats_kernel(cols_ref, w_ref, y_ref, stats_ref, *, TM, M_true):
    """Packed-im2col conv (single MXU dot per tile) + per-tile BN partial stats."""
    y = jnp.dot(cols_ref[...], w_ref[...], preferred_element_type=jnp.float32)
    y_ref[...] = y
    _write_tile_stats(y, stats_ref, TM=TM, M_true=M_true)


def _fused_bn_res_conv_stats_kernel(cols_y_ref, cols_res_ref, scale_ref, shift_ref,
                                    w_ref, y_ref, stats_ref, *, TM, M_true, mxu_dtype):
    """Stage-2 kernel: [BN1 + ReLU + residual] prologue on the packed patches, then
    the packed conv + per-tile BN partial stats.  Valid because the per-channel affine,
    ReLU and residual add all commute with reflect padding and the im2col gather."""
    a = cols_y_ref[...].astype(jnp.float32) * scale_ref[...] + shift_ref[...]
    patches = jnp.maximum(a, 0.0) + cols_res_ref[...].astype(jnp.float32)
    y = jnp.dot(patches.astype(mxu_dtype), w_ref[...],
                preferred_element_type=jnp.float32)
    y_ref[...] = y
    _write_tile_stats(y, stats_ref, TM=TM, M_true=M_true)


def _bn_relu_kernel(y_ref, scale_ref, shift_ref, o_ref):
    o_ref[...] = jnp.maximum(y_ref[...] * scale_ref[...] + shift_ref[...], 0.0)


# ---------------------------------------------------------------------------
# pallas_call wrappers
# ---------------------------------------------------------------------------
def _conv_stats_call(cols, w, *, TM, M_true, mxu_dtype, vmem_cap, prologue=None):
    M_pad, Ck_p = cols.shape
    Co_p = w.shape[1]
    n_tiles = M_pad // TM
    itm = cols.dtype.itemsize

    if prologue is None:
        kern = functools.partial(_conv_stats_kernel, TM=TM, M_true=M_true)
        in_specs = [pl.BlockSpec((TM, Ck_p), lambda i: (i, 0)),
                    pl.BlockSpec((Ck_p, Co_p), lambda i: (0, 0))]
        args = (cols, w)
        flops = 2 * M_pad * Ck_p * Co_p
        bytes_acc = (M_pad * Ck_p * itm + Ck_p * Co_p * itm
                     + M_pad * Co_p * 4 + n_tiles * 8 * Co_p * 4)
        block_bytes = TM * Ck_p * itm + Ck_p * Co_p * itm
    else:
        cols_res, scale_t, shift_t = prologue
        kern = functools.partial(_fused_bn_res_conv_stats_kernel,
                                 TM=TM, M_true=M_true, mxu_dtype=mxu_dtype)
        in_specs = [pl.BlockSpec((TM, Ck_p), lambda i: (i, 0)),
                    pl.BlockSpec((TM, Ck_p), lambda i: (i, 0)),
                    pl.BlockSpec((1, Ck_p), lambda i: (0, 0)),
                    pl.BlockSpec((1, Ck_p), lambda i: (0, 0)),
                    pl.BlockSpec((Ck_p, Co_p), lambda i: (0, 0))]
        args = (cols, cols_res, scale_t, shift_t, w)
        flops = 2 * M_pad * Ck_p * Co_p + 4 * M_pad * Ck_p
        bytes_acc = (2 * M_pad * Ck_p * itm + 2 * Ck_p * 4 + Ck_p * Co_p * itm
                     + M_pad * Co_p * 4 + n_tiles * 8 * Co_p * 4)
        block_bytes = 2 * TM * Ck_p * itm + 2 * Ck_p * 4 + Ck_p * Co_p * itm

    block_bytes += TM * Co_p * 4 + 8 * Co_p * 4
    # NOTE: the constant-index operands here (weights, scale/shift) are tiny
    # ((Ck_p, Co_p) and (1, Ck_p)), so single-buffering them is not worth the risk.

    y, stats = pl.pallas_call(
        kern,
        grid=(n_tiles,),
        in_specs=in_specs,
        out_specs=[pl.BlockSpec((TM, Co_p), lambda i: (i, 0)),
                   pl.BlockSpec((None, 8, Co_p), lambda i: (i, 0, 0))],
        out_shape=[jax.ShapeDtypeStruct((M_pad, Co_p), jnp.float32),
                   jax.ShapeDtypeStruct((n_tiles, 8, Co_p), jnp.float32)],
        compiler_params=pltpu.CompilerParams(
            dimension_semantics=("parallel",),
            vmem_limit_bytes=_vmem_limit(block_bytes, vmem_cap)),
        cost_estimate=pl.CostEstimate(flops=int(flops), transcendentals=0,
                                      bytes_accessed=int(bytes_acc)),
    )(*args)
    return y, stats


def _bn_relu_call(y, scale, shift, *, TM, vmem_cap):
    M_pad, Co_p = y.shape
    n_tiles = M_pad // TM
    block_bytes = 2 * TM * Co_p * 4 + 2 * Co_p * 4
    return pl.pallas_call(
        _bn_relu_kernel,
        grid=(n_tiles,),
        in_specs=[pl.BlockSpec((TM, Co_p), lambda i: (i, 0)),
                  pl.BlockSpec((1, Co_p), lambda i: (0, 0)),
                  pl.BlockSpec((1, Co_p), lambda i: (0, 0))],
        out_specs=pl.BlockSpec((TM, Co_p), lambda i: (i, 0)),
        out_shape=jax.ShapeDtypeStruct((M_pad, Co_p), jnp.float32),
        compiler_params=pltpu.CompilerParams(
            dimension_semantics=("parallel",),
            vmem_limit_bytes=_vmem_limit(block_bytes, vmem_cap)),
        cost_estimate=pl.CostEstimate(flops=int(3 * M_pad * Co_p), transcendentals=0,
                                      bytes_accessed=int(2 * M_pad * Co_p * 4)),
    )(y, scale, shift)


def _finalize_bn(stats, gamma, beta, *, M_true, TM):
    """Parallel-Welford merge of per-tile partials -> (scale, shift) for y*scale+shift."""
    n_tiles, _, Cp = stats.shape
    sums = stats[:, 0, :]
    c2 = stats[:, 1, :]
    counts = jnp.clip(M_true - jnp.arange(n_tiles) * TM, 1, TM).astype(jnp.float32)[:, None]
    mean_t = sums / counts
    mean = jnp.sum(sums, axis=0) / M_true
    m2 = jnp.sum(c2, axis=0) + jnp.sum(counts * (mean_t - mean) ** 2, axis=0)
    var = jnp.maximum(m2 / M_true, 0.0)
    g = jnp.pad(gamma, (0, Cp - gamma.shape[0]))
    b = jnp.pad(beta, (0, Cp - beta.shape[0]))
    scale = g * lax.rsqrt(var + EPS)
    shift = b - mean * scale
    return scale[None, :], shift[None, :]


# ---------------------------------------------------------------------------
# Res_ConvBlock forward (dimension=2, SAME padding, stride=1, training-mode BN)
# ---------------------------------------------------------------------------
def res_conv_block_forward(x_nchw, params, K=3, stride=1, dilation=1,
                           mxu_dtype=jnp.bfloat16):
    # TODO(synk): stride > 1 (module default is 1) would need a strided im2col gather.
    assert stride == 1, "fused Pallas path implements stride=1 (module default)"
    N, Cin, H, W = x_nchw.shape
    Cout = params["w2"].shape[0]

    M = N * H * W
    TM = _pick_m_tile(M)
    n_tiles = pl.cdiv(M, TM)
    M_pad = n_tiles * TM

    Ck = K * K * Cin                      # packed contraction: taps x channels
    Ck_p = _round_up(Ck, LANE)
    C1_p = _round_up(Cin, LANE)           # stage-1 output channels (= Cin)
    C2_p = _round_up(Cout, LANE)          # stage-2 output channels

    vmem_cap = _vmem_capacity()

    x_nhwc = jnp.transpose(x_nchw, (0, 2, 3, 1)).astype(jnp.float32)

    # Lane-packed im2col of the input: shared by the stage-1 conv and the stage-2
    # residual prologue (reflect pad + gather commute with the pointwise BN/ReLU).
    cols_x = _pad_rows_lanes(_im2col(x_nhwc, K, dilation), M_pad, Ck_p).astype(mxu_dtype)

    w1 = _pack_weight(params["w1"], K, Ck_p, C1_p).astype(mxu_dtype)
    w2 = _pack_weight(params["w2"], K, Ck_p, C2_p).astype(mxu_dtype)
    # Conv biases (params["b1"], params["b2"]) are intentionally unused: a per-channel
    # constant added before *training-mode* BatchNorm is exactly cancelled by the mean
    # subtraction.  (Eval-mode running statistics would need the bias restored.)

    # ---- stage 1: conv (Cin -> Cin) + per-tile batch statistics -------------------
    y1, st1 = _conv_stats_call(cols_x, w1, TM=TM, M_true=M, mxu_dtype=mxu_dtype,
                               vmem_cap=vmem_cap)
    scale1, shift1 = _finalize_bn(st1, params["g1"], params["bt1"], M_true=M, TM=TM)

    # ---- stage 2: fused [BN1 + ReLU + residual] prologue + conv (Cin -> Cout) -----
    y1_img = y1[:M, :Cin].reshape(N, H, W, Cin)
    cols_y1 = _pad_rows_lanes(_im2col(y1_img, K, dilation), M_pad, Ck_p).astype(mxu_dtype)
    scale1_t = _tile_taps(scale1[0, :Cin], K, Ck_p)
    shift1_t = _tile_taps(shift1[0, :Cin], K, Ck_p)
    y2, st2 = _conv_stats_call(cols_y1, w2, TM=TM, M_true=M, mxu_dtype=mxu_dtype,
                               vmem_cap=vmem_cap,
                               prologue=(cols_x, scale1_t, shift1_t))
    scale2, shift2 = _finalize_bn(st2, params["g2"], params["bt2"], M_true=M, TM=TM)

    # ---- final BN + ReLU -----------------------------------------------------------
    out = _bn_relu_call(y2, scale2, shift2, TM=TM, vmem_cap=vmem_cap)
    out = out[:M, :Cout].reshape(N, H, W, Cout)
    return jnp.transpose(out, (0, 3, 1, 2))


# ---------------------------------------------------------------------------
# Pure-JAX reference (lax.conv, with bias, two-pass BN) for correctness
# ---------------------------------------------------------------------------
def _same_reflect_pad_nchw(x, K, dilation):
    pad = (K - 1) * dilation
    l, r = pad // 2, pad - pad // 2
    return jnp.pad(x, ((0, 0), (0, 0), (l, r), (l, r)), mode="reflect")


def _ref_conv_layer(x_nchw, w, b, gamma, beta, K, stride, dilation):
    xp = _same_reflect_pad_nchw(x_nchw, K, dilation)
    y = lax.conv_general_dilated(
        xp, w, window_strides=(stride, stride), padding="VALID",
        rhs_dilation=(dilation, dilation),
        dimension_numbers=("NCHW", "OIHW", "NCHW"))
    y = y + b[None, :, None, None]
    mean = jnp.mean(y, axis=(0, 2, 3), keepdims=True)
    var = jnp.mean((y - mean) ** 2, axis=(0, 2, 3), keepdims=True)
    y = (y - mean) * lax.rsqrt(var + EPS)
    y = y * gamma[None, :, None, None] + beta[None, :, None, None]
    return jnp.maximum(y, 0.0)


def res_conv_block_reference(x, params, K=3, stride=1, dilation=1):
    c1 = _ref_conv_layer(x, params["w1"], params["b1"], params["g1"],
                         params["bt1"], K, 1, dilation) + x
    return _ref_conv_layer(c1, params["w2"], params["b2"], params["g2"],
                           params["bt2"], K, stride, dilation)


# ---------------------------------------------------------------------------
if __name__ == "__main__":
    N, Cin, Cout, H, W, K = 2, 4, 8, 16, 16, 3

    key = jax.random.PRNGKey(0)
    k1, k2, k3, k4, kx = jax.random.split(key, 5)
    params = {
        # conv1: in_channels -> in_channels
        "w1": 0.1 * jax.random.normal(k1, (Cin, Cin, K, K), jnp.float32),
        "b1": 0.01 * jax.random.normal(k2, (Cin,), jnp.float32),
        "g1": jnp.ones((Cin,), jnp.float32),    # BatchNorm weight init
        "bt1": jnp.zeros((Cin,), jnp.float32),  # BatchNorm bias init
        # conv2: in_channels -> out_channels
        "w2": 0.1 * jax.random.normal(k3, (Cout, Cin, K, K), jnp.float32),
        "b2": 0.01 * jax.random.normal(k4, (Cout,), jnp.float32),
        "g2": jnp.ones((Cout,), jnp.float32),
        "bt2": jnp.zeros((Cout,), jnp.float32),
    }
    x = jax.random.normal(kx, (N, Cin, H, W), jnp.float32)

    fwd = jax.jit(res_conv_block_forward,
                  static_argnames=("K", "stride", "dilation", "mxu_dtype"))
    ref = jax.block_until_ready(res_conv_block_reference(x, params))

    # f32-MXU path: tight check against the lax.conv reference.
    out_f32 = jax.block_until_ready(fwd(x, params, mxu_dtype=jnp.float32))
    assert out_f32.shape == (N, Cout, H, W), out_f32.shape
    assert jnp.allclose(out_f32, ref, atol=1e-4, rtol=1e-4), \
        float(jnp.abs(out_f32 - ref).max())

    # Default bf16-MXU path (f32 accumulation / statistics): loose sanity bound on the
    # BatchNorm-normalized (O(1)-scaled) output.
    out_bf16 = jax.block_until_ready(fwd(x, params))
    assert out_bf16.shape == (N, Cout, H, W), out_bf16.shape
    assert float(jnp.abs(out_bf16 - ref).max()) < 0.25

    print("KERNEL_OK")
</pallas_src>

<mosaic_0001>
module attributes {stable_mosaic.version = 11 : i64} {
  func.func @_conv_stats_kernel(%arg0: i32, %arg1: memref<512x128xf32, #tpu.memory_space<vmem>>, %arg2: memref<128x128xf32, #tpu.memory_space<vmem>>, %arg3: memref<512x128xf32, #tpu.memory_space<vmem>>, %arg4: memref<1x8x128xf32, #tpu.memory_space<vmem>>) attributes {dimension_semantics = [#tpu.dimension_semantics<parallel>], iteration_bounds = array<i64: 1>, scalar_prefetch = 0 : i64, scratch_operands = 0 : i64, tpu.core_type = #tpu.core_type<tc>, window_params = [{transform_indices = @transform_0, window_bounds = array<i64: 512, 128>}, {pipeline_mode = #tpu.pipeline_mode<synchronous>, transform_indices = @transform_1, window_bounds = array<i64: 128, 128>}, {transform_indices = @transform_2, window_bounds = array<i64: 512, 128>}, {transform_indices = @transform_3, window_bounds = array<i64: 1, 8, 128>}]} {
    %c0 = arith.constant 0 : index
    %c0_0 = arith.constant 0 : index
    %0 = vector.load %arg1[%c0, %c0_0] : memref<512x128xf32, #tpu.memory_space<vmem>>, vector<512x128xf32>
    %c0_1 = arith.constant 0 : index
    %c0_2 = arith.constant 0 : index
    %1 = vector.load %arg2[%c0_1, %c0_2] : memref<128x128xf32, #tpu.memory_space<vmem>>, vector<128x128xf32>
    %cst = arith.constant dense<0.000000e+00> : vector<512x128xf32>
    %2 = tpu.matmul %0, %1, %cst {dimension_numbers = #tpu.dot_dimension_numbers<[1], [0], [0], [1], [0, 0, 1, 1], [], []>} : vector<512x128xf32>, vector<128x128xf32>, vector<512x128xf32> -> vector<512x128xf32>
    %c0_3 = arith.constant 0 : index
    %c0_4 = arith.constant 0 : index
    %3 = vector.load %arg3[%c0_3, %c0_4] : memref<512x128xf32, #tpu.memory_space<vmem>>, vector<512x128xf32>
    tpu.vector_store %arg3[%c0_3, %c0_4], %2 {strides = array<i32>} : memref<512x128xf32, #tpu.memory_space<vmem>>, vector<512x128xf32>,
    %c512_i32 = arith.constant 512 : i32
    %4 = arith.muli %arg0, %c512_i32 : i32
    %c512_i32_5 = arith.constant 512 : i32
    %5 = arith.subi %c512_i32_5, %4 : i32
    %c512_i32_6 = arith.constant 512 : i32
    %6 = arith.minsi %c512_i32_6, %5 : i32
    %7 = tpu.iota {dimensions = array<i32: 0>} : vector<512x128xi32>
    %8 = vector.broadcast %6 : i32 to vector<512x128xi32>
    %9 = arith.cmpi slt, %7, %8 : vector<512x128xi32>
    %cst_7 = arith.constant 0.000000e+00 : f32
    %10 = vector.broadcast %cst_7 : f32 to vector<512x128xf32>
    %11 = arith.select %9, %2, %10 : vector<512x128xi1>, vector<512x128xf32>
    %cst_8 = arith.constant dense<0.000000e+00> : vector<128xf32>
    %12 = vector.multi_reduction <add>, %11, %cst_8 [0] : vector<512x128xf32> to vector<128xf32>
    %13 = vector.shape_cast %12 : vector<128xf32> to vector<1x128xf32>
    %14 = arith.sitofp %6 : i32 to f32
    %15 = vector.broadcast %14 : f32 to vector<1x128xf32>
    %16 = arith.divf %13, %15 : vector<1x128xf32>
    %17 = vector.broadcast %16 : vector<1x128xf32> to vector<512x128xf32>
    %18 = arith.subf %2, %17 : vector<512x128xf32>
    %cst_9 = arith.constant 0.000000e+00 : f32
    %19 = vector.broadcast %cst_9 : f32 to vector<512x128xf32>
    %20 = arith.select %9, %18, %19 : vector<512x128xi1>, vector<512x128xf32>
    %21 = arith.mulf %20, %20 : vector<512x128xf32>
    %cst_10 = arith.constant dense<0.000000e+00> : vector<128xf32>
    %22 = vector.multi_reduction <add>, %21, %cst_10 [0] : vector<512x128xf32> to vector<128xf32>
    %23 = vector.shape_cast %22 : vector<128xf32> to vector<1x128xf32>
    %cst_11 = arith.constant 0.000000e+00 : f32
    %24 = vector.broadcast %cst_11 : f32 to vector<6x128xf32>
    %25 = tpu.concatenate %13, %23, %24 in 0 : vector<1x128xf32>, vector<1x128xf32>, vector<6x128xf32> -> vector<8x128xf32>
    %c0_12 = arith.constant 0 : index
    %c0_13 = arith.constant 0 : index
    %c0_14 = arith.constant 0 : index
    %26 = vector.load %arg4[%c0_12, %c0_13, %c0_14] : memref<1x8x128xf32, #tpu.memory_space<vmem>>, vector<1x8x128xf32>
    %27 = vector.shape_cast %26 : vector<1x8x128xf32> to vector<8x128xf32>
    %28 = vector.shape_cast %25 : vector<8x128xf32> to vector<1x8x128xf32>
    tpu.vector_store %arg4[%c0_12, %c0_13, %c0_14], %28 {strides = array<i32>} : memref<1x8x128xf32, #tpu.memory_space<vmem>>, vector<1x8x128xf32>,
    return
  }
  func.func @transform_0(%arg0: i32) -> (i32, i32) {
    %c0_i32 = arith.constant 0 : i32
    %c0_i32_0 = arith.constant 0 : i32
    return %arg0, %c0_i32 : i32, i32
  }
  func.func @transform_1(%arg0: i32) -> (i32, i32) {
    %c0_i32 = arith.constant 0 : i32
    %c0_i32_0 = arith.constant 0 : i32
    %c0_i32_1 = arith.constant 0 : i32
    return %c0_i32, %c0_i32_0 : i32, i32
  }
  func.func @transform_2(%arg0: i32) -> (i32, i32) {
    %c0_i32 = arith.constant 0 : i32
    %c0_i32_0 = arith.constant 0 : i32
    return %arg0, %c0_i32 : i32, i32
  }
  func.func @transform_3(%arg0: i32) -> (i32, i32, i32) {
    %c0_i32 = arith.constant 0 : i32
    %c0_i32_0 = arith.constant 0 : i32
    %c0_i32_1 = arith.constant 0 : i32
    return %arg0, %c0_i32, %c0_i32_0 : i32, i32, i32
  }
}

module attributes {stable_mosaic.version = 11 : i64} {
  func.func @_fused_bn_res_conv_stats_kernel(%arg0: i32, %arg1: memref<512x128xf32, #tpu.memory_space<vmem>>, %arg2: memref<512x128xf32, #tpu.memory_space<vmem>>, %arg3: memref<1x128xf32, #tpu.memory_space<vmem>>, %arg4: memref<1x128xf32, #tpu.memory_space<vmem>>, %arg5: memref<128x128xf32, #tpu.memory_space<vmem>>, %arg6: memref<512x128xf32, #tpu.memory_space<vmem>>, %arg7: memref<1x8x128xf32, #tpu.memory_space<vmem>>) attributes {dimension_semantics = [#tpu.dimension_semantics<parallel>], iteration_bounds = array<i64: 1>, scalar_prefetch = 0 : i64, scratch_operands = 0 : i64, tpu.core_type = #tpu.core_type<tc>, window_params = [{transform_indices = @transform_0, window_bounds = array<i64: 512, 128>}, {transform_indices = @transform_1, window_bounds = array<i64: 512, 128>}, {pipeline_mode = #tpu.pipeline_mode<synchronous>, transform_indices = @transform_2, window_bounds = array<i64: 1, 128>}, {pipeline_mode = #tpu.pipeline_mode<synchronous>, transform_indices = @transform_3, window_bounds = array<i64: 1, 128>}, {pipeline_mode = #tpu.pipeline_mode<synchronous>, transform_indices = @transform_4, window_bounds = array<i64: 128, 128>}, {transform_indices = @transform_5, window_bounds = array<i64: 512, 128>}, {transform_indices = @transform_6, window_bounds = array<i64: 1, 8, 128>}]} {
    %c0 = arith.constant 0 : index
    %c0_0 = arith.constant 0 : index
    %0 = vector.load %arg1[%c0, %c0_0] : memref<512x128xf32, #tpu.memory_space<vmem>>, vector<512x128xf32>
    %c0_1 = arith.constant 0 : index
    %c0_2 = arith.constant 0 : index
    %1 = vector.load %arg3[%c0_1, %c0_2] : memref<1x128xf32, #tpu.memory_space<vmem>>, vector<1x128xf32>
    %2 = vector.broadcast %1 : vector<1x128xf32> to vector<512x128xf32>
    %3 = arith.mulf %0, %2 : vector<512x128xf32>
    %c0_3 = arith.constant 0 : index
    %c0_4 = arith.constant 0 : index
    %4 = vector.load %arg4[%c0_3, %c0_4] : memref<1x128xf32, #tpu.memory_space<vmem>>, vector<1x128xf32>
    %5 = vector.broadcast %4 : vector<1x128xf32> to vector<512x128xf32>
    %6 = arith.addf %3, %5 : vector<512x128xf32>
    %cst = arith.constant 0.000000e+00 : f32
    %7 = vector.broadcast %cst : f32 to vector<512x128xf32>
    %8 = arith.maximumf %6, %7 : vector<512x128xf32>
    %c0_5 = arith.constant 0 : index
    %c0_6 = arith.constant 0 : index
    %9 = vector.load %arg2[%c0_5, %c0_6] : memref<512x128xf32, #tpu.memory_space<vmem>>, vector<512x128xf32>
    %10 = arith.addf %8, %9 : vector<512x128xf32>
    %c0_7 = arith.constant 0 : index
    %c0_8 = arith.constant 0 : index
    %11 = vector.load %arg5[%c0_7, %c0_8] : memref<128x128xf32, #tpu.memory_space<vmem>>, vector<128x128xf32>
    %cst_9 = arith.constant dense<0.000000e+00> : vector<512x128xf32>
    %12 = tpu.matmul %10, %11, %cst_9 {dimension_numbers = #tpu.dot_dimension_numbers<[1], [0], [0], [1], [0, 0, 1, 1], [], []>} : vector<512x128xf32>, vector<128x128xf32>, vector<512x128xf32> -> vector<512x128xf32>
    %c0_10 = arith.constant 0 : index
    %c0_11 = arith.constant 0 : index
    %13 = vector.load %arg6[%c0_10, %c0_11] : memref<512x128xf32, #tpu.memory_space<vmem>>, vector<512x128xf32>
    tpu.vector_store %arg6[%c0_10, %c0_11], %12 {strides = array<i32>} : memref<512x128xf32, #tpu.memory_space<vmem>>, vector<512x128xf32>,
    %c512_i32 = arith.constant 512 : i32
    %14 = arith.muli %arg0, %c512_i32 : i32
    %c512_i32_12 = arith.constant 512 : i32
    %15 = arith.subi %c512_i32_12, %14 : i32
    %c512_i32_13 = arith.constant 512 : i32
    %16 = arith.minsi %c512_i32_13, %15 : i32
    %17 = tpu.iota {dimensions = array<i32: 0>} : vector<512x128xi32>
    %18 = vector.broadcast %16 : i32 to vector<512x128xi32>
    %19 = arith.cmpi slt, %17, %18 : vector<512x128xi32>
    %cst_14 = arith.constant 0.000000e+00 : f32
    %20 = vector.broadcast %cst_14 : f32 to vector<512x128xf32>
    %21 = arith.select %19, %12, %20 : vector<512x128xi1>, vector<512x128xf32>
    %cst_15 = arith.constant dense<0.000000e+00> : vector<128xf32>
    %22 = vector.multi_reduction <add>, %21, %cst_15 [0] : vector<512x128xf32> to vector<128xf32>
    %23 = vector.shape_cast %22 : vector<128xf32> to vector<1x128xf32>
    %24 = arith.sitofp %16 : i32 to f32
    %25 = vector.broadcast %24 : f32 to vector<1x128xf32>
    %26 = arith.divf %23, %25 : vector<1x128xf32>
    %27 = vector.broadcast %26 : vector<1x128xf32> to vector<512x128xf32>
    %28 = arith.subf %12, %27 : vector<512x128xf32>
    %cst_16 = arith.constant 0.000000e+00 : f32
    %29 = vector.broadcast %cst_16 : f32 to vector<512x128xf32>
    %30 = arith.select %19, %28, %29 : vector<512x128xi1>, vector<512x128xf32>
    %31 = arith.mulf %30, %30 : vector<512x128xf32>
    %cst_17 = arith.constant dense<0.000000e+00> : vector<128xf32>
    %32 = vector.multi_reduction <add>, %31, %cst_17 [0] : vector<512x128xf32> to vector<128xf32>
    %33 = vector.shape_cast %32 : vector<128xf32> to vector<1x128xf32>
    %cst_18 = arith.constant 0.000000e+00 : f32
    %34 = vector.broadcast %cst_18 : f32 to vector<6x128xf32>
    %35 = tpu.concatenate %23, %33, %34 in 0 : vector<1x128xf32>, vector<1x128xf32>, vector<6x128xf32> -> vector<8x128xf32>
    %c0_19 = arith.constant 0 : index
    %c0_20 = arith.constant 0 : index
    %c0_21 = arith.constant 0 : index
    %36 = vector.load %arg7[%c0_19, %c0_20, %c0_21] : memref<1x8x128xf32, #tpu.memory_space<vmem>>, vector<1x8x128xf32>
    %37 = vector.shape_cast %36 : vector<1x8x128xf32> to vector<8x128xf32>
    %38 = vector.shape_cast %35 : vector<8x128xf32> to vector<1x8x128xf32>
    tpu.vector_store %arg7[%c0_19, %c0_20, %c0_21], %38 {strides = array<i32>} : memref<1x8x128xf32, #tpu.memory_space<vmem>>, vector<1x8x128xf32>,
    return
  }
  func.func @transform_0(%arg0: i32) -> (i32, i32) {
    %c0_i32 = arith.constant 0 : i32
    %c0_i32_0 = arith.constant 0 : i32
    return %arg0, %c0_i32 : i32, i32
  }
  func.func @transform_1(%arg0: i32) -> (i32, i32) {
    %c0_i32 = arith.constant 0 : i32
    %c0_i32_0 = arith.constant 0 : i32
    return %arg0, %c0_i32 : i32, i32
  }
  func.func @transform_2(%arg0: i32) -> (i32, i32) {
    %c0_i32 = arith.constant 0 : i32
    %c0_i32_0 = arith.constant 0 : i32
    %c0_i32_1 = arith.constant 0 : i32
    return %c0_i32, %c0_i32_0 : i32, i32
  }
  func.func @transform_3(%arg0: i32) -> (i32, i32) {
    %c0_i32 = arith.constant 0 : i32
    %c0_i32_0 = arith.constant 0 : i32
    %c0_i32_1 = arith.constant 0 : i32
    return %c0_i32, %c0_i32_0 : i32, i32
  }
  func.func @transform_4(%arg0: i32) -> (i32, i32) {
    %c0_i32 = arith.constant 0 : i32
    %c0_i32_0 = arith.constant 0 : i32
    %c0_i32_1 = arith.constant 0 : i32
    return %c0_i32, %c0_i32_0 : i32, i32
  }
  func.func @transform_5(%arg0: i32) -> (i32, i32) {
    %c0_i32 = arith.constant 0 : i32
    %c0_i32_0 = arith.constant 0 : i32
    return %arg0, %c0_i32 : i32, i32
  }
  func.func @transform_6(%arg0: i32) -> (i32, i32, i32) {
    %c0_i32 = arith.constant 0 : i32
    %c0_i32_0 = arith.constant 0 : i32
    %c0_i32_1 = arith.constant 0 : i32
    return %arg0, %c0_i32, %c0_i32_0 : i32, i32, i32
  }
}

module attributes {stable_mosaic.version = 11 : i64} {
  func.func @_bn_relu_kernel(%arg0: i32, %arg1: memref<512x128xf32, #tpu.memory_space<vmem>>, %arg2: memref<1x128xf32, #tpu.memory_space<vmem>>, %arg3: memref<1x128xf32, #tpu.memory_space<vmem>>, %arg4: memref<512x128xf32, #tpu.memory_space<vmem>>) attributes {dimension_semantics = [#tpu.dimension_semantics<parallel>], iteration_bounds = array<i64: 1>, scalar_prefetch = 0 : i64, scratch_operands = 0 : i64, tpu.core_type = #tpu.core_type<tc>, window_params = [{transform_indices = @transform_0, window_bounds = array<i64: 512, 128>}, {pipeline_mode = #tpu.pipeline_mode<synchronous>, transform_indices = @transform_1, window_bounds = array<i64: 1, 128>}, {pipeline_mode = #tpu.pipeline_mode<synchronous>, transform_indices = @transform_2, window_bounds = array<i64: 1, 128>}, {transform_indices = @transform_3, window_bounds = array<i64: 512, 128>}]} {
    %c0 = arith.constant 0 : index
    %c0_0 = arith.constant 0 : index
    %0 = vector.load %arg1[%c0, %c0_0] : memref<512x128xf32, #tpu.memory_space<vmem>>, vector<512x128xf32>
    %c0_1 = arith.constant 0 : index
    %c0_2 = arith.constant 0 : index
    %1 = vector.load %arg2[%c0_1, %c0_2] : memref<1x128xf32, #tpu.memory_space<vmem>>, vector<1x128xf32>
    %2 = vector.broadcast %1 : vector<1x128xf32> to vector<512x128xf32>
    %3 = arith.mulf %0, %2 : vector<512x128xf32>
    %c0_3 = arith.constant 0 : index
    %c0_4 = arith.constant 0 : index
    %4 = vector.load %arg3[%c0_3, %c0_4] : memref<1x128xf32, #tpu.memory_space<vmem>>, vector<1x128xf32>
    %5 = vector.broadcast %4 : vector<1x128xf32> to vector<512x128xf32>
    %6 = arith.addf %3, %5 : vector<512x128xf32>
    %cst = arith.constant 0.000000e+00 : f32
    %7 = vector.broadcast %cst : f32 to vector<512x128xf32>
    %8 = arith.maximumf %6, %7 : vector<512x128xf32>
    %c0_5 = arith.constant 0 : index
    %c0_6 = arith.constant 0 : index
    %9 = vector.load %arg4[%c0_5, %c0_6] : memref<512x128xf32, #tpu.memory_space<vmem>>, vector<512x128xf32>
    tpu.vector_store %arg4[%c0_5, %c0_6], %8 {strides = array<i32>} : memref<512x128xf32, #tpu.memory_space<vmem>>, vector<512x128xf32>,
    return
  }
  func.func @transform_0(%arg0: i32) -> (i32, i32) {
    %c0_i32 = arith.constant 0 : i32
    %c0_i32_0 = arith.constant 0 : i32
    return %arg0, %c0_i32 : i32, i32
  }
  func.func @transform_1(%arg0: i32) -> (i32, i32) {
    %c0_i32 = arith.constant 0 : i32
    %c0_i32_0 = arith.constant 0 : i32
    %c0_i32_1 = arith.constant 0 : i32
    return %c0_i32, %c0_i32_0 : i32, i32
  }
  func.func @transform_2(%arg0: i32) -> (i32, i32) {
    %c0_i32 = arith.constant 0 : i32
    %c0_i32_0 = arith.constant 0 : i32
    %c0_i32_1 = arith.constant 0 : i32
    return %c0_i32, %c0_i32_0 : i32, i32
  }
  func.func @transform_3(%arg0: i32) -> (i32, i32) {
    %c0_i32 = arith.constant 0 : i32
    %c0_i32_0 = arith.constant 0 : i32
    return %arg0, %c0_i32 : i32, i32
  }
}

</mosaic_0001>

<bundles_post_ra>
// kernel: tile.14
= control target key start
LH: loop header
LB: loop body
LE: loop exit
PB: predicated region body
PF: predicated region fallthrough
CT: control target
= control target key end

     0   :  { %s28_s0 = inlined_call_operand.vmem [shape: f32[4], index: 0, kind: input, shape index: {}]   ;;  %s29_s1 = inlined_call_operand.vmem [shape: f32[9,4], index: 1, kind: output, shape index: {}]  }
   0x1   :  { %v4_v0 = vld [vmem:[%s28_s0] ss:$0 sm:$0xff] }
   0x2   :  { %5 = vst [vmem:[%s29_s1] sm:$0xff] %v4_v0 }
   0x3   :  { %8 = vst [vmem:[%s29_s1 + $0x8] sm:$0xff] %v4_v0 }

// kernel: tile.15
= control target key start
LH: loop header
LB: loop body
LE: loop exit
PB: predicated region body
PF: predicated region fallthrough
CT: control target
= control target key end

     0   :  { %s75_s10 = smov 32   ;;  %s76_s11 = smov 24   ;;  %vm3_vm0 = vcmask 31744   ;;  %vm9_vm1 = vcmask 294144   ;;  %vm15_vm2 = vcmask 261344   ;;  %vm21_vm3 = vcmask 228544   ;;  %s123_s0 = inlined_call_operand.vmem [shape: f32[9,4], index: 0, kind: input, shape index: {}]   ;;  %s124_s1 = inlined_call_operand.vmem [shape: f32[36], index: 1, kind: output, shape index: {}]  }
   0x1   :  { %v59_v0 = vld [vmem:[%s123_s0 + $0x8] sm:$0x1]   ;;  %v61_v1 = vld [vmem:[%s123_s0 + $0x6] sm:$0x1]   ;;  %v63_v2 = vld [vmem:[%s123_s0 + $0x4] sm:$0x1]  }
   0x2   :  { %7 = vrot.lane.b32.xlu0 %v59_v0, %s75_s10  ;;  %19 = vrot.lane.b32.xlu1 %v61_v1, %s76_s11  ;;  %s77_s14 = smov 16   ;;  %v60_v3 = vld [vmem:[%s123_s0 + $0x7] sm:$0x1]   ;;  %v62_v4 = vld [vmem:[%s123_s0 + $0x5] sm:$0x1]   ;;  %s78_s19 = smov 28  }
   0x3   :  { %31 = vrot.lane.b32.xlu2 %v63_v2, %s77_s14  ;;  %s79_s20 = smov 20   ;;  %v64_v5 = vld [vmem:[%s123_s0 + $0x3] sm:$0x1]   ;;  %s80_s23 = smov 12   ;;  %v65_v6 = vld [vmem:[%s123_s0 + $0x2] sm:$0x1]  }
   0x4   :  { %v66_v7 = vld [vmem:[%s123_s0 + $0x1] sm:$0x1]   ;;  %s81_s28 = smov 8   ;;  %s82_s29 = smov 4   ;;  %v2_v8 = vld [vmem:[%s123_s0] sm:$0x1]  }
   0x5   :  { %4 = vst.msk [vmem:[#allocation0] sm:$0x1] %vm3_vm0, %v2_v8   ;;  %vm27_vm4 = vcmask 195744   ;;  %vm33_vm5 = vcmask 162944   ;;  %vm39_vm6 = vcmask 130144   ;;  %vm45_vm7 = vcmask 97344  }
   0x6   :  { %vm51_vm8 = vcmask 64544  }
   0xa   :  { %13 = vrot.lane.b32.xlu0 %v60_v3, %s78_s19  ;;  %25 = vrot.lane.b32.xlu1 %v62_v4, %s79_s20 }
   0xb   :  { %37 = vrot.lane.b32.xlu2 %v64_v5, %s80_s23 }
  0x12   :  { %43 = vrot.lane.b32.xlu0 %v65_v6, %s81_s28  ;;  %49 = vrot.lane.b32.xlu1 %v66_v7, %s82_s29 }
  0x5d   :  { %v32_v9 = vpop.permute.xlu2 %31  }
  0x65   :  { %v38_v10 = vpop.permute.xlu2 %37  }
  0x74   :  { %v8_v11 = vpop.permute.xlu0 %7   ;;  %v20_v12 = vpop.permute.xlu1 %19  }
  0x75   :  { %10 = vst.msk [vmem:[#allocation0] sm:$0x1] %vm9_vm1, %v8_v11  }
  0x7c   :  { %v14_v13 = vpop.permute.xlu0 %13   ;;  %v26_v14 = vpop.permute.xlu1 %25  }
  0x7d   :  { %16 = vst.msk [vmem:[#allocation0] sm:$0x1] %vm15_vm2, %v14_v13  }
  0x7e   :  { %22 = vst.msk [vmem:[#allocation0] sm:$0x1] %vm21_vm3, %v20_v12  }
  0x7f   :  { %28 = vst.msk [vmem:[#allocation0] sm:$0x1] %vm27_vm4, %v26_v14  }
  0x80   :  { %34 = vst.msk [vmem:[#allocation0] sm:$0x1] %vm33_vm5, %v32_v9  }
  0x81   :  { %40 = vst.msk [vmem:[#allocation0] sm:$0x1] %vm39_vm6, %v38_v10  }
  0x84   :  { %v44_v15 = vpop.permute.xlu0 %43   ;;  %v50_v16 = vpop.permute.xlu1 %49  }
  0x85   :  { %46 = vst.msk [vmem:[#allocation0] sm:$0x1] %vm45_vm7, %v44_v15  }
  0x86   :  { %52 = vst.msk [vmem:[#allocation0] sm:$0x1] %vm51_vm8, %v50_v16  }
  0x8d   :  { %v55_v17 = vld [vmem:[#allocation0] sm:$0x1] }
  0x8e   :  { %58 = vst [vmem:[%s124_s1] sm:$0x1] %v55_v17 }

// kernel: res_conv_block_forward.3
= control target key start
LH: loop header
LB: loop body
LE: loop exit
PB: predicated region body
PF: predicated region fallthrough
CT: control target
= control target key end

     0   :  { %vm911_vm1 = vcmask 1040384   ;;  %vm913_vm2 = vcmask 1041408   ;;  %s1820_s1 = inlined_call_operand.vmem [shape: f32[128,128], index: 1, kind: input, shape index: {}]   ;;  %s1821_s0 = inlined_call_operand.vmem [shape: f32[512,128], index: 0, kind: input, shape index: {}]   ;;  %s1822_s2 = inlined_call_operand.vmem [shape: f32[512,128], index: 2, kind: output, shape index: {0}]   ;;  %s1823_s3 = inlined_call_operand.vmem [shape: f32[1,8,128], index: 3, kind: output, shape index: {1}]  }
   0x1   :  { %v92_v0 = vld [vmem:[%s1820_s1 + $0x78] sm:$0xff]  ;;  %v91_v1 = vld [vmem:[%s1820_s1 + $0x70] sm:$0xff]  ;;  %v90_v2 = vld [vmem:[%s1820_s1 + $0x68] sm:$0xff] }
   0x2   :  { %93 = vmatpush.msra.mxu0 %v92_v0  ;;  %924 = vmatpush.msra.mxu1 %v92_v0  ;;  %v89_v3 = vld [vmem:[%s1820_s1 + $0x60] sm:$0xff]  ;;  %v88_v4 = vld [vmem:[%s1820_s1 + $0x58] sm:$0xff]  ;;  %v87_v5 = vld [vmem:[%s1820_s1 + $0x50] sm:$0xff] }
   0x3   :  { %925 = vmatpush.msra.mxu2 %v92_v0  ;;  %926 = vmatpush.msra.mxu3 %v92_v0  ;;  %v86_v6 = vld [vmem:[%s1820_s1 + $0x48] sm:$0xff]  ;;  %v85_v7 = vld [vmem:[%s1820_s1 + $0x40] sm:$0xff]  ;;  %v84_v8 = vld [vmem:[%s1820_s1 + $0x38] sm:$0xff] }
   0x4   :  { %94 = vmatpush.msra.mxu0 %v91_v1  ;;  %927 = vmatpush.msra.mxu1 %v91_v1  ;;  %v83_v9 = vld [vmem:[%s1820_s1 + $0x30] sm:$0xff]  ;;  %v82_v10 = vld [vmem:[%s1820_s1 + $0x28] sm:$0xff]  ;;  %v81_v11 = vld [vmem:[%s1820_s1 + $0x20] sm:$0xff] }
   0x5   :  { %928 = vmatpush.msra.mxu2 %v91_v1  ;;  %929 = vmatpush.msra.mxu3 %v91_v1  ;;  %v80_v12 = vld [vmem:[%s1820_s1 + $0x18] sm:$0xff]  ;;  %v79_v13 = vld [vmem:[%s1820_s1 + $0x10] sm:$0xff]  ;;  %v78_v14 = vld [vmem:[%s1820_s1 + $0x8] sm:$0xff] }
   0x6   :  { %95 = vmatpush.msra.mxu0 %v90_v2  ;;  %930 = vmatpush.msra.mxu1 %v90_v2  ;;  %v77_v15 = vld [vmem:[%s1820_s1] sm:$0xff]  ;;  %v14_v18 = vld [vmem:[%s1821_s0 + $0x8] sm:$0xff]  ;;  %v15_v20 = vld [vmem:[%s1821_s0 + $0x10] sm:$0xff] }
   0x7   :  { %931 = vmatpush.msra.mxu2 %v90_v2  ;;  %932 = vmatpush.msra.mxu3 %v90_v2  ;;  %v13_v16 = vld [vmem:[%s1821_s0] sm:$0xff]  ;;  %v30_v19 = vld [vmem:[%s1821_s0 + $0x88] sm:$0xff]  ;;  %v31_v21 = vld [vmem:[%s1821_s0 + $0x90] sm:$0xff] }
   0x8   :  { %96 = vmatpush.msra.mxu0 %v89_v3  ;;  %933 = vmatpush.msra.mxu1 %v89_v3  ;;  %v29_v17 = vld [vmem:[%s1821_s0 + $0x80] sm:$0xff]  ;;  %v16_v22 = vld [vmem:[%s1821_s0 + $0x18] sm:$0xff]  ;;  %v46_v27 = vld [vmem:[%s1821_s0 + $0x108] sm:$0xff] }
   0x9   :  { %934 = vmatpush.msra.mxu2 %v89_v3  ;;  %935 = vmatpush.msra.mxu3 %v89_v3  ;;  %v32_v23 = vld [vmem:[%s1821_s0 + $0x98] sm:$0xff]  ;;  %v45_v24 = vld [vmem:[%s1821_s0 + $0x100] sm:$0xff]  ;;  %v18_v28 = vld [vmem:[%s1821_s0 + $0x28] sm:$0xff] }
   0xa   :  { %97 = vmatpush.msra.mxu0 %v88_v4  ;;  %936 = vmatpush.msra.mxu1 %v88_v4  ;;  %v17_v25 = vld [vmem:[%s1821_s0 + $0x20] sm:$0xff]  ;;  %v34_v29 = vld [vmem:[%s1821_s0 + $0xa8] sm:$0xff]  ;;  %v47_v30 = vld [vmem:[%s1821_s0 + $0x110] sm:$0xff] }
   0xb   :  { %937 = vmatpush.msra.mxu2 %v88_v4  ;;  %938 = vmatpush.msra.mxu3 %v88_v4  ;;  %v33_v26 = vld [vmem:[%s1821_s0 + $0xa0] sm:$0xff]  ;;  %v19_v31 = vld [vmem:[%s1821_s0 + $0x30] sm:$0xff]  ;;  %v48_v33 = vld [vmem:[%s1821_s0 + $0x118] sm:$0xff] }
   0xc   :  { %98 = vmatpush.msra.mxu0 %v87_v5  ;;  %939 = vmatpush.msra.mxu1 %v87_v5  ;;  %v35_v32 = vld [vmem:[%s1821_s0 + $0xb0] sm:$0xff]  ;;  %v20_v34 = vld [vmem:[%s1821_s0 + $0x38] sm:$0xff]  ;;  %v49_v36 = vld [vmem:[%s1821_s0 + $0x120] sm:$0xff] }
   0xd   :  { %940 = vmatpush.msra.mxu2 %v87_v5  ;;  %941 = vmatpush.msra.mxu3 %v87_v5  ;;  %v36_v35 = vld [vmem:[%s1821_s0 + $0xb8] sm:$0xff]  ;;  %v61_v37 = vld [vmem:[%s1821_s0 + $0x180] sm:$0xff]  ;;  %v50_v40 = vld [vmem:[%s1821_s0 + $0x128] sm:$0xff] }
   0xe   :  { %99 = vmatpush.msra.mxu0 %v86_v6  ;;  %942 = vmatpush.msra.mxu1 %v86_v6  ;;  %v21_v38 = vld [vmem:[%s1821_s0 + $0x40] sm:$0xff]  ;;  %v62_v41 = vld [vmem:[%s1821_s0 + $0x188] sm:$0xff]  ;;  %v51_v44 = vld [vmem:[%s1821_s0 + $0x130] sm:$0xff] }
   0xf   :  { %943 = vmatpush.msra.mxu2 %v86_v6  ;;  %944 = vmatpush.msra.mxu3 %v86_v6  ;;  %v37_v39 = vld [vmem:[%s1821_s0 + $0xc0] sm:$0xff]  ;;  %v22_v42 = vld [vmem:[%s1821_s0 + $0x48] sm:$0xff]  ;;  %v63_v45 = vld [vmem:[%s1821_s0 + $0x190] sm:$0xff] }
  0x10   :  { %100 = vmatpush.msra.mxu0 %v85_v7  ;;  %945 = vmatpush.msra.mxu1 %v85_v7  ;;  %v38_v43 = vld [vmem:[%s1821_s0 + $0xc8] sm:$0xff]  ;;  %v23_v46 = vld [vmem:[%s1821_s0 + $0x50] sm:$0xff]  ;;  %v52_v48 = vld [vmem:[%s1821_s0 + $0x138] sm:$0xff] }
  0x11   :  { %946 = vmatpush.msra.mxu2 %v85_v7  ;;  %947 = vmatpush.msra.mxu3 %v85_v7  ;;  %v39_v47 = vld [vmem:[%s1821_s0 + $0xd0] sm:$0xff]  ;;  %v64_v49 = vld [vmem:[%s1821_s0 + $0x198] sm:$0xff]  ;;  %v53_v52 = vld [vmem:[%s1821_s0 + $0x140] sm:$0xff] }
  0x12   :  { %101 = vmatpush.msra.mxu0 %v84_v8  ;;  %948 = vmatpush.msra.mxu1 %v84_v8  ;;  %v24_v50 = vld [vmem:[%s1821_s0 + $0x58] sm:$0xff]  ;;  %v65_v53 = vld [vmem:[%s1821_s0 + $0x1a0] sm:$0xff]  ;;  %v54_v56 = vld [vmem:[%s1821_s0 + $0x148] sm:$0xff] }
  0x13   :  { %949 = vmatpush.msra.mxu2 %v84_v8  ;;  %950 = vmatpush.msra.mxu3 %v84_v8  ;;  %v40_v51 = vld [vmem:[%s1821_s0 + $0xd8] sm:$0xff]  ;;  %v25_v54 = vld [vmem:[%s1821_s0 + $0x60] sm:$0xff]  ;;  %v66_v57 = vld [vmem:[%s1821_s0 + $0x1a8] sm:$0xff] }
  0x14   :  { %102 = vmatpush.msra.mxu0 %v83_v9  ;;  %951 = vmatpush.msra.mxu1 %v83_v9  ;;  %v41_v55 = vld [vmem:[%s1821_s0 + $0xe0] sm:$0xff]  ;;  %v26_v58 = vld [vmem:[%s1821_s0 + $0x68] sm:$0xff]  ;;  %v55_v60 = vld [vmem:[%s1821_s0 + $0x150] sm:$0xff] }
  0x15   :  { %952 = vmatpush.msra.mxu2 %v83_v9  ;;  %953 = vmatpush.msra.mxu3 %v83_v9  ;;  %v42_v59 = vld [vmem:[%s1821_s0 + $0xe8] sm:$0xff]  ;;  %v67_v61 = vld [vmem:[%s1821_s0 + $0x1b0] sm:$0xff]  ;;  %v56_v0 = vld [vmem:[%s1821_s0 + $0x158] sm:$0xff] }
  0x16   :  { %103 = vmatpush.msra.mxu0 %v82_v10  ;;  %954 = vmatpush.msra.mxu1 %v82_v10  ;;  %v27_v62 = vld [vmem:[%s1821_s0 + $0x70] sm:$0xff]  ;;  %v68_v1 = vld [vmem:[%s1821_s0 + $0x1b8] sm:$0xff]  ;;  %v57_v4 = vld [vmem:[%s1821_s0 + $0x160] sm:$0xff] }
  0x17   :  { %955 = vmatpush.msra.mxu2 %v82_v10  ;;  %956 = vmatpush.msra.mxu3 %v82_v10  ;;  %v43_v63 = vld [vmem:[%s1821_s0 + $0xf0] sm:$0xff]  ;;  %v28_v2 = vld [vmem:[%s1821_s0 + $0x78] sm:$0xff]  ;;  %v69_v5 = vld [vmem:[%s1821_s0 + $0x1c0] sm:$0xff] }
  0x18   :  { %104 = vmatpush.msra.mxu0 %v81_v11  ;;  %957 = vmatpush.msra.mxu1 %v81_v11  ;;  %v44_v3 = vld [vmem:[%s1821_s0 + $0xf8] sm:$0xff]  ;;  %v58_v8 = vld [vmem:[%s1821_s0 + $0x168] sm:$0xff] }
  0x19   :  { %958 = vmatpush.msra.mxu2 %v81_v11  ;;  %959 = vmatpush.msra.mxu3 %v81_v11  ;;  %v70_v9 = vld [vmem:[%s1821_s0 + $0x1c8] sm:$0xff] }
  0x1a   :  { %105 = vmatpush.msra.mxu0 %v80_v12  ;;  %960 = vmatpush.msra.mxu1 %v80_v12 }
  0x1b   :  { %961 = vmatpush.msra.mxu2 %v80_v12  ;;  %962 = vmatpush.msra.mxu3 %v80_v12  ;;  %v59_v12 = vld [vmem:[%s1821_s0 + $0x170] sm:$0xff] }
  0x1c   :  { %106 = vmatpush.msra.mxu0 %v79_v13  ;;  %963 = vmatpush.msra.mxu1 %v79_v13 }
  0x1d   :  { %964 = vmatpush.msra.mxu2 %v79_v13  ;;  %965 = vmatpush.msra.mxu3 %v79_v13  ;;  %v71_v13 = vld [vmem:[%s1821_s0 + $0x1d0] sm:$0xff] }
  0x1e   :  { %107 = vmatpush.msra.mxu0 %v78_v14  ;;  %966 = vmatpush.msra.mxu1 %v78_v14 }
  0x1f   :  { %967 = vmatpush.msra.mxu2 %v78_v14  ;;  %968 = vmatpush.msra.mxu3 %v78_v14 }
  0x20   :  { %108 = vmatpush.msra.mxu0 %v77_v15  ;;  %969 = vmatpush.msra.mxu1 %v77_v15 }
  0x21   :  { %109 = vmatmul.f32.vlgmr.msra.gmra.mxu0 %v13_v16  ;;  %157 = vmatmul.f32.vlgmr.msra.gmra.mxu1 %v29_v17  ;;  %v60_v16 = vld [vmem:[%s1821_s0 + $0x178] sm:$0xff] }
  0x22   :  { %970 = vmatpush.msra.mxu2 %v77_v15  ;;  %971 = vmatpush.msra.mxu3 %v77_v15  ;;  %v72_v17 = vld [vmem:[%s1821_s0 + $0x1d8] sm:$0xff] }
  0x23   :  { %205 = vmatmul.f32.vlgmr.msra.gmra.mxu2 %v45_v24  ;;  %253 = vmatmul.f32.vlgmr.msra.gmra.mxu3 %v61_v37  ;;  %v74_v24 = vld [vmem:[%s1821_s0 + $0x1e8] sm:$0xff] }
  0x29   :  { %112 = vmatmul.f32.gmra.mxu0 %v14_v18  ;;  %160 = vmatmul.f32.gmra.mxu1 %v30_v19 }
  0x2b   :  { %208 = vmatmul.f32.gmra.mxu2 %v46_v27  ;;  %256 = vmatmul.f32.gmra.mxu3 %v62_v41 }
  0x31   :  { %115 = vmatmul.f32.gmra.mxu0 %v15_v20  ;;  %163 = vmatmul.f32.gmra.mxu1 %v31_v21  ;;  %v73_v20 = vld [vmem:[%s1821_s0 + $0x1e0] sm:$0xff] }
  0x33   :  { %211 = vmatmul.f32.gmra.mxu2 %v47_v30  ;;  %259 = vmatmul.f32.gmra.mxu3 %v63_v45 }
  0x39   :  { %118 = vmatmul.f32.gmra.mxu0 %v16_v22  ;;  %166 = vmatmul.f32.gmra.mxu1 %v32_v23 }
  0x3b   :  { %214 = vmatmul.f32.gmra.mxu2 %v48_v33  ;;  %262 = vmatmul.f32.gmra.mxu3 %v64_v49 }
  0x41   :  { %121 = vmatmul.f32.gmra.mxu0 %v17_v25  ;;  %169 = vmatmul.f32.gmra.mxu1 %v33_v26 }
  0x43   :  { %217 = vmatmul.f32.gmra.mxu2 %v49_v36  ;;  %265 = vmatmul.f32.gmra.mxu3 %v65_v53 }
  0x49   :  { %124 = vmatmul.f32.gmra.mxu0 %v18_v28  ;;  %172 = vmatmul.f32.gmra.mxu1 %v34_v29  ;;  %v75_v28 = vld [vmem:[%s1821_s0 + $0x1f0] sm:$0xff] }
  0x4b   :  { %220 = vmatmul.f32.gmra.mxu2 %v50_v40  ;;  %268 = vmatmul.f32.gmra.mxu3 %v66_v57 }
  0x51   :  { %127 = vmatmul.f32.gmra.mxu0 %v19_v31  ;;  %175 = vmatmul.f32.gmra.mxu1 %v35_v32  ;;  %v76_v32 = vld [vmem:[%s1821_s0 + $0x1f8] sm:$0xff] }
  0x53   :  { %223 = vmatmul.f32.gmra.mxu2 %v51_v44  ;;  %271 = vmatmul.f32.gmra.mxu3 %v67_v61 }
  0x59   :  { %130 = vmatmul.f32.gmra.mxu0 %v20_v34  ;;  %178 = vmatmul.f32.gmra.mxu1 %v36_v35 }
  0x5b   :  { %226 = vmatmul.f32.gmra.mxu2 %v52_v48  ;;  %274 = vmatmul.f32.gmra.mxu3 %v68_v1 }
  0x61   :  { %133 = vmatmul.f32.gmra.mxu0 %v21_v38  ;;  %181 = vmatmul.f32.gmra.mxu1 %v37_v39 }
  0x63   :  { %229 = vmatmul.f32.gmra.mxu2 %v53_v52  ;;  %277 = vmatmul.f32.gmra.mxu3 %v69_v5 }
  0x69   :  { %136 = vmatmul.f32.gmra.mxu0 %v22_v42  ;;  %184 = vmatmul.f32.gmra.mxu1 %v38_v43 }
  0x6b   :  { %232 = vmatmul.f32.gmra.mxu2 %v54_v56  ;;  %280 = vmatmul.f32.gmra.mxu3 %v70_v9 }
  0x71   :  { %139 = vmatmul.f32.gmra.mxu0 %v23_v46  ;;  %187 = vmatmul.f32.gmra.mxu1 %v39_v47 }
  0x73   :  { %235 = vmatmul.f32.gmra.mxu2 %v55_v60  ;;  %283 = vmatmul.f32.gmra.mxu3 %v71_v13 }
  0x79   :  { %142 = vmatmul.f32.gmra.mxu0 %v24_v50  ;;  %190 = vmatmul.f32.gmra.mxu1 %v40_v51 }
  0x7b   :  { %238 = vmatmul.f32.gmra.mxu2 %v56_v0  ;;  %286 = vmatmul.f32.gmra.mxu3 %v72_v17 }
  0x81   :  { %145 = vmatmul.f32.gmra.mxu0 %v25_v54  ;;  %193 = vmatmul.f32.gmra.mxu1 %v41_v55 }
  0x83   :  { %241 = vmatmul.f32.gmra.mxu2 %v57_v4  ;;  %289 = vmatmul.f32.gmra.mxu3 %v73_v20 }
  0x89   :  { %148 = vmatmul.f32.gmra.mxu0 %v26_v58  ;;  %196 = vmatmul.f32.gmra.mxu1 %v42_v59 }
  0x8b   :  { %244 = vmatmul.f32.gmra.mxu2 %v58_v8  ;;  %292 = vmatmul.f32.gmra.mxu3 %v74_v24 }
  0x91   :  { %151 = vmatmul.f32.gmra.mxu0 %v27_v62  ;;  %199 = vmatmul.f32.gmra.mxu1 %v43_v63 }
  0x93   :  { %247 = vmatmul.f32.gmra.mxu2 %v59_v12  ;;  %295 = vmatmul.f32.gmra.mxu3 %v75_v28 }
  0x99   :  { %154 = vmatmul.f32.gmra.mxu0 %v28_v2  ;;  %202 = vmatmul.f32.gmra.mxu1 %v44_v3 }
  0x9b   :  { %250 = vmatmul.f32.gmra.mxu2 %v60_v16  ;;  %298 = vmatmul.f32.gmra.mxu3 %v76_v32 }
  0x9e   :  { %v1206_v6 = vpop.f32.mrf.mxu0  ;;  %v1208_v7 = vpop.f32.mrf.mxu1 }
  0x9f   :  { %302 = vst [vmem:[%s1822_s2] sm:$0xff] %v1206_v6 }
  0xa0   :  { %318 = vst [vmem:[%s1822_s2 + $0x80] sm:$0xff] %v1208_v7 }
  0xa6   :  { %v1224_v10 = vpop.f32.mrf.mxu0  ;;  %v1226_v11 = vpop.f32.mrf.mxu1 }
  0xa7   :  { %303 = vst [vmem:[%s1822_s2 + $0x8] sm:$0xff] %v1224_v10  ;;  %v1283_v23 = vpop.f32.mrf.mxu2  ;;  %v1366_v39 = vpop.f32.mrf.mxu3  ;;  %v564_v52 = vadd.f32 %v1224_v10, %v1206_v6 }
  0xa8   :  { %319 = vst [vmem:[%s1822_s2 + $0x88] sm:$0xff] %v1226_v11 }
  0xa9   :  { %1841 = vst [vmem:[#allocation2_spill] sm:$0xff] %v1283_v23 }
  0xaa   :  { %334 = vst [vmem:[%s1822_s2 + $0x100] sm:$0xff] %v1283_v23 }
  0xab   :  { %350 = vst [vmem:[%s1822_s2 + $0x180] sm:$0xff] %v1366_v39 }
  0xae   :  { %v1242_v14 = vpop.f32.mrf.mxu0  ;;  %v1244_v15 = vpop.f32.mrf.mxu1 }
  0xaf   :  { %304 = vst [vmem:[%s1822_s2 + $0x10] sm:$0xff] %v1242_v14  ;;  %v1304_v27 = vpop.f32.mrf.mxu2  ;;  %v1390_v43 = vpop.f32.mrf.mxu3  ;;  %v565_v53 = vadd.f32 %v564_v52, %v1242_v14 }
  0xb0   :  { %320 = vst [vmem:[%s1822_s2 + $0x90] sm:$0xff] %v1244_v15 }
  0xb1   :  { %335 = vst [vmem:[%s1822_s2 + $0x108] sm:$0xff] %v1304_v27 }
  0xb2   :  { %351 = vst [vmem:[%s1822_s2 + $0x188] sm:$0xff] %v1390_v43 }
  0xb6   :  { %v1260_v18 = vpop.f32.mrf.mxu0  ;;  %v1262_v19 = vpop.f32.mrf.mxu1 }
  0xb7   :  { %305 = vst [vmem:[%s1822_s2 + $0x18] sm:$0xff] %v1260_v18  ;;  %v1325_v31 = vpop.f32.mrf.mxu2  ;;  %v1414_v47 = vpop.f32.mrf.mxu3  ;;  %v566_v56 = vadd.f32 %v565_v53, %v1260_v18 }
  0xb8   :  { %321 = vst [vmem:[%s1822_s2 + $0x98] sm:$0xff] %v1262_v19 }
  0xb9   :  { %336 = vst [vmem:[%s1822_s2 + $0x110] sm:$0xff] %v1325_v31 }
  0xba   :  { %352 = vst [vmem:[%s1822_s2 + $0x190] sm:$0xff] %v1414_v47 }
  0xbe   :  { %v1275_v21 = vpop.f32.mrf.mxu0  ;;  %v1277_v22 = vpop.f32.mrf.mxu1 }
  0xbf   :  { %306 = vst [vmem:[%s1822_s2 + $0x20] sm:$0xff] %v1275_v21  ;;  %v1346_v35 = vpop.f32.mrf.mxu2  ;;  %v1438_v51 = vpop.f32.mrf.mxu3  ;;  %v567_v59 = vadd.f32 %v566_v56, %v1275_v21 }
  0xc0   :  { %322 = vst [vmem:[%s1822_s2 + $0xa0] sm:$0xff] %v1277_v22 }
  0xc1   :  { %1842 = vst [vmem:[#allocation3_spill] sm:$0xff] %v1346_v35 }
  0xc2   :  { %337 = vst [vmem:[%s1822_s2 + $0x118] sm:$0xff] %v1346_v35 }
  0xc3   :  { %353 = vst [vmem:[%s1822_s2 + $0x198] sm:$0xff] %v1438_v51 }
  0xc6   :  { %v1296_v25 = vpop.f32.mrf.mxu0  ;;  %v1298_v26 = vpop.f32.mrf.mxu1 }
  0xc7   :  { %307 = vst [vmem:[%s1822_s2 + $0x28] sm:$0xff] %v1296_v25  ;;  %v1364_v38 = vpop.f32.mrf.mxu2  ;;  %v1466_v58 = vpop.f32.mrf.mxu3  ;;  %v568_v60 = vadd.f32 %v567_v59, %v1296_v25 }
  0xc8   :  { %323 = vst [vmem:[%s1822_s2 + $0xa8] sm:$0xff] %v1298_v26 }
  0xc9   :  { %338 = vst [vmem:[%s1822_s2 + $0x120] sm:$0xff] %v1364_v38 }
  0xca   :  { %1845 = vst [vmem:[#allocation6_spill] sm:$0xff] %v1466_v58 }
  0xcb   :  { %354 = vst [vmem:[%s1822_s2 + $0x1a0] sm:$0xff] %v1466_v58 }
  0xce   :  { %v1317_v29 = vpop.f32.mrf.mxu0  ;;  %v1319_v30 = vpop.f32.mrf.mxu1 }
  0xcf   :  { %308 = vst [vmem:[%s1822_s2 + $0x30] sm:$0xff] %v1317_v29  ;;  %v1388_v42 = vpop.f32.mrf.mxu2  ;;  %v569_v61 = vadd.f32 %v568_v60, %v1317_v29  ;;  %v1494_v2 = vpop.f32.mrf.mxu3 }
  0xd0   :  { %324 = vst [vmem:[%s1822_s2 + $0xb0] sm:$0xff] %v1319_v30 }
  0xd1   :  { %339 = vst [vmem:[%s1822_s2 + $0x128] sm:$0xff] %v1388_v42 }
  0xd2   :  { %355 = vst [vmem:[%s1822_s2 + $0x1a8] sm:$0xff] %v1494_v2 }
  0xd6   :  { %v1338_v33 = vpop.f32.mrf.mxu0  ;;  %v1340_v34 = vpop.f32.mrf.mxu1 }
  0xd7   :  { %309 = vst [vmem:[%s1822_s2 + $0x38] sm:$0xff] %v1338_v33  ;;  %v1412_v46 = vpop.f32.mrf.mxu2  ;;  %v570_v0 = vadd.f32 %v569_v61, %v1338_v33  ;;  %v1522_v16 = vpop.f32.mrf.mxu3 }
  0xd8   :  { %325 = vst [vmem:[%s1822_s2 + $0xb8] sm:$0xff] %v1340_v34 }
  0xd9   :  { %340 = vst [vmem:[%s1822_s2 + $0x130] sm:$0xff] %v1412_v46 }
  0xda   :  { %1849 = vst [vmem:[#allocation10_spill] sm:$0xff] %v1522_v16 }
  0xdb   :  { %356 = vst [vmem:[%s1822_s2 + $0x1b0] sm:$0xff] %v1522_v16 }
  0xde   :  { %v1356_v36 = vpop.f32.mrf.mxu0  ;;  %v1358_v37 = vpop.f32.mrf.mxu1 }
  0xdf   :  { %310 = vst [vmem:[%s1822_s2 + $0x40] sm:$0xff] %v1356_v36  ;;  %v1436_v50 = vpop.f32.mrf.mxu2  ;;  %v571_v3 = vadd.f32 %v570_v0, %v1356_v36  ;;  %v1550_v56 = vpop.f32.mrf.mxu3 }
  0xe0   :  { %326 = vst [vmem:[%s1822_s2 + $0xc0] sm:$0xff] %v1358_v37 }
  0xe1   :  { %1844 = vst [vmem:[#allocation5_spill] sm:$0xff] %v1436_v50 }
  0xe2   :  { %341 = vst [vmem:[%s1822_s2 + $0x138] sm:$0xff] %v1436_v50 }
  0xe3   :  { %1852 = vst [vmem:[#allocation13_spill] sm:$0xff] %v1550_v56 }
  0xe4   :  { %357 = vst [vmem:[%s1822_s2 + $0x1b8] sm:$0xff] %v1550_v56 }
  0xe6   :  { %v1380_v40 = vpop.f32.mrf.mxu0  ;;  %v1382_v41 = vpop.f32.mrf.mxu1 }
  0xe7   :  { %311 = vst [vmem:[%s1822_s2 + $0x48] sm:$0xff] %v1380_v40  ;;  %v1464_v57 = vpop.f32.mrf.mxu2  ;;  %v572_v4 = vadd.f32 %v571_v3, %v1380_v40 }
  0xe8   :  { %327 = vst [vmem:[%s1822_s2 + $0xc8] sm:$0xff] %v1382_v41 }
  0xe9   :  { %342 = vst [vmem:[%s1822_s2 + $0x140] sm:$0xff] %v1464_v57 }
  0xee   :  { %v1404_v44 = vpop.f32.mrf.mxu0  ;;  %v1406_v45 = vpop.f32.mrf.mxu1 }
  0xef   :  { %312 = vst [vmem:[%s1822_s2 + $0x50] sm:$0xff] %v1404_v44  ;;  %v1492_v1 = vpop.f32.mrf.mxu2  ;;  %v573_v5 = vadd.f32 %v572_v4, %v1404_v44  ;;  %v1570_v4 = vpop.f32.mrf.mxu3 }
  0xf0   :  { %328 = vst [vmem:[%s1822_s2 + $0xd0] sm:$0xff] %v1406_v45 }
  0xf1   :  { %343 = vst [vmem:[%s1822_s2 + $0x148] sm:$0xff] %v1492_v1 }
  0xf2   :  { %1853 = vst [vmem:[#allocation14_spill] sm:$0xff] %v1570_v4 }
  0xf3   :  { %358 = vst [vmem:[%s1822_s2 + $0x1c0] sm:$0xff] %v1570_v4 }
  0xf6   :  { %v1428_v48 = vpop.f32.mrf.mxu0  ;;  %v1430_v49 = vpop.f32.mrf.mxu1 }
  0xf7   :  { %1843 = vst [vmem:[#allocation4_spill] sm:$0xff] %v1430_v49  ;;  %v574_v12 = vadd.f32 %v573_v5, %v1428_v48  ;;  %v1520_v13 = vpop.f32.mrf.mxu2 }
  0xf8   :  { %313 = vst [vmem:[%s1822_s2 + $0x58] sm:$0xff] %v1428_v48 }
  0xf9   :  { %329 = vst [vmem:[%s1822_s2 + $0xd8] sm:$0xff] %v1430_v49 }
  0xfa   :  { %1848 = vst [vmem:[#allocation9_spill] sm:$0xff] %v1520_v13 }
  0xfb   :  { %344 = vst [vmem:[%s1822_s2 + $0x150] sm:$0xff] %v1520_v13 }
  0xfe   :  { %v1455_v54 = vpop.f32.mrf.mxu0  ;;  %v1457_v55 = vpop.f32.mrf.mxu1 }
  0xff   :  { %314 = vst [vmem:[%s1822_s2 + $0x60] sm:$0xff] %v1455_v54  ;;  %v575_v17 = vadd.f32 %v574_v12, %v1455_v54  ;;  %v1548_v53 = vpop.f32.mrf.mxu2 }
 0x100   :  { %330 = vst [vmem:[%s1822_s2 + $0xe0] sm:$0xff] %v1457_v55 }
 0x101   :  { %1851 = vst [vmem:[#allocation12_spill] sm:$0xff] %v1548_v53 }
 0x102   :  { %345 = vst [vmem:[%s1822_s2 + $0x158] sm:$0xff] %v1548_v53 }
 0x106   :  { %v1483_v62 = vpop.f32.mrf.mxu0  ;;  %v1485_v63 = vpop.f32.mrf.mxu1 }
 0x107   :  { %1846 = vst [vmem:[#allocation7_spill] sm:$0xff] %v1485_v63  ;;  %v576_v20 = vadd.f32 %v575_v17, %v1483_v62  ;;  %v1568_v3 = vpop.f32.mrf.mxu2 }
 0x108   :  { %315 = vst [vmem:[%s1822_s2 + $0x68] sm:$0xff] %v1483_v62 }
 0x109   :  { %331 = vst [vmem:[%s1822_s2 + $0xe8] sm:$0xff] %v1485_v63 }
 0x10a   :  { %346 = vst [vmem:[%s1822_s2 + $0x160] sm:$0xff] %v1568_v3 }
 0x10e   :  { %v1511_v8 = vpop.f32.mrf.mxu0  ;;  %v1513_v9 = vpop.f32.mrf.mxu1 }
 0x10f   :  { %1847 = vst [vmem:[#allocation8_spill] sm:$0xff] %v1513_v9  ;;  %v577_v24 = vadd.f32 %v576_v20, %v1511_v8 }
 0x110   :  { %316 = vst [vmem:[%s1822_s2 + $0x70] sm:$0xff] %v1511_v8 }
 0x111   :  { %332 = vst [vmem:[%s1822_s2 + $0xf0] sm:$0xff] %v1513_v9 }
 0x116   :  { %v1539_v28 = vpop.f32.mrf.mxu0  ;;  %v1541_v32 = vpop.f32.mrf.mxu1 }
 0x117   :  { %1850 = vst [vmem:[#allocation11_spill] sm:$0xff] %v1541_v32  ;;  %v578_v52 = vadd.f32 %v577_v24, %v1539_v28  ;;  %v1584_v24 = vpop.f32.mrf.mxu2 }
 0x118   :  { %317 = vst [vmem:[%s1822_s2 + $0x78] sm:$0xff] %v1539_v28 }
 0x119   :  { %333 = vst [vmem:[%s1822_s2 + $0xf8] sm:$0xff] %v1541_v32  ;;  %v579_v59 = vadd.f32 %v578_v52, %v1208_v7  ;;  %v1586_v52 = vpop.f32.mrf.mxu3 }
 0x11a   :  { %1854 = vst [vmem:[#allocation15_spill] sm:$0xff] %v1586_v52 }
 0x11b   :  { %v580_v60 = vadd.f32 %v579_v59, %v1226_v11  ;;  %347 = vst [vmem:[%s1822_s2 + $0x168] sm:$0xff] %v1584_v24 }
 0x11c   :  { %359 = vst [vmem:[%s1822_s2 + $0x1c8] sm:$0xff] %v1586_v52 }
 0x11d   :  { %v581_v61 = vadd.f32 %v580_v60, %v1244_v15 }
 0x11f   :  { %v582_v0 = vadd.f32 %v581_v61, %v1262_v19 }
 0x121   :  { %v583_v5 = vadd.f32 %v582_v0, %v1277_v22 }
 0x123   :  { %v584_v12 = vadd.f32 %v583_v5, %v1298_v26  ;;  %v1600_v5 = vpop.f32.mrf.mxu2 }
 0x124   :  { %1855 = vst [vmem:[#allocation16_spill] sm:$0xff] %v1600_v5 }
 0x125   :  { %v585_v17 = vadd.f32 %v584_v12, %v1319_v30  ;;  %v1602_v12 = vpop.f32.mrf.mxu3  ;;  %348 = vst [vmem:[%s1822_s2 + $0x170] sm:$0xff] %v1600_v5 }
 0x126   :  { %1856 = vst [vmem:[#allocation17_spill] sm:$0xff] %v1602_v12 }
 0x127   :  { %v586_v20 = vadd.f32 %v585_v17, %v1340_v34  ;;  %360 = vst [vmem:[%s1822_s2 + $0x1d0] sm:$0xff] %v1602_v12 }
 0x129   :  { %v587_v59 = vadd.f32 %v586_v20, %v1358_v37 }
 0x12b   :  { %v588_v60 = vadd.f32 %v587_v59, %v1382_v41 }
 0x12d   :  { %v589_v61 = vadd.f32 %v588_v60, %v1406_v45 }
 0x12f   :  { %v590_v0 = vadd.f32 %v589_v61, %v1430_v49  ;;  %v1616_v61 = vpop.f32.mrf.mxu2  ;;  %v1618_v49 = vpop.f32.mrf.mxu3 }
 0x130   :  { %1857 = vst [vmem:[#allocation18_spill] sm:$0xff] %v1616_v61 }
 0x131   :  { %v591_v17 = vadd.f32 %v590_v0, %v1457_v55  ;;  %349 = vst [vmem:[%s1822_s2 + $0x178] sm:$0xff] %v1616_v61 }
 0x132   :  { %361 = vst [vmem:[%s1822_s2 + $0x1d8] sm:$0xff] %v1618_v49 }
 0x133   :  { %v592_v20 = vadd.f32 %v591_v17, %v1485_v63 }
 0x135   :  { %v593_v59 = vadd.f32 %v592_v20, %v1513_v9 }
 0x137   :  { %v594_v60 = vadd.f32 %v593_v59, %v1541_v32  ;;  %v1632_v32 = vpop.f32.mrf.mxu3 }
 0x138   :  { %362 = vst [vmem:[%s1822_s2 + $0x1e0] sm:$0xff] %v1632_v32 }
 0x139   :  { %v595_v0 = vadd.f32 %v594_v60, %v1283_v23 }
 0x13b   :  { %v596_v17 = vadd.f32 %v595_v0, %v1304_v27 }
 0x13d   :  { %v597_v20 = vadd.f32 %v596_v17, %v1325_v31 }
 0x13f   :  { %v598_v59 = vadd.f32 %v597_v20, %v1346_v35  ;;  %v1642_v0 = vpop.f32.mrf.mxu3 }
 0x140   :  { %363 = vst [vmem:[%s1822_s2 + $0x1e8] sm:$0xff] %v1642_v0 }
 0x141   :  { %v599_v60 = vadd.f32 %v598_v59, %v1364_v38 }
 0x143   :  { %v600_v23 = vadd.f32 %v599_v60, %v1388_v42 }
 0x145   :  { %v601_v9 = vadd.f32 %v600_v23, %v1412_v46 }
 0x147   :  { %v602_v63 = vadd.f32 %v601_v9, %v1436_v50  ;;  %v1652_v60 = vpop.f32.mrf.mxu3 }
 0x148   :  { %364 = vst [vmem:[%s1822_s2 + $0x1f0] sm:$0xff] %v1652_v60 }
 0x149   :  { %v603_v17 = vadd.f32 %v602_v63, %v1464_v57 }
 0x14b   :  { %v604_v20 = vadd.f32 %v603_v17, %v1492_v1 }
 0x14d   :  { %v605_v35 = vadd.f32 %v604_v20, %v1520_v13 }
 0x14f   :  { %v606_v59 = vadd.f32 %v605_v35, %v1548_v53  ;;  %v299_v17 = vpop.f32.mrf.mxu3 }
 0x150   :  { %365 = vst [vmem:[%s1822_s2 + $0x1f8] sm:$0xff] %v299_v17 }
 0x151   :  { %v607_v23 = vadd.f32 %v606_v59, %v1568_v3 }
 0x153   :  { %v608_v9 = vadd.f32 %v607_v23, %v1584_v24 }
 0x155   :  { %v609_v50 = vadd.f32 %v608_v9, %v1600_v5 }
 0x157   :  { %v610_v63 = vadd.f32 %v609_v50, %v1616_v61 }
 0x159   :  { %v611_v35 = vadd.f32 %v610_v63, %v1366_v39 }
 0x15b   :  { %v612_v20 = vadd.f32 %v611_v35, %v1390_v43 }
 0x15d   :  { %v613_v53 = vadd.f32 %v612_v20, %v1414_v47 }
 0x15f   :  { %v614_v13 = vadd.f32 %v613_v53, %v1438_v51 }
 0x161   :  { %v615_v59 = vadd.f32 %v614_v13, %v1466_v58  ;;  %v975_v58 = vmov 512.0  }
 0x162   :  { %973 = vrcp.f32 %v975_v58 }
 0x163   :  { %v616_v23 = vadd.f32 %v615_v59, %v1494_v2 }
 0x165   :  { %v617_v9 = vadd.f32 %v616_v23, %v1522_v16 }
 0x167   :  { %v618_v50 = vadd.f32 %v617_v9, %v1550_v56 }
 0x168   :  { %v974_v16 = vpop.eup %973 }
 0x169   :  { %v619_v61 = vadd.f32 %v618_v50, %v1570_v4  ;;  %v636_v56 = vmul.f32 512.0, %v974_v16  ;;  %vm641_vm0 = vweird.f32 %v974_v16 }
 0x16b   :  { %v620_v5 = vadd.f32 %v619_v61, %v1586_v52  ;;  %v637_v4 = vsub.f32 1.0, %v636_v56 }
 0x16d   :  { %v621_v63 = vadd.f32 %v620_v5, %v1602_v12  ;;  %v638_v52 = vmul.f32 %v974_v16, %v637_v4 }
 0x16f   :  { %v622_v35 = vadd.f32 %v621_v63, %v1618_v49  ;;  %v639_v12 = vadd.f32 %v974_v16, %v638_v52 }
 0x171   :  { %v623_v20 = vadd.f32 %v622_v35, %v1632_v32  ;;  %v643_v35 = vsel %vm641_vm0, %v974_v16, %v639_v12 }
 0x173   :  { %v624_v53 = vadd.f32 %v623_v20, %v1642_v0 }
 0x175   :  { %v625_v13 = vadd.f32 %v624_v53, %v1652_v60 }
 0x177   :  { %v626_v59 = vadd.f32 %v625_v13, %v299_v17 }
 0x179   :  { %v627_v23 = vrot.slane %v626_v59, 4 }
 0x17b   :  { %v628_v9 = vadd.f32 %v627_v23, %v626_v59 }
 0x17d   :  { %v629_v50 = vrot.slane %v628_v9, 2 }
 0x17f   :  { %v630_v61 = vadd.f32 %v629_v50, %v628_v9 }
 0x181   :  { %v631_v5 = vrot.slane %v630_v61, 1 }
 0x183   :  { %v1680_v63 = vadd.f32 %v631_v5, %v630_v61 }
 0x185   :  { %v1683_v20 = vmul.f32 %v643_v35, %v1680_v63 }
 0x187   :  { %v1686_v58 = vsub.f32 %v299_v17, %v1683_v20  ;;  %v650_v53 = vsub.f32 %v1206_v6, %v1683_v20  ;;  %v651_v56 = vsub.f32 %v1224_v10, %v1683_v20  ;;  %v652_v4 = vsub.f32 %v1242_v14, %v1683_v20 }
 0x188   :  { %v653_v16 = vsub.f32 %v1260_v18, %v1683_v20  ;;  %v654_v12 = vsub.f32 %v1275_v21, %v1683_v20  ;;  %v655_v23 = vsub.f32 %v1296_v25, %v1683_v20  ;;  %v656_v10 = vsub.f32 %v1317_v29, %v1683_v20 }
 0x189   :  { %v778_v52 = vmul.f32 %v650_v53, %v650_v53  ;;  %v779_v13 = vmul.f32 %v651_v56, %v651_v56  ;;  %v780_v59 = vmul.f32 %v652_v4, %v652_v4  ;;  %v657_v61 = vsub.f32 %v1338_v33, %v1683_v20 }
 0x18a   :  { %v781_v6 = vmul.f32 %v653_v16, %v653_v16  ;;  %v782_v50 = vmul.f32 %v654_v12, %v654_v12  ;;  %v783_v5 = vmul.f32 %v655_v23, %v655_v23  ;;  %v658_v21 = vsub.f32 %v1356_v36, %v1683_v20 }
 0x18b   :  { %v842_v17 = vadd.f32 %v779_v13, %v778_v52  ;;  %v784_v35 = vmul.f32 %v656_v10, %v656_v10  ;;  %v659_v25 = vsub.f32 %v1380_v40, %v1683_v20  ;;  %v785_v56 = vmul.f32 %v657_v61, %v657_v61 }
 0x18c   :  { %v660_v29 = vsub.f32 %v1404_v44, %v1683_v20  ;;  %v786_v52 = vmul.f32 %v658_v21, %v658_v21  ;;  %v661_v33 = vsub.f32 %v1428_v48, %v1683_v20  ;;  %v662_v36 = vsub.f32 %v1455_v54, %v1683_v20 }
 0x18d   :  { %v843_v9 = vadd.f32 %v842_v17, %v780_v59  ;;  %v787_v16 = vmul.f32 %v659_v25, %v659_v25  ;;  %v663_v40 = vsub.f32 %v1483_v62, %v1683_v20  ;;  %v664_v44 = vsub.f32 %v1511_v8, %v1683_v20 }
 0x18e   :  { %v788_v59 = vmul.f32 %v660_v29, %v660_v29  ;;  %v789_v23 = vmul.f32 %v661_v33, %v661_v33  ;;  %v665_v48 = vsub.f32 %v1539_v28, %v1683_v20  ;;  %v666_v54 = vsub.f32 %v1208_v7, %v1683_v20 }
 0x18f   :  { %v844_v14 = vadd.f32 %v843_v9, %v781_v6  ;;  %v790_v9 = vmul.f32 %v662_v36, %v662_v36  ;;  %v792_v61 = vmul.f32 %v664_v44, %v664_v44  ;;  %v667_v62 = vsub.f32 %v1226_v11, %v1683_v20 }
 0x190   :  { %v668_v8 = vsub.f32 %v1244_v15, %v1683_v20  ;;  %v669_v28 = vsub.f32 %v1262_v19, %v1683_v20  ;;  %v670_v7 = vsub.f32 %v1277_v22, %v1683_v20  ;;  %v671_v11 = vsub.f32 %v1298_v26, %v1683_v20 }
 0x191   :  { %v845_v18 = vadd.f32 %v844_v14, %v782_v50  ;;  %v791_v50 = vmul.f32 %v663_v40, %v663_v40  ;;  %v795_v25 = vmul.f32 %v667_v62, %v667_v62  ;;  %v672_v15 = vsub.f32 %v1319_v30, %v1683_v20  ;;  %v1860_v62 = vld [vmem:[#allocation8_spill] sm:$0xff] }
 0x192   :  { %v798_v33 = vmul.f32 %v670_v7, %v670_v7  ;;  %v673_v19 = vsub.f32 %v1340_v34, %v1683_v20  ;;  %v674_v22 = vsub.f32 %v1358_v37, %v1683_v20  ;;  %v675_v26 = vsub.f32 %v1382_v41, %v1683_v20 }
 0x193   :  { %v846_v53 = vadd.f32 %v845_v18, %v783_v5  ;;  %v793_v18 = vmul.f32 %v665_v48, %v665_v48  ;;  %v676_v30 = vsub.f32 %v1406_v45, %v1683_v20  ;;  %v678_v37 = vsub.f32 %v1457_v55, %v1683_v20 }
 0x194   :  { %v801_v40 = vmul.f32 %v673_v19, %v673_v19  ;;  %v680_v45 = vsub.f32 %v1860_v62, %v1683_v20 }
 0x195   :  { %v847_v4 = vadd.f32 %v846_v53, %v784_v35  ;;  %v794_v35 = vmul.f32 %v666_v54, %v666_v54  ;;  %v1859_v54 = vld [vmem:[#allocation7_spill] sm:$0xff] }
 0x196   :  { %v679_v41 = vsub.f32 %v1859_v54, %v1683_v20 }
 0x197   :  { %v848_v13 = vadd.f32 %v847_v4, %v785_v56  ;;  %v796_v4 = vmul.f32 %v668_v8, %v668_v8  ;;  %v1861_v8 = vld [vmem:[#allocation11_spill] sm:$0xff] }
 0x199   :  { %v849_v12 = vadd.f32 %v848_v13, %v786_v52  ;;  %v797_v52 = vmul.f32 %v669_v28, %v669_v28 }
 0x19b   :  { %v850_v17 = vadd.f32 %v849_v12, %v787_v16  ;;  %v799_v12 = vmul.f32 %v671_v11, %v671_v11 }
 0x19d   :  { %v851_v6 = vadd.f32 %v850_v17, %v788_v59  ;;  %v800_v59 = vmul.f32 %v672_v15, %v672_v15 }
 0x19f   :  { %v852_v10 = vadd.f32 %v851_v6, %v789_v23  ;;  %v802_v6 = vmul.f32 %v674_v22, %v674_v22 }
 0x1a1   :  { %v853_v14 = vadd.f32 %v852_v10, %v790_v9  ;;  %v1858_v9 = vld [vmem:[#allocation4_spill] sm:$0xff]  ;;  %v803_v10 = vmul.f32 %v675_v26, %v675_v26 }
 0x1a2   :  { %v677_v34 = vsub.f32 %v1858_v9, %v1683_v20 }
 0x1a3   :  { %v854_v5 = vadd.f32 %v853_v14, %v791_v50  ;;  %v804_v50 = vmul.f32 %v676_v30, %v676_v30  ;;  %v1864_v30 = vld [vmem:[#allocation5_spill] sm:$0xff] }
 0x1a5   :  { %v855_v21 = vadd.f32 %v854_v5, %v792_v61  ;;  %v805_v61 = vmul.f32 %v677_v34, %v677_v34 }
 0x1a7   :  { %v856_v53 = vadd.f32 %v855_v21, %v793_v18  ;;  %v806_v18 = vmul.f32 %v678_v37, %v678_v37 }
 0x1a9   :  { %v857_v56 = vadd.f32 %v856_v53, %v794_v35  ;;  %v681_v35 = vsub.f32 %v1861_v8, %v1683_v20  ;;  %v807_v53 = vmul.f32 %v679_v41, %v679_v41  ;;  %v1866_v41 = vld [vmem:[#allocation12_spill] sm:$0xff] }
 0x1ab   :  { %v858_v29 = vadd.f32 %v857_v56, %v795_v25  ;;  %v1862_v25 = vld [vmem:[#allocation2_spill] sm:$0xff]  ;;  %v808_v56 = vmul.f32 %v680_v45, %v680_v45 }
 0x1ac   :  { %v682_v55 = vsub.f32 %v1862_v25, %v1683_v20 }
 0x1ad   :  { %v859_v13 = vadd.f32 %v858_v29, %v796_v4  ;;  %v683_v4 = vsub.f32 %v1304_v27, %v1683_v20  ;;  %v809_v29 = vmul.f32 %v681_v35, %v681_v35  ;;  %v687_v27 = vsub.f32 %v1388_v42, %v1683_v20  ;;  %v1867_v35 = vld [vmem:[#allocation16_spill] sm:$0xff] }
 0x1ae   :  { %v691_v42 = vsub.f32 %v1492_v1, %v1683_v20  ;;  %v695_v1 = vsub.f32 %v1584_v24, %v1683_v20  ;;  %v699_v24 = vsub.f32 %v1390_v43, %v1683_v20  ;;  %v703_v43 = vsub.f32 %v1494_v2, %v1683_v20 }
 0x1af   :  { %v860_v16 = vadd.f32 %v859_v13, %v797_v52  ;;  %v684_v52 = vsub.f32 %v1325_v31, %v1683_v20  ;;  %v810_v13 = vmul.f32 %v682_v55, %v682_v55  ;;  %v811_v19 = vmul.f32 %v683_v4, %v683_v4  ;;  %v1868_v55 = vld [vmem:[#allocation18_spill] sm:$0xff] }
 0x1b0   :  { %v688_v31 = vsub.f32 %v1412_v46, %v1683_v20 }
 0x1b1   :  { %v861_v36 = vadd.f32 %v860_v16, %v798_v33  ;;  %v1863_v33 = vld [vmem:[#allocation3_spill] sm:$0xff]  ;;  %v812_v22 = vmul.f32 %v684_v52, %v684_v52 }
 0x1b2   :  { %v685_v16 = vsub.f32 %v1863_v33, %v1683_v20  ;;  %v816_v34 = vmul.f32 %v688_v31, %v688_v31  ;;  %v1870_v31 = vld [vmem:[#allocation10_spill] sm:$0xff] }
 0x1b3   :  { %v862_v17 = vadd.f32 %v861_v36, %v799_v12  ;;  %v686_v36 = vsub.f32 %v1364_v38, %v1683_v20  ;;  %v690_v38 = vsub.f32 %v1464_v57, %v1683_v20  ;;  %v694_v57 = vsub.f32 %v1568_v3, %v1683_v20 }
 0x1b4   :  { %v698_v3 = vsub.f32 %v1366_v39, %v1683_v20 }
 0x1b5   :  { %v863_v23 = vadd.f32 %v862_v17, %v800_v59  ;;  %v813_v17 = vmul.f32 %v685_v16, %v685_v16 }
 0x1b6   :  { %v826_v33 = vmul.f32 %v698_v3, %v698_v3 }
 0x1b7   :  { %v864_v44 = vadd.f32 %v863_v23, %v801_v40  ;;  %v814_v40 = vmul.f32 %v686_v36, %v686_v36 }
 0x1b9   :  { %v865_v48 = vadd.f32 %v864_v44, %v802_v6  ;;  %v689_v6 = vsub.f32 %v1864_v30, %v1683_v20  ;;  %v815_v44 = vmul.f32 %v687_v27, %v687_v27  ;;  %v1871_v30 = vld [vmem:[#allocation13_spill] sm:$0xff] }
 0x1bb   :  { %v866_v14 = vadd.f32 %v865_v48, %v803_v10  ;;  %v817_v48 = vmul.f32 %v689_v6, %v689_v6  ;;  %v831_v6 = vmul.f32 %v703_v43, %v703_v43 }
 0x1bd   :  { %v867_v5 = vadd.f32 %v866_v14, %v804_v50  ;;  %v1865_v50 = vld [vmem:[#allocation9_spill] sm:$0xff]  ;;  %v818_v14 = vmul.f32 %v690_v38, %v690_v38 }
 0x1be   :  { %v692_v46 = vsub.f32 %v1865_v50, %v1683_v20  ;;  %v1874_v50 = vld [vmem:[#allocation17_spill] sm:$0xff] }
 0x1bf   :  { %v868_v21 = vadd.f32 %v867_v5, %v805_v61  ;;  %v693_v61 = vsub.f32 %v1866_v41, %v1683_v20  ;;  %v819_v5 = vmul.f32 %v691_v42, %v691_v42  ;;  %v1873_v42 = vld [vmem:[#allocation15_spill] sm:$0xff]  ;;  %v709_v41 = vsub.f32 %v1618_v49, %v1683_v20 }
 0x1c0   :  { %v820_v45 = vmul.f32 %v692_v46, %v692_v46  ;;  %v707_v2 = vsub.f32 %v1873_v42, %v1683_v20  ;;  %v708_v46 = vsub.f32 %v1874_v50, %v1683_v20 }
 0x1c1   :  { %v869_v28 = vadd.f32 %v868_v21, %v806_v18  ;;  %v821_v21 = vmul.f32 %v693_v61, %v693_v61 }
 0x1c2   :  { %v835_v61 = vmul.f32 %v707_v2, %v707_v2 }
 0x1c3   :  { %v870_v7 = vadd.f32 %v869_v28, %v807_v53  ;;  %v696_v53 = vsub.f32 %v1867_v35, %v1683_v20  ;;  %v822_v28 = vmul.f32 %v694_v57, %v694_v57  ;;  %v836_v57 = vmul.f32 %v708_v46, %v708_v46 }
 0x1c5   :  { %v871_v11 = vadd.f32 %v870_v7, %v808_v56  ;;  %v697_v56 = vsub.f32 %v1868_v55, %v1683_v20  ;;  %v823_v7 = vmul.f32 %v695_v1, %v695_v1  ;;  %v837_v1 = vmul.f32 %v709_v41, %v709_v41 }
 0x1c7   :  { %v872_v15 = vadd.f32 %v871_v11, %v809_v29  ;;  %v824_v29 = vmul.f32 %v696_v53, %v696_v53  ;;  %v825_v52 = vmul.f32 %v697_v56, %v697_v56  ;;  %v841_v56 = vmul.f32 %v1686_v58, %v1686_v58 }
 0x1c9   :  { %v873_v12 = vadd.f32 %v872_v15, %v810_v13  ;;  %v700_v15 = vsub.f32 %v1414_v47, %v1683_v20  ;;  %v704_v47 = vsub.f32 %v1870_v31, %v1683_v20 }
 0x1cb   :  { %v874_v59 = vadd.f32 %v873_v12, %v811_v19  ;;  %v701_v19 = vsub.f32 %v1438_v51, %v1683_v20  ;;  %v827_v12 = vmul.f32 %v699_v24, %v699_v24  ;;  %v705_v51 = vsub.f32 %v1871_v30, %v1683_v20 }
 0x1cd   :  { %v875_v26 = vadd.f32 %v874_v59, %v812_v22  ;;  %v1869_v22 = vld [vmem:[#allocation6_spill] sm:$0xff]  ;;  %v828_v59 = vmul.f32 %v700_v15, %v700_v15 }
 0x1ce   :  { %v702_v39 = vsub.f32 %v1869_v22, %v1683_v20 }
 0x1cf   :  { %v876_v23 = vadd.f32 %v875_v26, %v813_v17  ;;  %v829_v17 = vmul.f32 %v701_v19, %v701_v19 }
 0x1d1   :  { %v877_v9 = vadd.f32 %v876_v23, %v814_v40  ;;  %v830_v40 = vmul.f32 %v702_v39, %v702_v39 }
 0x1d3   :  { %v878_v10 = vadd.f32 %v877_v9, %v815_v44  ;;  %v1872_v9 = vld [vmem:[#allocation14_spill] sm:$0xff] }
 0x1d4   :  { %v706_v38 = vsub.f32 %v1872_v9, %v1683_v20 }
 0x1d5   :  { %v879_v37 = vadd.f32 %v878_v10, %v816_v34  ;;  %v832_v34 = vmul.f32 %v704_v47, %v704_v47 }
 0x1d7   :  { %v880_v54 = vadd.f32 %v879_v37, %v817_v48  ;;  %v833_v48 = vmul.f32 %v705_v51, %v705_v51 }
 0x1d9   :  { %v881_v62 = vadd.f32 %v880_v54, %v818_v14  ;;  %v834_v14 = vmul.f32 %v706_v38, %v706_v38 }
 0x1db   :  { %v882_v18 = vadd.f32 %v881_v62, %v819_v5  ;;  %v710_v62 = vsub.f32 %v1632_v32, %v1683_v20 }
 0x1dd   :  { %v883_v8 = vadd.f32 %v882_v18, %v820_v45  ;;  %v711_v18 = vsub.f32 %v1642_v0, %v1683_v20  ;;  %v838_v35 = vmul.f32 %v710_v62, %v710_v62 }
 0x1df   :  { %v884_v25 = vadd.f32 %v883_v8, %v821_v21  ;;  %v712_v8 = vsub.f32 %v1652_v60, %v1683_v20 }
 0x1e1   :  { %v885_v4 = vadd.f32 %v884_v25, %v822_v28  ;;  %v839_v28 = vmul.f32 %v711_v18, %v711_v18  ;;  %v840_v49 = vmul.f32 %v712_v8, %v712_v8 }
 0x1e3   :  { %v886_v11 = vadd.f32 %v885_v4, %v823_v7 }
 0x1e5   :  { %v887_v13 = vadd.f32 %v886_v11, %v824_v29 }
 0x1e7   :  { %v888_v16 = vadd.f32 %v887_v13, %v825_v52 }
 0x1e9   :  { %v889_v36 = vadd.f32 %v888_v16, %v826_v33 }
 0x1eb   :  { %v890_v27 = vadd.f32 %v889_v36, %v827_v12 }
 0x1ed   :  { %v891_v26 = vadd.f32 %v890_v27, %v828_v59 }
 0x1ef   :  { %v892_v23 = vadd.f32 %v891_v26, %v829_v17 }
 0x1f1   :  { %v893_v44 = vadd.f32 %v892_v23, %v830_v40 }
 0x1f3   :  { %v894_v10 = vadd.f32 %v893_v44, %v831_v6 }
 0x1f5   :  { %v895_v37 = vadd.f32 %v894_v10, %v832_v34 }
 0x1f7   :  { %v896_v54 = vadd.f32 %v895_v37, %v833_v48 }
 0x1f9   :  { %v897_v5 = vadd.f32 %v896_v54, %v834_v14 }
 0x1fb   :  { %v898_v45 = vadd.f32 %v897_v5, %v835_v61 }
 0x1fd   :  { %v899_v21 = vadd.f32 %v898_v45, %v836_v57 }
 0x1ff   :  { %v900_v53 = vadd.f32 %v899_v21, %v837_v1 }
 0x201   :  { %v901_v25 = vadd.f32 %v900_v53, %v838_v35 }
 0x203   :  { %v902_v55 = vadd.f32 %v901_v25, %v839_v28 }
 0x205   :  { %v903_v32 = vadd.f32 %v902_v55, %v840_v49 }
 0x207   :  { %v904_v7 = vadd.f32 %v903_v32, %v841_v56 }
 0x209   :  { %v905_v4 = vrot.slane %v904_v7, 4 }
 0x20b   :  { %v906_v3 = vadd.f32 %v905_v4, %v904_v7 }
 0x20d   :  { %v907_v29 = vrot.slane %v906_v3, 2 }
 0x20f   :  { %v908_v0 = vadd.f32 %v907_v29, %v906_v3 }
 0x211   :  { %v909_v11 = vrot.slane %v908_v0, 1 }
 0x213   :  { %v910_v24 = vadd.f32 %v909_v11, %v908_v0 }
 0x215   :  { %v912_v60 = vsel %vm911_vm1, %v1680_v63, %v910_v24 }
 0x216   :  { %v914_v20 = vsel %vm913_vm2, %v912_v60, 0.0 }
 0x217   :  { %915 = vst [vmem:[%s1823_s3] sm:$0xff] %v914_v20 }

// kernel: res_conv_block_forward.5
= control target key start
LH: loop header
LB: loop body
LE: loop exit
PB: predicated region body
PF: predicated region fallthrough
CT: control target
= control target key end

     0   :  { %s893_s0 = inlined_call_operand.vmem [shape: f32[512,128], index: 0, kind: input, shape index: {}]   ;;  %s894_s1 = inlined_call_operand.vmem [shape: f32[1,128], index: 1, kind: input, shape index: {}]   ;;  %s895_s2 = inlined_call_operand.vmem [shape: f32[1,128], index: 2, kind: input, shape index: {}]   ;;  %s896_s3 = inlined_call_operand.vmem [shape: f32[512,128], index: 3, kind: output, shape index: {}]  }
   0x1   :  { %v14_v0 = vld [vmem:[%s893_s0] sm:$0xff]  ;;  %v15_v3 = vld [vmem:[%s893_s0 + $0x8] sm:$0xff]  ;;  %v16_v6 = vld [vmem:[%s893_s0 + $0x10] sm:$0xff] }
   0x2   :  { %v374_v1 = vld [vmem:[%s894_s1] ss:$0 sm:$0xff]  ;;  %v17_v7 = vld [vmem:[%s893_s0 + $0x18] sm:$0xff]  ;;  %v19_v12 = vld [vmem:[%s893_s0 + $0x28] sm:$0xff] }
   0x3   :  { %v379_v2 = vld [vmem:[%s895_s2] ss:$0 sm:$0xff]  ;;  %v82_v4 = vmul.f32 %v374_v1, %v14_v0  ;;  %v83_v5 = vmul.f32 %v374_v1, %v15_v3  ;;  %v84_v9 = vmul.f32 %v374_v1, %v16_v6  ;;  %v85_v10 = vmul.f32 %v374_v1, %v17_v7  ;;  %v20_v13 = vld [vmem:[%s893_s0 + $0x30] sm:$0xff]  ;;  %v21_v14 = vld [vmem:[%s893_s0 + $0x38] sm:$0xff] }
   0x4   :  { %v18_v8 = vld [vmem:[%s893_s0 + $0x20] sm:$0xff]  ;;  %v87_v17 = vmul.f32 %v374_v1, %v19_v12  ;;  %v88_v18 = vmul.f32 %v374_v1, %v20_v13  ;;  %v89_v22 = vmul.f32 %v374_v1, %v21_v14  ;;  %v23_v24 = vld [vmem:[%s893_s0 + $0x48] sm:$0xff]  ;;  %v24_v29 = vld [vmem:[%s893_s0 + $0x50] sm:$0xff] }
   0x5   :  { %v86_v11 = vmul.f32 %v374_v1, %v18_v8  ;;  %v150_v15 = vadd.f32 %v379_v2, %v82_v4  ;;  %v151_v16 = vadd.f32 %v379_v2, %v83_v5  ;;  %v152_v19 = vadd.f32 %v379_v2, %v84_v9  ;;  %v22_v23 = vld [vmem:[%s893_s0 + $0x40] sm:$0xff]  ;;  %v25_v30 = vld [vmem:[%s893_s0 + $0x58] sm:$0xff]  ;;  %v27_v35 = vld [vmem:[%s893_s0 + $0x68] sm:$0xff] }
   0x6   :  { %v153_v20 = vadd.f32 %v379_v2, %v85_v10  ;;  %v155_v27 = vadd.f32 %v379_v2, %v87_v17  ;;  %v156_v28 = vadd.f32 %v379_v2, %v88_v18  ;;  %v26_v31 = vld [vmem:[%s893_s0 + $0x60] sm:$0xff]  ;;  %v157_v34 = vadd.f32 %v379_v2, %v89_v22  ;;  %v28_v36 = vld [vmem:[%s893_s0 + $0x70] sm:$0xff]  ;;  %v29_v41 = vld [vmem:[%s893_s0 + $0x78] sm:$0xff] }
   0x7   :  { %v154_v21 = vadd.f32 %v379_v2, %v86_v11  ;;  %v214_v25 = vmax.f32 %v150_v15, 0.0  ;;  %v215_v26 = vmax.f32 %v151_v16, 0.0  ;;  %v216_v32 = vmax.f32 %v152_v19, 0.0  ;;  %v30_v54 = vld [vmem:[%s893_s0 + $0x80] sm:$0xff]  ;;  %v31_v55 = vld [vmem:[%s893_s0 + $0x88] sm:$0xff]  ;;  %v32_v58 = vld [vmem:[%s893_s0 + $0x90] sm:$0xff] }
   0x8   :  { %v217_v33 = vmax.f32 %v153_v20, 0.0  ;;  %v219_v38 = vmax.f32 %v155_v27, 0.0  ;;  %v90_v39 = vmul.f32 %v374_v1, %v22_v23  ;;  %v91_v40 = vmul.f32 %v374_v1, %v23_v24  ;;  %v33_v59 = vld [vmem:[%s893_s0 + $0x98] sm:$0xff]  ;;  %v34_v62 = vld [vmem:[%s893_s0 + $0xa0] sm:$0xff]  ;;  %v35_v5 = vld [vmem:[%s893_s0 + $0xa8] sm:$0xff] }
   0x9   :  { %278 = vst [vmem:[%s896_s3] sm:$0xff] %v214_v25  ;;  %v218_v37 = vmax.f32 %v154_v21, 0.0  ;;  %v220_v42 = vmax.f32 %v156_v28, 0.0  ;;  %v92_v43 = vmul.f32 %v374_v1, %v24_v29  ;;  %v93_v44 = vmul.f32 %v374_v1, %v25_v30  ;;  %v36_v10 = vld [vmem:[%s893_s0 + $0xb0] sm:$0xff]  ;;  %v37_v14 = vld [vmem:[%s893_s0 + $0xb8] sm:$0xff]  ;;  %v38_v18 = vld [vmem:[%s893_s0 + $0xc0] sm:$0xff] }
   0xa   :  { %279 = vst [vmem:[%s896_s3 + $0x8] sm:$0xff] %v215_v26  ;;  %v94_v45 = vmul.f32 %v374_v1, %v26_v31  ;;  %v158_v46 = vadd.f32 %v379_v2, %v90_v39  ;;  %v159_v47 = vadd.f32 %v379_v2, %v91_v40  ;;  %v95_v48 = vmul.f32 %v374_v1, %v27_v35  ;;  %v39_v22 = vld [vmem:[%s893_s0 + $0xc8] sm:$0xff]  ;;  %v40_v26 = vld [vmem:[%s893_s0 + $0xd0] sm:$0xff]  ;;  %v41_v30 = vld [vmem:[%s893_s0 + $0xd8] sm:$0xff] }
   0xb   :  { %280 = vst [vmem:[%s896_s3 + $0x10] sm:$0xff] %v216_v32  ;;  %v96_v49 = vmul.f32 %v374_v1, %v28_v36  ;;  %v221_v50 = vmax.f32 %v157_v34, 0.0  ;;  %v160_v51 = vadd.f32 %v379_v2, %v92_v43  ;;  %v161_v52 = vadd.f32 %v379_v2, %v93_v44  ;;  %v42_v34 = vld [vmem:[%s893_s0 + $0xe0] sm:$0xff] }
   0xc   :  { %281 = vst [vmem:[%s896_s3 + $0x18] sm:$0xff] %v217_v33  ;;  %v97_v53 = vmul.f32 %v374_v1, %v29_v41  ;;  %v222_v56 = vmax.f32 %v158_v46, 0.0  ;;  %v162_v57 = vadd.f32 %v379_v2, %v94_v45  ;;  %v223_v60 = vmax.f32 %v159_v47, 0.0  ;;  %v45_v46 = vld [vmem:[%s893_s0 + $0xf8] sm:$0xff] }
   0xd   :  { %282 = vst [vmem:[%s896_s3 + $0x20] sm:$0xff] %v218_v37  ;;  %v163_v61 = vadd.f32 %v379_v2, %v95_v48  ;;  %v224_v63 = vmax.f32 %v160_v51, 0.0  ;;  %v164_v0 = vadd.f32 %v379_v2, %v96_v49  ;;  %v98_v3 = vmul.f32 %v374_v1, %v30_v54  ;;  %v47_v54 = vld [vmem:[%s893_s0 + $0x108] sm:$0xff] }
   0xe   :  { %283 = vst [vmem:[%s896_s3 + $0x28] sm:$0xff] %v219_v38  ;;  %v99_v4 = vmul.f32 %v374_v1, %v31_v55  ;;  %v225_v6 = vmax.f32 %v161_v52, 0.0  ;;  %v165_v7 = vadd.f32 %v379_v2, %v97_v53  ;;  %v100_v8 = vmul.f32 %v374_v1, %v32_v58  ;;  %v43_v38 = vld [vmem:[%s893_s0 + $0xe8] sm:$0xff]  ;;  %v48_v58 = vld [vmem:[%s893_s0 + $0x110] sm:$0xff] }
   0xf   :  { %284 = vst [vmem:[%s896_s3 + $0x30] sm:$0xff] %v220_v42  ;;  %v101_v9 = vmul.f32 %v374_v1, %v33_v59  ;;  %v226_v11 = vmax.f32 %v162_v57, 0.0  ;;  %v166_v12 = vadd.f32 %v379_v2, %v98_v3  ;;  %v102_v13 = vmul.f32 %v374_v1, %v34_v62  ;;  %v44_v42 = vld [vmem:[%s893_s0 + $0xf0] sm:$0xff]  ;;  %v49_v62 = vld [vmem:[%s893_s0 + $0x118] sm:$0xff] }
  0x10   :  { %285 = vst [vmem:[%s896_s3 + $0x38] sm:$0xff] %v221_v50  ;;  %v227_v15 = vmax.f32 %v163_v61, 0.0  ;;  %v167_v16 = vadd.f32 %v379_v2, %v99_v4  ;;  %v103_v17 = vmul.f32 %v374_v1, %v35_v5  ;;  %v228_v19 = vmax.f32 %v164_v0, 0.0  ;;  %v46_v50 = vld [vmem:[%s893_s0 + $0x100] sm:$0xff] }
  0x11   :  { %286 = vst [vmem:[%s896_s3 + $0x40] sm:$0xff] %v222_v56  ;;  %v168_v20 = vadd.f32 %v379_v2, %v100_v8  ;;  %v104_v21 = vmul.f32 %v374_v1, %v36_v10  ;;  %v229_v23 = vmax.f32 %v165_v7, 0.0  ;;  %v169_v24 = vadd.f32 %v379_v2, %v101_v9  ;;  %v50_v4 = vld [vmem:[%s893_s0 + $0x120] sm:$0xff]  ;;  %v51_v8 = vld [vmem:[%s893_s0 + $0x128] sm:$0xff] }
  0x12   :  { %287 = vst [vmem:[%s896_s3 + $0x48] sm:$0xff] %v223_v60  ;;  %v105_v25 = vmul.f32 %v374_v1, %v37_v14  ;;  %v230_v27 = vmax.f32 %v166_v12, 0.0  ;;  %v170_v28 = vadd.f32 %v379_v2, %v102_v13  ;;  %v106_v29 = vmul.f32 %v374_v1, %v38_v18  ;;  %v52_v12 = vld [vmem:[%s893_s0 + $0x130] sm:$0xff] }
  0x13   :  { %288 = vst [vmem:[%s896_s3 + $0x50] sm:$0xff] %v224_v63  ;;  %v231_v31 = vmax.f32 %v167_v16, 0.0  ;;  %v171_v32 = vadd.f32 %v379_v2, %v103_v17  ;;  %v107_v33 = vmul.f32 %v374_v1, %v39_v22  ;;  %v232_v35 = vmax.f32 %v168_v20, 0.0  ;;  %v53_v16 = vld [vmem:[%s893_s0 + $0x138] sm:$0xff]  ;;  %v54_v20 = vld [vmem:[%s893_s0 + $0x140] sm:$0xff] }
  0x14   :  { %289 = vst [vmem:[%s896_s3 + $0x58] sm:$0xff] %v225_v6  ;;  %v172_v36 = vadd.f32 %v379_v2, %v104_v21  ;;  %v108_v37 = vmul.f32 %v374_v1, %v40_v26  ;;  %v233_v39 = vmax.f32 %v169_v24, 0.0  ;;  %v173_v40 = vadd.f32 %v379_v2, %v105_v25  ;;  %v55_v24 = vld [vmem:[%s893_s0 + $0x148] sm:$0xff] }
  0x15   :  { %290 = vst [vmem:[%s896_s3 + $0x60] sm:$0xff] %v226_v11  ;;  %v109_v41 = vmul.f32 %v374_v1, %v41_v30  ;;  %v234_v43 = vmax.f32 %v170_v28, 0.0  ;;  %v174_v44 = vadd.f32 %v379_v2, %v106_v29  ;;  %v110_v45 = vmul.f32 %v374_v1, %v42_v34  ;;  %v56_v28 = vld [vmem:[%s893_s0 + $0x150] sm:$0xff] }
  0x16   :  { %291 = vst [vmem:[%s896_s3 + $0x68] sm:$0xff] %v227_v15  ;;  %v235_v47 = vmax.f32 %v171_v32, 0.0  ;;  %v175_v48 = vadd.f32 %v379_v2, %v107_v33  ;;  %v111_v49 = vmul.f32 %v374_v1, %v43_v38  ;;  %v236_v51 = vmax.f32 %v172_v36, 0.0  ;;  %v57_v32 = vld [vmem:[%s893_s0 + $0x158] sm:$0xff]  ;;  %v58_v36 = vld [vmem:[%s893_s0 + $0x160] sm:$0xff] }
  0x17   :  { %292 = vst [vmem:[%s896_s3 + $0x70] sm:$0xff] %v228_v19  ;;  %v176_v52 = vadd.f32 %v379_v2, %v108_v37  ;;  %v112_v53 = vmul.f32 %v374_v1, %v44_v42  ;;  %v237_v55 = vmax.f32 %v173_v40, 0.0  ;;  %v177_v56 = vadd.f32 %v379_v2, %v109_v41  ;;  %v59_v40 = vld [vmem:[%s893_s0 + $0x168] sm:$0xff] }
  0x18   :  { %293 = vst [vmem:[%s896_s3 + $0x78] sm:$0xff] %v229_v23  ;;  %v113_v57 = vmul.f32 %v374_v1, %v45_v46  ;;  %v238_v59 = vmax.f32 %v174_v44, 0.0  ;;  %v178_v60 = vadd.f32 %v379_v2, %v110_v45  ;;  %v114_v61 = vmul.f32 %v374_v1, %v46_v50  ;;  %v60_v44 = vld [vmem:[%s893_s0 + $0x170] sm:$0xff] }
  0x19   :  { %294 = vst [vmem:[%s896_s3 + $0x80] sm:$0xff] %v230_v27  ;;  %v239_v63 = vmax.f32 %v175_v48, 0.0  ;;  %v179_v0 = vadd.f32 %v379_v2, %v111_v49  ;;  %v115_v3 = vmul.f32 %v374_v1, %v47_v54  ;;  %v240_v5 = vmax.f32 %v176_v52, 0.0  ;;  %v61_v48 = vld [vmem:[%s893_s0 + $0x178] sm:$0xff]  ;;  %v62_v52 = vld [vmem:[%s893_s0 + $0x180] sm:$0xff] }
  0x1a   :  { %295 = vst [vmem:[%s896_s3 + $0x88] sm:$0xff] %v231_v31  ;;  %v180_v6 = vadd.f32 %v379_v2, %v112_v53  ;;  %v116_v7 = vmul.f32 %v374_v1, %v48_v58  ;;  %v241_v9 = vmax.f32 %v177_v56, 0.0  ;;  %v181_v10 = vadd.f32 %v379_v2, %v113_v57  ;;  %v63_v56 = vld [vmem:[%s893_s0 + $0x188] sm:$0xff] }
  0x1b   :  { %296 = vst [vmem:[%s896_s3 + $0x90] sm:$0xff] %v232_v35  ;;  %v117_v11 = vmul.f32 %v374_v1, %v49_v62  ;;  %v242_v13 = vmax.f32 %v178_v60, 0.0  ;;  %v182_v14 = vadd.f32 %v379_v2, %v114_v61  ;;  %v118_v15 = vmul.f32 %v374_v1, %v50_v4  ;;  %v64_v60 = vld [vmem:[%s893_s0 + $0x190] sm:$0xff] }
  0x1c   :  { %297 = vst [vmem:[%s896_s3 + $0x98] sm:$0xff] %v233_v39  ;;  %v243_v17 = vmax.f32 %v179_v0, 0.0  ;;  %v183_v18 = vadd.f32 %v379_v2, %v115_v3  ;;  %v119_v19 = vmul.f32 %v374_v1, %v51_v8  ;;  %v244_v21 = vmax.f32 %v180_v6, 0.0  ;;  %v65_v0 = vld [vmem:[%s893_s0 + $0x198] sm:$0xff] }
  0x1d   :  { %298 = vst [vmem:[%s896_s3 + $0xa0] sm:$0xff] %v234_v43  ;;  %v184_v22 = vadd.f32 %v379_v2, %v116_v7  ;;  %v120_v23 = vmul.f32 %v374_v1, %v52_v12  ;;  %v245_v25 = vmax.f32 %v181_v10, 0.0  ;;  %v185_v26 = vadd.f32 %v379_v2, %v117_v11  ;;  %v77_v3 = vld [vmem:[%s893_s0 + $0x1f8] sm:$0xff]  ;;  %v66_v7 = vld [vmem:[%s893_s0 + $0x1a0] sm:$0xff]  ;;  %v67_v11 = vld [vmem:[%s893_s0 + $0x1a8] sm:$0xff] }
  0x1e   :  { %299 = vst [vmem:[%s896_s3 + $0xa8] sm:$0xff] %v235_v47  ;;  %v121_v27 = vmul.f32 %v374_v1, %v53_v16  ;;  %v246_v29 = vmax.f32 %v182_v14, 0.0  ;;  %v186_v30 = vadd.f32 %v379_v2, %v118_v15  ;;  %v122_v31 = vmul.f32 %v374_v1, %v54_v20  ;;  %v68_v15 = vld [vmem:[%s893_s0 + $0x1b0] sm:$0xff]  ;;  %v69_v20 = vld [vmem:[%s893_s0 + $0x1b8] sm:$0xff] }
  0x1f   :  { %300 = vst [vmem:[%s896_s3 + $0xb0] sm:$0xff] %v236_v51  ;;  %v247_v33 = vmax.f32 %v183_v18, 0.0  ;;  %v187_v34 = vadd.f32 %v379_v2, %v119_v19  ;;  %v123_v35 = vmul.f32 %v374_v1, %v55_v24  ;;  %v248_v37 = vmax.f32 %v184_v22, 0.0  ;;  %v70_v24 = vld [vmem:[%s893_s0 + $0x1c0] sm:$0xff] }
  0x20   :  { %301 = vst [vmem:[%s896_s3 + $0xb8] sm:$0xff] %v237_v55  ;;  %v188_v38 = vadd.f32 %v379_v2, %v120_v23  ;;  %v124_v39 = vmul.f32 %v374_v1, %v56_v28  ;;  %v249_v41 = vmax.f32 %v185_v26, 0.0  ;;  %v189_v42 = vadd.f32 %v379_v2, %v121_v27 }
  0x21   :  { %302 = vst [vmem:[%s896_s3 + $0xc0] sm:$0xff] %v238_v59  ;;  %v125_v43 = vmul.f32 %v374_v1, %v57_v32  ;;  %v250_v45 = vmax.f32 %v186_v30, 0.0  ;;  %v190_v46 = vadd.f32 %v379_v2, %v122_v31  ;;  %v126_v47 = vmul.f32 %v374_v1, %v58_v36 }
  0x22   :  { %303 = vst [vmem:[%s896_s3 + $0xc8] sm:$0xff] %v239_v63  ;;  %v251_v49 = vmax.f32 %v187_v34, 0.0  ;;  %v191_v50 = vadd.f32 %v379_v2, %v123_v35  ;;  %v127_v51 = vmul.f32 %v374_v1, %v59_v40  ;;  %v252_v53 = vmax.f32 %v188_v38, 0.0 }
  0x23   :  { %304 = vst [vmem:[%s896_s3 + $0xd0] sm:$0xff] %v240_v5  ;;  %v192_v54 = vadd.f32 %v379_v2, %v124_v39  ;;  %v128_v55 = vmul.f32 %v374_v1, %v60_v44  ;;  %v253_v57 = vmax.f32 %v189_v42, 0.0  ;;  %v193_v58 = vadd.f32 %v379_v2, %v125_v43 }
  0x24   :  { %305 = vst [vmem:[%s896_s3 + $0xd8] sm:$0xff] %v241_v9  ;;  %v129_v59 = vmul.f32 %v374_v1, %v61_v48  ;;  %v254_v61 = vmax.f32 %v190_v46, 0.0  ;;  %v194_v62 = vadd.f32 %v379_v2, %v126_v47  ;;  %v130_v63 = vmul.f32 %v374_v1, %v62_v52 }
  0x25   :  { %306 = vst [vmem:[%s896_s3 + $0xe0] sm:$0xff] %v242_v13  ;;  %v255_v4 = vmax.f32 %v191_v50, 0.0  ;;  %v195_v5 = vadd.f32 %v379_v2, %v127_v51  ;;  %v131_v6 = vmul.f32 %v374_v1, %v63_v56  ;;  %v256_v8 = vmax.f32 %v192_v54, 0.0 }
  0x26   :  { %307 = vst [vmem:[%s896_s3 + $0xe8] sm:$0xff] %v243_v17  ;;  %v196_v9 = vadd.f32 %v379_v2, %v128_v55  ;;  %v132_v10 = vmul.f32 %v374_v1, %v64_v60  ;;  %v257_v12 = vmax.f32 %v193_v58, 0.0  ;;  %v197_v13 = vadd.f32 %v379_v2, %v129_v59 }
  0x27   :  { %308 = vst [vmem:[%s896_s3 + $0xf0] sm:$0xff] %v244_v21  ;;  %v133_v14 = vmul.f32 %v374_v1, %v65_v0  ;;  %v145_v16 = vmul.f32 %v374_v1, %v77_v3  ;;  %v258_v17 = vmax.f32 %v194_v62, 0.0  ;;  %v198_v18 = vadd.f32 %v379_v2, %v130_v63 }
  0x28   :  { %309 = vst [vmem:[%s896_s3 + $0xf8] sm:$0xff] %v245_v25  ;;  %v134_v19 = vmul.f32 %v374_v1, %v66_v7  ;;  %v259_v21 = vmax.f32 %v195_v5, 0.0  ;;  %v199_v22 = vadd.f32 %v379_v2, %v131_v6  ;;  %v135_v23 = vmul.f32 %v374_v1, %v67_v11 }
  0x29   :  { %310 = vst [vmem:[%s896_s3 + $0x100] sm:$0xff] %v246_v29  ;;  %v784_v25 = vadd.f32 %v379_v2, %v145_v16  ;;  %v260_v26 = vmax.f32 %v196_v9, 0.0  ;;  %v200_v27 = vadd.f32 %v379_v2, %v132_v10  ;;  %v136_v28 = vmul.f32 %v374_v1, %v68_v15  ;;  %v71_v29 = vld [vmem:[%s893_s0 + $0x1c8] sm:$0xff] }
  0x2a   :  { %311 = vst [vmem:[%s896_s3 + $0x108] sm:$0xff] %v247_v33  ;;  %v261_v30 = vmax.f32 %v197_v13, 0.0  ;;  %v201_v31 = vadd.f32 %v379_v2, %v133_v14  ;;  %v137_v32 = vmul.f32 %v374_v1, %v69_v20  ;;  %v72_v33 = vld [vmem:[%s893_s0 + $0x1d0] sm:$0xff]  ;;  %v262_v34 = vmax.f32 %v198_v18, 0.0 }
  0x2b   :  { %312 = vst [vmem:[%s896_s3 + $0x110] sm:$0xff] %v248_v37  ;;  %v202_v35 = vadd.f32 %v379_v2, %v134_v19  ;;  %v138_v36 = vmul.f32 %v374_v1, %v70_v24  ;;  %v73_v37 = vld [vmem:[%s893_s0 + $0x1d8] sm:$0xff]  ;;  %v263_v38 = vmax.f32 %v199_v22, 0.0  ;;  %v203_v39 = vadd.f32 %v379_v2, %v135_v23 }
  0x2c   :  { %313 = vst [vmem:[%s896_s3 + $0x118] sm:$0xff] %v249_v41  ;;  %v139_v40 = vmul.f32 %v374_v1, %v71_v29  ;;  %v74_v41 = vld [vmem:[%s893_s0 + $0x1e0] sm:$0xff]  ;;  %v264_v42 = vmax.f32 %v200_v27, 0.0  ;;  %v204_v43 = vadd.f32 %v379_v2, %v136_v28  ;;  %v140_v44 = vmul.f32 %v374_v1, %v72_v33 }
  0x2d   :  { %314 = vst [vmem:[%s896_s3 + $0x120] sm:$0xff] %v250_v45  ;;  %v75_v45 = vld [vmem:[%s893_s0 + $0x1e8] sm:$0xff]  ;;  %v265_v46 = vmax.f32 %v201_v31, 0.0  ;;  %v205_v47 = vadd.f32 %v379_v2, %v137_v32  ;;  %v141_v48 = vmul.f32 %v374_v1, %v73_v37  ;;  %v266_v50 = vmax.f32 %v202_v35, 0.0 }
  0x2e   :  { %315 = vst [vmem:[%s896_s3 + $0x128] sm:$0xff] %v251_v49  ;;  %v76_v49 = vld [vmem:[%s893_s0 + $0x1f0] sm:$0xff]  ;;  %v206_v51 = vadd.f32 %v379_v2, %v138_v36  ;;  %v142_v52 = vmul.f32 %v374_v1, %v74_v41  ;;  %v207_v54 = vadd.f32 %v379_v2, %v139_v40  ;;  %v143_v55 = vmul.f32 %v374_v1, %v75_v45 }
  0x2f   :  { %316 = vst [vmem:[%s896_s3 + $0x130] sm:$0xff] %v252_v53  ;;  %v267_v53 = vmax.f32 %v203_v39, 0.0  ;;  %v268_v56 = vmax.f32 %v204_v43, 0.0  ;;  %v144_v58 = vmul.f32 %v374_v1, %v76_v49  ;;  %v269_v59 = vmax.f32 %v205_v47, 0.0 }
  0x30   :  { %317 = vst [vmem:[%s896_s3 + $0x138] sm:$0xff] %v253_v57  ;;  %v208_v57 = vadd.f32 %v379_v2, %v140_v44  ;;  %v209_v60 = vadd.f32 %v379_v2, %v141_v48  ;;  %v210_v62 = vadd.f32 %v379_v2, %v142_v52  ;;  %v271_v63 = vmax.f32 %v207_v54, 0.0 }
  0x31   :  { %318 = vst [vmem:[%s896_s3 + $0x140] sm:$0xff] %v254_v61  ;;  %v270_v61 = vmax.f32 %v206_v51, 0.0  ;;  %v211_v1 = vadd.f32 %v379_v2, %v143_v55  ;;  %v212_v3 = vadd.f32 %v379_v2, %v144_v58  ;;  %v277_v7 = vmax.f32 %v784_v25, 0.0 }
  0x32   :  { %319 = vst [vmem:[%s896_s3 + $0x148] sm:$0xff] %v255_v4  ;;  %v272_v0 = vmax.f32 %v208_v57, 0.0  ;;  %v273_v4 = vmax.f32 %v209_v60, 0.0  ;;  %v274_v5 = vmax.f32 %v210_v62, 0.0 }
  0x33   :  { %320 = vst [vmem:[%s896_s3 + $0x150] sm:$0xff] %v256_v8  ;;  %v275_v6 = vmax.f32 %v211_v1, 0.0  ;;  %v276_v2 = vmax.f32 %v212_v3, 0.0 }
  0x34   :  { %321 = vst [vmem:[%s896_s3 + $0x158] sm:$0xff] %v257_v12 }
  0x35   :  { %322 = vst [vmem:[%s896_s3 + $0x160] sm:$0xff] %v258_v17 }
  0x36   :  { %323 = vst [vmem:[%s896_s3 + $0x168] sm:$0xff] %v259_v21 }
  0x37   :  { %324 = vst [vmem:[%s896_s3 + $0x170] sm:$0xff] %v260_v26 }
  0x38   :  { %325 = vst [vmem:[%s896_s3 + $0x178] sm:$0xff] %v261_v30 }
  0x39   :  { %326 = vst [vmem:[%s896_s3 + $0x180] sm:$0xff] %v262_v34 }
  0x3a   :  { %327 = vst [vmem:[%s896_s3 + $0x188] sm:$0xff] %v263_v38 }
  0x3b   :  { %328 = vst [vmem:[%s896_s3 + $0x190] sm:$0xff] %v264_v42 }
  0x3c   :  { %329 = vst [vmem:[%s896_s3 + $0x198] sm:$0xff] %v265_v46 }
  0x3d   :  { %330 = vst [vmem:[%s896_s3 + $0x1a0] sm:$0xff] %v266_v50 }
  0x3e   :  { %331 = vst [vmem:[%s896_s3 + $0x1a8] sm:$0xff] %v267_v53 }
  0x3f   :  { %332 = vst [vmem:[%s896_s3 + $0x1b0] sm:$0xff] %v268_v56 }
  0x40   :  { %333 = vst [vmem:[%s896_s3 + $0x1b8] sm:$0xff] %v269_v59 }
  0x41   :  { %334 = vst [vmem:[%s896_s3 + $0x1c0] sm:$0xff] %v270_v61 }
  0x42   :  { %335 = vst [vmem:[%s896_s3 + $0x1c8] sm:$0xff] %v271_v63 }
  0x43   :  { %336 = vst [vmem:[%s896_s3 + $0x1d0] sm:$0xff] %v272_v0 }
  0x44   :  { %337 = vst [vmem:[%s896_s3 + $0x1d8] sm:$0xff] %v273_v4 }
  0x45   :  { %338 = vst [vmem:[%s896_s3 + $0x1e0] sm:$0xff] %v274_v5 }
  0x46   :  { %339 = vst [vmem:[%s896_s3 + $0x1e8] sm:$0xff] %v275_v6 }
  0x47   :  { %340 = vst [vmem:[%s896_s3 + $0x1f0] sm:$0xff] %v276_v2 }
  0x48   :  { %341 = vst [vmem:[%s896_s3 + $0x1f8] sm:$0xff] %v277_v7 }

// kernel: res_conv_block_forward.4
= control target key start
LH: loop header
LB: loop body
LE: loop exit
PB: predicated region body
PF: predicated region fallthrough
CT: control target
= control target key end

     0   :  { %vm1248_vm1 = vcmask 1040384   ;;  %vm1250_vm2 = vcmask 1041408   ;;  %s2510_s4 = inlined_call_operand.vmem [shape: f32[128,128], index: 4, kind: input, shape index: {}]   ;;  %s2511_s2 = inlined_call_operand.vmem [shape: f32[1,128], index: 2, kind: input, shape index: {}]   ;;  %s2512_s3 = inlined_call_operand.vmem [shape: f32[1,128], index: 3, kind: input, shape index: {}]   ;;  %s2513_s0 = inlined_call_operand.vmem [shape: f32[512,128], index: 0, kind: input, shape index: {}]   ;;  %s2514_s1 = inlined_call_operand.vmem [shape: f32[512,128], index: 1, kind: input, shape index: {}]   ;;  %s2515_s5 = inlined_call_operand.vmem [shape: f32[512,128], index: 5, kind: output, shape index: {0}]   ;;  %s2516_s6 = inlined_call_operand.vmem [shape: f32[1,8,128], index: 6, kind: output, shape index: {1}]  }
   0x1   :  { %v429_v0 = vld [vmem:[%s2510_s4 + $0x78] sm:$0xff]  ;;  %v428_v1 = vld [vmem:[%s2510_s4 + $0x70] sm:$0xff]  ;;  %v427_v2 = vld [vmem:[%s2510_s4 + $0x68] sm:$0xff] }
   0x2   :  { %430 = vmatpush.msra.mxu0 %v429_v0  ;;  %1261 = vmatpush.msra.mxu1 %v429_v0  ;;  %v426_v3 = vld [vmem:[%s2510_s4 + $0x60] sm:$0xff]  ;;  %v425_v4 = vld [vmem:[%s2510_s4 + $0x58] sm:$0xff]  ;;  %v424_v5 = vld [vmem:[%s2510_s4 + $0x50] sm:$0xff] }
   0x3   :  { %1262 = vmatpush.msra.mxu2 %v429_v0  ;;  %1263 = vmatpush.msra.mxu3 %v429_v0  ;;  %v423_v6 = vld [vmem:[%s2510_s4 + $0x48] sm:$0xff]  ;;  %v422_v7 = vld [vmem:[%s2510_s4 + $0x40] sm:$0xff]  ;;  %v421_v10 = vld [vmem:[%s2510_s4 + $0x38] sm:$0xff] }
   0x4   :  { %431 = vmatpush.msra.mxu0 %v428_v1  ;;  %1264 = vmatpush.msra.mxu1 %v428_v1  ;;  %v1379_v8 = vld [vmem:[%s2511_s2] ss:$0 sm:$0xff]  ;;  %v420_v11 = vld [vmem:[%s2510_s4 + $0x30] sm:$0xff]  ;;  %v419_v14 = vld [vmem:[%s2510_s4 + $0x28] sm:$0xff] }
   0x5   :  { %1265 = vmatpush.msra.mxu2 %v428_v1  ;;  %1266 = vmatpush.msra.mxu3 %v428_v1  ;;  %v22_v9 = vld [vmem:[%s2513_s0] sm:$0xff]  ;;  %v23_v17 = vld [vmem:[%s2513_s0 + $0x8] sm:$0xff]  ;;  %v417_v18 = vld [vmem:[%s2510_s4 + $0x18] sm:$0xff] }
   0x6   :  { %432 = vmatpush.msra.mxu0 %v427_v2  ;;  %1267 = vmatpush.msra.mxu1 %v427_v2  ;;  %v90_v12 = vmul.f32 %v1379_v8, %v22_v9  ;;  %v1394_v13 = vld [vmem:[%s2512_s3] ss:$0 sm:$0xff]  ;;  %v416_v20 = vld [vmem:[%s2510_s4 + $0x10] sm:$0xff]  ;;  %v91_v22 = vmul.f32 %v1379_v8, %v23_v17  ;;  %v415_v25 = vld [vmem:[%s2510_s4 + $0x8] sm:$0xff] }
   0x7   :  { %1268 = vmatpush.msra.mxu2 %v427_v2  ;;  %1269 = vmatpush.msra.mxu3 %v427_v2  ;;  %v418_v15 = vld [vmem:[%s2510_s4 + $0x20] sm:$0xff]  ;;  %v24_v31 = vld [vmem:[%s2513_s0 + $0x10] sm:$0xff]  ;;  %v39_v34 = vld [vmem:[%s2513_s0 + $0x88] sm:$0xff] }
   0x8   :  { %433 = vmatpush.msra.mxu0 %v426_v3  ;;  %1270 = vmatpush.msra.mxu1 %v426_v3  ;;  %v158_v16 = vadd.f32 %v1394_v13, %v90_v12  ;;  %v38_v19 = vld [vmem:[%s2513_s0 + $0x80] sm:$0xff]  ;;  %v159_v29 = vadd.f32 %v1394_v13, %v91_v22  ;;  %v92_v36 = vmul.f32 %v1379_v8, %v24_v31  ;;  %v287_v38 = vld [vmem:[%s2514_s1 + $0x8] sm:$0xff]  ;;  %v25_v43 = vld [vmem:[%s2513_s0 + $0x18] sm:$0xff] }
   0x9   :  { %1271 = vmatpush.msra.mxu2 %v426_v3  ;;  %1272 = vmatpush.msra.mxu3 %v426_v3  ;;  %v106_v23 = vmul.f32 %v1379_v8, %v38_v19  ;;  %v286_v24 = vld [vmem:[%s2514_s1] sm:$0xff]  ;;  %v107_v37 = vmul.f32 %v1379_v8, %v39_v34  ;;  %v303_v44 = vld [vmem:[%s2514_s1 + $0x88] sm:$0xff]  ;;  %v40_v46 = vld [vmem:[%s2513_s0 + $0x90] sm:$0xff]  ;;  %v93_v48 = vmul.f32 %v1379_v8, %v25_v43 }
   0xa   :  { %434 = vmatpush.msra.mxu0 %v425_v4  ;;  %1273 = vmatpush.msra.mxu1 %v425_v4  ;;  %v222_v21 = vmax.f32 %v158_v16, 0.0  ;;  %v414_v27 = vld [vmem:[%s2510_s4] sm:$0xff]  ;;  %v223_v35 = vmax.f32 %v159_v29, 0.0  ;;  %v160_v41 = vadd.f32 %v1394_v13, %v92_v36  ;;  %v108_v49 = vmul.f32 %v1379_v8, %v40_v46  ;;  %v288_v50 = vld [vmem:[%s2514_s1 + $0x10] sm:$0xff]  ;;  %v41_v58 = vld [vmem:[%s2513_s0 + $0x98] sm:$0xff] }
   0xb   :  { %1274 = vmatpush.msra.mxu2 %v425_v4  ;;  %1275 = vmatpush.msra.mxu3 %v425_v4  ;;  %v174_v26 = vadd.f32 %v1394_v13, %v106_v23  ;;  %v302_v32 = vld [vmem:[%s2514_s1 + $0x80] sm:$0xff]  ;;  %v175_v39 = vadd.f32 %v1394_v13, %v107_v37  ;;  %v161_v53 = vadd.f32 %v1394_v13, %v93_v48  ;;  %v304_v56 = vld [vmem:[%s2514_s1 + $0x90] sm:$0xff]  ;;  %v289_v62 = vld [vmem:[%s2514_s1 + $0x18] sm:$0xff] }
   0xc   :  { %435 = vmatpush.msra.mxu0 %v424_v5  ;;  %1276 = vmatpush.msra.mxu1 %v424_v5  ;;  %v350_v28 = vadd.f32 %v286_v24, %v222_v21  ;;  %v351_v40 = vadd.f32 %v287_v38, %v223_v35  ;;  %v224_v47 = vmax.f32 %v160_v41, 0.0  ;;  %v176_v51 = vadd.f32 %v1394_v13, %v108_v49  ;;  %v26_v55 = vld [vmem:[%s2513_s0 + $0x20] sm:$0xff]  ;;  %v55_v19 = vld [vmem:[%s2513_s0 + $0x108] sm:$0xff]  ;;  %v56_v37 = vld [vmem:[%s2513_s0 + $0x110] sm:$0xff] }
   0xd   :  { %1277 = vmatpush.msra.mxu2 %v424_v5  ;;  %1278 = vmatpush.msra.mxu3 %v424_v5  ;;  %v238_v30 = vmax.f32 %v174_v26, 0.0  ;;  %v239_v42 = vmax.f32 %v175_v39, 0.0  ;;  %v225_v59 = vmax.f32 %v161_v53, 0.0  ;;  %v94_v60 = vmul.f32 %v1379_v8, %v26_v55  ;;  %v54_v63 = vld [vmem:[%s2513_s0 + $0x100] sm:$0xff]  ;;  %v28_v26 = vld [vmem:[%s2513_s0 + $0x30] sm:$0xff]  ;;  %v43_v31 = vld [vmem:[%s2513_s0 + $0xa8] sm:$0xff] }
   0xe   :  { %436 = vmatpush.msra.mxu0 %v423_v6  ;;  %1279 = vmatpush.msra.mxu1 %v423_v6  ;;  %v352_v52 = vadd.f32 %v288_v50, %v224_v47  ;;  %v240_v54 = vmax.f32 %v176_v51, 0.0  ;;  %v109_v61 = vmul.f32 %v1379_v8, %v41_v58  ;;  %v122_v1 = vmul.f32 %v1379_v8, %v54_v63  ;;  %v42_v12 = vld [vmem:[%s2513_s0 + $0xa0] sm:$0xff]  ;;  %v291_v36 = vld [vmem:[%s2514_s1 + $0x28] sm:$0xff]  ;;  %v320_v49 = vld [vmem:[%s2514_s1 + $0x110] sm:$0xff] }
   0xf   :  { %1280 = vmatpush.msra.mxu2 %v423_v6  ;;  %1281 = vmatpush.msra.mxu3 %v423_v6  ;;  %v366_v33 = vadd.f32 %v302_v32, %v238_v30  ;;  %v367_v45 = vadd.f32 %v303_v44, %v239_v42  ;;  %v353_v2 = vadd.f32 %v289_v62, %v225_v59  ;;  %v27_v6 = vld [vmem:[%s2513_s0 + $0x28] sm:$0xff]  ;;  %v29_v42 = vld [vmem:[%s2513_s0 + $0x38] sm:$0xff]  ;;  %v44_v50 = vld [vmem:[%s2513_s0 + $0xb0] sm:$0xff] }
  0x10   :  { %437 = vmatpush.msra.mxu0 %v422_v7  ;;  %1282 = vmatpush.msra.mxu1 %v422_v7  ;;  %v368_v57 = vadd.f32 %v304_v56, %v240_v54  ;;  %v177_v0 = vadd.f32 %v1394_v13, %v109_v61  ;;  %v162_v3 = vadd.f32 %v1394_v13, %v94_v60  ;;  %v319_v30 = vld [vmem:[%s2514_s1 + $0x108] sm:$0xff]  ;;  %v292_v54 = vld [vmem:[%s2514_s1 + $0x30] sm:$0xff]  ;;  %v57_v55 = vld [vmem:[%s2513_s0 + $0x118] sm:$0xff] }
  0x11   :  { %1283 = vmatpush.msra.mxu2 %v422_v7  ;;  %1284 = vmatpush.msra.mxu3 %v422_v7  ;;  %v190_v5 = vadd.f32 %v1394_v13, %v122_v1  ;;  %v305_v7 = vld [vmem:[%s2514_s1 + $0x98] sm:$0xff]  ;;  %v110_v17 = vmul.f32 %v1379_v8, %v42_v12  ;;  %v123_v21 = vmul.f32 %v1379_v8, %v55_v19  ;;  %v30_v62 = vld [vmem:[%s2513_s0 + $0x40] sm:$0xff]  ;;  %v308_v63 = vld [vmem:[%s2514_s1 + $0xb0] sm:$0xff] }
  0x12   :  { %438 = vmatpush.msra.mxu0 %v421_v10  ;;  %1285 = vmatpush.msra.mxu1 %v421_v10  ;;  %v241_v4 = vmax.f32 %v177_v0, 0.0  ;;  %v111_v35 = vmul.f32 %v1379_v8, %v43_v31  ;;  %v124_v39 = vmul.f32 %v1379_v8, %v56_v37  ;;  %v97_v48 = vmul.f32 %v1379_v8, %v29_v42 }
  0x13   :  { %1286 = vmatpush.msra.mxu2 %v421_v10  ;;  %1287 = vmatpush.msra.mxu3 %v421_v10  ;;  %v254_v10 = vmax.f32 %v190_v5, 0.0  ;;  %v112_v53 = vmul.f32 %v1379_v8, %v44_v50  ;;  %v293_v5 = vld [vmem:[%s2514_s1 + $0x38] sm:$0xff]  ;;  %v323_v50 = vld [vmem:[%s2514_s1 + $0x128] sm:$0xff] }
  0x14   :  { %439 = vmatpush.msra.mxu0 %v420_v11  ;;  %1288 = vmatpush.msra.mxu1 %v420_v11  ;;  %v369_v9 = vadd.f32 %v305_v7, %v241_v4  ;;  %v179_v38 = vadd.f32 %v1394_v13, %v111_v35  ;;  %v192_v44 = vadd.f32 %v1394_v13, %v124_v39  ;;  %v45_v4 = vld [vmem:[%s2513_s0 + $0xb8] sm:$0xff]  ;;  %v59_v35 = vld [vmem:[%s2513_s0 + $0x128] sm:$0xff] }
  0x15   :  { %1289 = vmatpush.msra.mxu2 %v420_v11  ;;  %1290 = vmatpush.msra.mxu3 %v420_v11  ;;  %v318_v11 = vld [vmem:[%s2514_s1 + $0x100] sm:$0xff]  ;;  %v180_v56 = vadd.f32 %v1394_v13, %v112_v53  ;;  %v165_v58 = vadd.f32 %v1394_v13, %v97_v48  ;;  %v127_v37 = vmul.f32 %v1379_v8, %v59_v35 }
  0x16   :  { %440 = vmatpush.msra.mxu0 %v419_v14  ;;  %1291 = vmatpush.msra.mxu1 %v419_v14  ;;  %v382_v16 = vadd.f32 %v318_v11, %v254_v10  ;;  %v243_v43 = vmax.f32 %v179_v38, 0.0  ;;  %v256_v47 = vmax.f32 %v192_v44, 0.0  ;;  %v58_v10 = vld [vmem:[%s2513_s0 + $0x120] sm:$0xff]  ;;  %v32_v44 = vld [vmem:[%s2513_s0 + $0x50] sm:$0xff] }
  0x17   :  { %1292 = vmatpush.msra.mxu2 %v419_v14  ;;  %1293 = vmatpush.msra.mxu3 %v419_v14  ;;  %v226_v14 = vmax.f32 %v162_v3, 0.0  ;;  %v244_v60 = vmax.f32 %v180_v56, 0.0  ;;  %v321_v3 = vld [vmem:[%s2514_s1 + $0x118] sm:$0xff]  ;;  %v70_v11 = vld [vmem:[%s2513_s0 + $0x180] sm:$0xff]  ;;  %v195_v42 = vadd.f32 %v1394_v13, %v127_v37  ;;  %v100_v53 = vmul.f32 %v1379_v8, %v32_v44  ;;  %v47_v56 = vld [vmem:[%s2513_s0 + $0xc8] sm:$0xff] }
  0x18   :  { %441 = vmatpush.msra.mxu0 %v418_v15  ;;  %1294 = vmatpush.msra.mxu1 %v418_v15  ;;  %v325_v37 = vld [vmem:[%s2514_s1 + $0x138] sm:$0xff] }
  0x19   :  { %1295 = vmatpush.msra.mxu2 %v418_v15  ;;  %1296 = vmatpush.msra.mxu3 %v418_v15  ;;  %v95_v15 = vmul.f32 %v1379_v8, %v27_v6  ;;  %v372_v0 = vadd.f32 %v308_v63, %v244_v60  ;;  %v98_v6 = vmul.f32 %v1379_v8, %v30_v62  ;;  %v72_v60 = vld [vmem:[%s2513_s0 + $0x190] sm:$0xff] }
  0x1a   :  { %442 = vmatpush.msra.mxu0 %v417_v18  ;;  %1297 = vmatpush.msra.mxu1 %v417_v18  ;;  %v140_v62 = vmul.f32 %v1379_v8, %v72_v60 }
  0x1b   :  { %1298 = vmatpush.msra.mxu2 %v417_v18  ;;  %1299 = vmatpush.msra.mxu3 %v417_v18  ;;  %v290_v18 = vld [vmem:[%s2514_s1 + $0x20] sm:$0xff]  ;;  %v163_v23 = vadd.f32 %v1394_v13, %v95_v15  ;;  %v138_v15 = vmul.f32 %v1379_v8, %v70_v11  ;;  %v324_v11 = vld [vmem:[%s2514_s1 + $0x130] sm:$0xff] }
  0x1c   :  { %443 = vmatpush.msra.mxu0 %v416_v20  ;;  %1300 = vmatpush.msra.mxu1 %v416_v20  ;;  %v354_v22 = vadd.f32 %v290_v18, %v226_v14  ;;  %v126_v14 = vmul.f32 %v1379_v8, %v58_v10 }
  0x1d   :  { %1301 = vmatpush.msra.mxu2 %v416_v20  ;;  %1302 = vmatpush.msra.mxu3 %v416_v20  ;;  %v178_v20 = vadd.f32 %v1394_v13, %v110_v17  ;;  %v227_v32 = vmax.f32 %v163_v23, 0.0  ;;  %v166_v17 = vadd.f32 %v1394_v13, %v98_v6  ;;  %v311_v6 = vld [vmem:[%s2514_s1 + $0xc8] sm:$0xff] }
  0x1e   :  { %444 = vmatpush.msra.mxu0 %v415_v25  ;;  %1303 = vmatpush.msra.mxu1 %v415_v25  ;;  %v194_v19 = vadd.f32 %v1394_v13, %v126_v14 }
  0x1f   :  { %1304 = vmatpush.msra.mxu2 %v415_v25  ;;  %1305 = vmatpush.msra.mxu3 %v415_v25  ;;  %v242_v24 = vmax.f32 %v178_v20, 0.0  ;;  %v191_v25 = vadd.f32 %v1394_v13, %v123_v21  ;;  %v206_v20 = vadd.f32 %v1394_v13, %v138_v15  ;;  %v31_v21 = vld [vmem:[%s2513_s0 + $0x48] sm:$0xff] }
  0x20   :  { %445 = vmatpush.msra.mxu0 %v414_v27  ;;  %1306 = vmatpush.msra.mxu1 %v414_v27 }
  0x21   :  { %446 = vmatmul.f32.vlgmr.msra.gmra.mxu0 %v350_v28  ;;  %494 = vmatmul.f32.vlgmr.msra.gmra.mxu1 %v366_v33  ;;  %v255_v29 = vmax.f32 %v191_v25, 0.0  ;;  %v96_v33 = vmul.f32 %v1379_v8, %v28_v26  ;;  %v270_v25 = vmax.f32 %v206_v20, 0.0  ;;  %v322_v26 = vld [vmem:[%s2514_s1 + $0x120] sm:$0xff] }
  0x22   :  { %1307 = vmatpush.msra.mxu2 %v414_v27  ;;  %1308 = vmatpush.msra.mxu3 %v414_v27  ;;  %v306_v27 = vld [vmem:[%s2514_s1 + $0xa0] sm:$0xff] }
  0x23   :  { %542 = vmatmul.f32.vlgmr.msra.gmra.mxu2 %v382_v16  ;;  %v370_v28 = vadd.f32 %v306_v27, %v242_v24  ;;  %v383_v34 = vadd.f32 %v319_v30, %v255_v29  ;;  %v164_v41 = vadd.f32 %v1394_v13, %v96_v33  ;;  %v258_v24 = vmax.f32 %v194_v19, 0.0  ;;  %v334_v27 = vld [vmem:[%s2514_s1 + $0x180] sm:$0xff]  ;;  %v296_v19 = vld [vmem:[%s2514_s1 + $0x50] sm:$0xff] }
  0x24   :  { %v99_v29 = vmul.f32 %v1379_v8, %v31_v21  ;;  %v398_v31 = vadd.f32 %v334_v27, %v270_v25  ;;  %v294_v33 = vld [vmem:[%s2514_s1 + $0x40] sm:$0xff]  ;;  %v61_v21 = vld [vmem:[%s2513_s0 + $0x138] sm:$0xff] }
  0x25   :  { %v228_v51 = vmax.f32 %v164_v41, 0.0  ;;  %v386_v30 = vadd.f32 %v322_v26, %v258_v24 }
  0x26   :  { %590 = vmatmul.f32.vlgmr.msra.gmra.mxu3 %v398_v31  ;;  %v167_v41 = vadd.f32 %v1394_v13, %v99_v29 }
  0x27   :  { %v356_v59 = vadd.f32 %v292_v54, %v228_v51  ;;  %v335_v51 = vld [vmem:[%s2514_s1 + $0x188] sm:$0xff] }
  0x29   :  { %449 = vmatmul.f32.gmra.mxu0 %v351_v40  ;;  %497 = vmatmul.f32.gmra.mxu1 %v367_v45  ;;  %v355_v40 = vadd.f32 %v291_v36, %v227_v32  ;;  %v307_v45 = vld [vmem:[%s2514_s1 + $0xa8] sm:$0xff]  ;;  %v46_v32 = vld [vmem:[%s2513_s0 + $0xc0] sm:$0xff] }
  0x2a   :  { %v371_v46 = vadd.f32 %v307_v45, %v243_v43  ;;  %v71_v36 = vld [vmem:[%s2513_s0 + $0x188] sm:$0xff] }
  0x2b   :  { %545 = vmatmul.f32.gmra.mxu2 %v383_v34  ;;  %v114_v34 = vmul.f32 %v1379_v8, %v46_v32  ;;  %v139_v38 = vmul.f32 %v1379_v8, %v71_v36  ;;  %v312_v32 = vld [vmem:[%s2514_s1 + $0xd0] sm:$0xff] }
  0x2d   :  { %v182_v39 = vadd.f32 %v1394_v13, %v114_v34  ;;  %v207_v43 = vadd.f32 %v1394_v13, %v139_v38  ;;  %v337_v38 = vld [vmem:[%s2514_s1 + $0x198] sm:$0xff] }
  0x2f   :  { %v246_v45 = vmax.f32 %v182_v39, 0.0  ;;  %v271_v48 = vmax.f32 %v207_v43, 0.0  ;;  %v297_v43 = vld [vmem:[%s2514_s1 + $0x58] sm:$0xff] }
  0x31   :  { %452 = vmatmul.f32.gmra.mxu0 %v352_v52  ;;  %500 = vmatmul.f32.gmra.mxu1 %v368_v57  ;;  %v384_v52 = vadd.f32 %v320_v49, %v256_v47  ;;  %v125_v57 = vmul.f32 %v1379_v8, %v57_v55  ;;  %v259_v47 = vmax.f32 %v195_v42, 0.0  ;;  %v399_v55 = vadd.f32 %v335_v51, %v271_v48  ;;  %v49_v42 = vld [vmem:[%s2513_s0 + $0xd8] sm:$0xff] }
  0x32   :  { %v117_v44 = vmul.f32 %v1379_v8, %v49_v42  ;;  %v315_v42 = vld [vmem:[%s2514_s1 + $0xe8] sm:$0xff] }
  0x33   :  { %548 = vmatmul.f32.gmra.mxu2 %v384_v52  ;;  %v193_v61 = vadd.f32 %v1394_v13, %v125_v57  ;;  %v231_v52 = vmax.f32 %v167_v41, 0.0  ;;  %v387_v54 = vadd.f32 %v323_v50, %v259_v47  ;;  %v295_v57 = vld [vmem:[%s2514_s1 + $0x48] sm:$0xff]  ;;  %593 = vmatmul.f32.gmra.mxu3 %v399_v55 }
  0x34   :  { %v185_v50 = vadd.f32 %v1394_v13, %v117_v44 }
  0x35   :  { %v257_v1 = vmax.f32 %v193_v61, 0.0 }
  0x36   :  { %v249_v55 = vmax.f32 %v185_v50, 0.0  ;;  %v300_v50 = vld [vmem:[%s2514_s1 + $0x70] sm:$0xff] }
  0x37   :  { %v385_v7 = vadd.f32 %v321_v3, %v257_v1  ;;  %v168_v1 = vadd.f32 %v1394_v13, %v100_v53  ;;  %v208_v3 = vadd.f32 %v1394_v13, %v140_v62  ;;  %v338_v62 = vld [vmem:[%s2514_s1 + $0x1a0] sm:$0xff] }
  0x39   :  { %455 = vmatmul.f32.gmra.mxu0 %v353_v2  ;;  %503 = vmatmul.f32.gmra.mxu1 %v369_v9  ;;  %v229_v2 = vmax.f32 %v165_v58, 0.0  ;;  %v113_v9 = vmul.f32 %v1379_v8, %v45_v4  ;;  %v115_v58 = vmul.f32 %v1379_v8, %v47_v56  ;;  %v33_v4 = vld [vmem:[%s2513_s0 + $0x58] sm:$0xff]  ;;  %v232_v14 = vmax.f32 %v168_v1, 0.0 }
  0x3a   :  { %v101_v15 = vmul.f32 %v1379_v8, %v33_v4  ;;  %v313_v56 = vld [vmem:[%s2514_s1 + $0xd8] sm:$0xff] }
  0x3b   :  { %551 = vmatmul.f32.gmra.mxu2 %v385_v7  ;;  %v181_v12 = vadd.f32 %v1394_v13, %v113_v9  ;;  %v357_v16 = vadd.f32 %v293_v5, %v229_v2  ;;  %v183_v63 = vadd.f32 %v1394_v13, %v115_v58  ;;  %v272_v9 = vmax.f32 %v208_v3, 0.0 }
  0x3c   :  { %v360_v26 = vadd.f32 %v296_v19, %v232_v14  ;;  %v169_v27 = vadd.f32 %v1394_v13, %v101_v15  ;;  %v377_v60 = vadd.f32 %v313_v56, %v249_v55  ;;  %v36_v14 = vld [vmem:[%s2513_s0 + $0x70] sm:$0xff]  ;;  %v65_v55 = vld [vmem:[%s2513_s0 + $0x158] sm:$0xff] }
  0x3d   :  { %v245_v18 = vmax.f32 %v181_v12, 0.0  ;;  %v247_v5 = vmax.f32 %v183_v63, 0.0  ;;  %v336_v12 = vld [vmem:[%s2514_s1 + $0x190] sm:$0xff]  ;;  %v50_v63 = vld [vmem:[%s2513_s0 + $0xe0] sm:$0xff]  ;;  %v77_v56 = vld [vmem:[%s2513_s0 + $0x1b8] sm:$0xff] }
  0x3e   :  { %v233_v39 = vmax.f32 %v169_v27, 0.0  ;;  %v118_v4 = vmul.f32 %v1379_v8, %v50_v63 }
  0x3f   :  { %v375_v10 = vadd.f32 %v311_v6, %v247_v5  ;;  %v63_v5 = vld [vmem:[%s2513_s0 + $0x148] sm:$0xff] }
  0x40   :  { %v361_v51 = vadd.f32 %v297_v43, %v233_v39  ;;  %v75_v6 = vld [vmem:[%s2513_s0 + $0x1a8] sm:$0xff] }
  0x41   :  { %458 = vmatmul.f32.gmra.mxu0 %v354_v22  ;;  %506 = vmatmul.f32.gmra.mxu1 %v370_v28  ;;  %v309_v22 = vld [vmem:[%s2514_s1 + $0xb8] sm:$0xff]  ;;  %v230_v28 = vmax.f32 %v166_v17, 0.0  ;;  %v400_v17 = vadd.f32 %v336_v12, %v272_v9  ;;  %v131_v9 = vmul.f32 %v1379_v8, %v63_v5 }
  0x42   :  { %v373_v23 = vadd.f32 %v309_v22, %v245_v18  ;;  %v48_v18 = vld [vmem:[%s2513_s0 + $0xd0] sm:$0xff]  ;;  %v73_v22 = vld [vmem:[%s2513_s0 + $0x198] sm:$0xff] }
  0x43   :  { %554 = vmatmul.f32.gmra.mxu2 %v386_v30  ;;  %v116_v20 = vmul.f32 %v1379_v8, %v48_v18  ;;  %596 = vmatmul.f32.gmra.mxu3 %v400_v17  ;;  %v141_v24 = vmul.f32 %v1379_v8, %v73_v22  ;;  %v314_v18 = vld [vmem:[%s2514_s1 + $0xe0] sm:$0xff] }
  0x45   :  { %v184_v25 = vadd.f32 %v1394_v13, %v116_v20  ;;  %v209_v30 = vadd.f32 %v1394_v13, %v141_v24  ;;  %v104_v24 = vmul.f32 %v1379_v8, %v36_v14  ;;  %v301_v14 = vld [vmem:[%s2514_s1 + $0x78] sm:$0xff] }
  0x47   :  { %v248_v31 = vmax.f32 %v184_v25, 0.0  ;;  %v273_v34 = vmax.f32 %v209_v30, 0.0  ;;  %v51_v25 = vld [vmem:[%s2513_s0 + $0xe8] sm:$0xff] }
  0x48   :  { %v299_v30 = vld [vmem:[%s2514_s1 + $0x68] sm:$0xff] }
  0x49   :  { %461 = vmatmul.f32.gmra.mxu0 %v355_v40  ;;  %509 = vmatmul.f32.gmra.mxu1 %v371_v46  ;;  %v358_v40 = vadd.f32 %v294_v33, %v230_v28  ;;  %v310_v46 = vld [vmem:[%s2514_s1 + $0xc0] sm:$0xff]  ;;  %v376_v36 = vadd.f32 %v312_v32, %v248_v31  ;;  %v401_v41 = vadd.f32 %v337_v38, %v273_v34  ;;  %v64_v31 = vld [vmem:[%s2513_s0 + $0x150] sm:$0xff] }
  0x4a   :  { %v374_v49 = vadd.f32 %v310_v46, %v246_v45  ;;  %v34_v28 = vld [vmem:[%s2513_s0 + $0x60] sm:$0xff]  ;;  %v76_v32 = vld [vmem:[%s2513_s0 + $0x1b0] sm:$0xff]  ;;  %v132_v34 = vmul.f32 %v1379_v8, %v64_v31 }
  0x4b   :  { %557 = vmatmul.f32.gmra.mxu2 %v387_v54  ;;  %v102_v35 = vmul.f32 %v1379_v8, %v34_v28  ;;  %v62_v45 = vld [vmem:[%s2513_s0 + $0x140] sm:$0xff]  ;;  %599 = vmatmul.f32.gmra.mxu3 %v401_v41  ;;  %v35_v54 = vld [vmem:[%s2513_s0 + $0x68] sm:$0xff]  ;;  %v37_v41 = vld [vmem:[%s2513_s0 + $0x78] sm:$0xff] }
  0x4c   :  { %v74_v46 = vld [vmem:[%s2513_s0 + $0x1a0] sm:$0xff]  ;;  %v130_v47 = vmul.f32 %v1379_v8, %v62_v45  ;;  %v103_v1 = vmul.f32 %v1379_v8, %v35_v54  ;;  %v200_v39 = vadd.f32 %v1394_v13, %v132_v34  ;;  %v328_v45 = vld [vmem:[%s2514_s1 + $0x150] sm:$0xff] }
  0x4d   :  { %v142_v48 = vmul.f32 %v1379_v8, %v74_v46 }
  0x4e   :  { %v171_v12 = vadd.f32 %v1394_v13, %v103_v1  ;;  %v264_v44 = vmax.f32 %v200_v39, 0.0  ;;  %v316_v1 = vld [vmem:[%s2514_s1 + $0xf0] sm:$0xff] }
  0x4f   :  { %v210_v53 = vadd.f32 %v1394_v13, %v142_v48 }
  0x51   :  { %464 = vmatmul.f32.gmra.mxu0 %v356_v59  ;;  %512 = vmatmul.f32.gmra.mxu1 %v372_v0  ;;  %v60_v59 = vld [vmem:[%s2513_s0 + $0x130] sm:$0xff]  ;;  %v359_v0 = vadd.f32 %v295_v57, %v231_v52  ;;  %v198_v52 = vadd.f32 %v1394_v13, %v130_v47  ;;  %v274_v58 = vmax.f32 %v210_v53, 0.0 }
  0x52   :  { %v128_v61 = vmul.f32 %v1379_v8, %v60_v59  ;;  %v340_v47 = vld [vmem:[%s2514_s1 + $0x1b0] sm:$0xff] }
  0x53   :  { %v262_v57 = vmax.f32 %v198_v52, 0.0  ;;  %v402_v3 = vadd.f32 %v338_v62, %v274_v58  ;;  %v392_v52 = vadd.f32 %v328_v45, %v264_v44  ;;  %v133_v58 = vmul.f32 %v1379_v8, %v65_v55  ;;  %v332_v55 = vld [vmem:[%s2514_s1 + $0x170] sm:$0xff] }
  0x54   :  { %v196_v2 = vadd.f32 %v1394_v13, %v128_v61  ;;  %v326_v61 = vld [vmem:[%s2514_s1 + $0x140] sm:$0xff] }
  0x55   :  { %602 = vmatmul.f32.gmra.mxu3 %v402_v3  ;;  %v201_v63 = vadd.f32 %v1394_v13, %v133_v58 }
  0x56   :  { %v260_v7 = vmax.f32 %v196_v2, 0.0  ;;  %v390_v2 = vadd.f32 %v326_v61, %v262_v57 }
  0x57   :  { %v265_v3 = vmax.f32 %v201_v63, 0.0 }
  0x59   :  { %467 = vmatmul.f32.gmra.mxu0 %v357_v16  ;;  %515 = vmatmul.f32.gmra.mxu1 %v373_v23  ;;  %v388_v16 = vadd.f32 %v324_v11, %v260_v7  ;;  %v129_v23 = vmul.f32 %v1379_v8, %v61_v21  ;;  %v186_v7 = vadd.f32 %v1394_v13, %v118_v4  ;;  %v327_v21 = vld [vmem:[%s2514_s1 + $0x148] sm:$0xff]  ;;  %v329_v4 = vld [vmem:[%s2514_s1 + $0x158] sm:$0xff] }
  0x5b   :  { %560 = vmatmul.f32.gmra.mxu2 %v388_v16  ;;  %v197_v29 = vadd.f32 %v1394_v13, %v129_v23  ;;  %v250_v15 = vmax.f32 %v186_v7, 0.0  ;;  %v199_v16 = vadd.f32 %v1394_v13, %v131_v9  ;;  %v339_v23 = vld [vmem:[%s2514_s1 + $0x1a8] sm:$0xff]  ;;  %v53_v7 = vld [vmem:[%s2513_s0 + $0xf8] sm:$0xff] }
  0x5d   :  { %v261_v33 = vmax.f32 %v197_v29, 0.0  ;;  %v378_v19 = vadd.f32 %v314_v18, %v250_v15  ;;  %v263_v20 = vmax.f32 %v199_v16, 0.0  ;;  %v119_v29 = vmul.f32 %v1379_v8, %v51_v25  ;;  %v66_v15 = vld [vmem:[%s2513_s0 + $0x160] sm:$0xff] }
  0x5e   :  { %v78_v16 = vld [vmem:[%s2513_s0 + $0x1c0] sm:$0xff]  ;;  %v134_v18 = vmul.f32 %v1379_v8, %v66_v15 }
  0x5f   :  { %v391_v27 = vadd.f32 %v327_v21, %v263_v20 }
  0x61   :  { %470 = vmatmul.f32.gmra.mxu0 %v358_v40  ;;  %518 = vmatmul.f32.gmra.mxu1 %v374_v49  ;;  %v389_v40 = vadd.f32 %v325_v37, %v261_v33  ;;  %v170_v49 = vadd.f32 %v1394_v13, %v102_v35  ;;  %v187_v33 = vadd.f32 %v1394_v13, %v119_v29  ;;  %v342_v29 = vld [vmem:[%s2514_s1 + $0x1c0] sm:$0xff] }
  0x62   :  { %v144_v35 = vmul.f32 %v1379_v8, %v76_v32  ;;  %v67_v32 = vld [vmem:[%s2513_s0 + $0x168] sm:$0xff] }
  0x63   :  { %563 = vmatmul.f32.gmra.mxu2 %v389_v40  ;;  %v234_v59 = vmax.f32 %v170_v49, 0.0  ;;  %v251_v38 = vmax.f32 %v187_v33, 0.0  ;;  %v52_v49 = vld [vmem:[%s2513_s0 + $0xf0] sm:$0xff]  ;;  %v79_v33 = vld [vmem:[%s2513_s0 + $0x1c8] sm:$0xff]  ;;  %v135_v34 = vmul.f32 %v1379_v8, %v67_v32 }
  0x64   :  { %v212_v40 = vadd.f32 %v1394_v13, %v144_v35  ;;  %v120_v54 = vmul.f32 %v1379_v8, %v52_v49  ;;  %v147_v35 = vmul.f32 %v1379_v8, %v79_v33 }
  0x65   :  { %v379_v43 = vadd.f32 %v315_v42, %v251_v38 }
  0x66   :  { %v276_v46 = vmax.f32 %v212_v40, 0.0  ;;  %v188_v57 = vadd.f32 %v1394_v13, %v120_v54 }
  0x68   :  { %v404_v53 = vadd.f32 %v340_v47, %v276_v46  ;;  %v252_v62 = vmax.f32 %v188_v57, 0.0  ;;  %v68_v46 = vld [vmem:[%s2513_s0 + $0x170] sm:$0xff] }
  0x69   :  { %473 = vmatmul.f32.gmra.mxu0 %v359_v0  ;;  %521 = vmatmul.f32.gmra.mxu1 %v375_v10  ;;  %v298_v0 = vld [vmem:[%s2514_s1 + $0x60] sm:$0xff]  ;;  %v143_v10 = vmul.f32 %v1379_v8, %v75_v6  ;;  %v341_v6 = vld [vmem:[%s2514_s1 + $0x1b8] sm:$0xff]  ;;  %v80_v47 = vld [vmem:[%s2513_s0 + $0x1d0] sm:$0xff] }
  0x6a   :  { %v362_v11 = vadd.f32 %v298_v0, %v234_v59  ;;  %v145_v59 = vmul.f32 %v1379_v8, %v77_v56  ;;  %v148_v49 = vmul.f32 %v1379_v8, %v80_v47  ;;  %v344_v57 = vld [vmem:[%s2514_s1 + $0x1d0] sm:$0xff]  ;;  %v349_v47 = vld [vmem:[%s2514_s1 + $0x1f8] sm:$0xff] }
  0x6b   :  { %566 = vmatmul.f32.gmra.mxu2 %v390_v2  ;;  %v211_v17 = vadd.f32 %v1394_v13, %v143_v10  ;;  %v380_v2 = vadd.f32 %v316_v1, %v252_v62  ;;  %v393_v10 = vadd.f32 %v329_v4, %v265_v3 }
  0x6c   :  { %v213_v0 = vadd.f32 %v1394_v13, %v145_v59 }
  0x6d   :  { %v275_v22 = vmax.f32 %v211_v17, 0.0 }
  0x6e   :  { %v277_v5 = vmax.f32 %v213_v0, 0.0 }
  0x6f   :  { %v403_v28 = vadd.f32 %v339_v23, %v275_v22  ;;  %v202_v22 = vadd.f32 %v1394_v13, %v134_v18  ;;  %v346_v18 = vld [vmem:[%s2514_s1 + $0x1e0] sm:$0xff] }
  0x71   :  { %476 = vmatmul.f32.gmra.mxu0 %v360_v26  ;;  %524 = vmatmul.f32.gmra.mxu1 %v376_v36  ;;  %v235_v26 = vmax.f32 %v171_v12, 0.0  ;;  %v172_v36 = vadd.f32 %v1394_v13, %v104_v24  ;;  %v121_v12 = vmul.f32 %v1379_v8, %v53_v7  ;;  %v317_v24 = vld [vmem:[%s2514_s1 + $0xf8] sm:$0xff] }
  0x72   :  { %605 = vmatmul.f32.gmra.mxu3 %v403_v28  ;;  %v345_v7 = vld [vmem:[%s2514_s1 + $0x1d8] sm:$0xff] }
  0x73   :  { %569 = vmatmul.f32.gmra.mxu2 %v391_v27  ;;  %v363_v37 = vadd.f32 %v299_v30, %v235_v26  ;;  %v236_v48 = vmax.f32 %v172_v36, 0.0  ;;  %v189_v17 = vadd.f32 %v1394_v13, %v121_v12  ;;  %v266_v26 = vmax.f32 %v202_v22, 0.0  ;;  %v330_v27 = vld [vmem:[%s2514_s1 + $0x160] sm:$0xff] }
  0x74   :  { %v203_v36 = vadd.f32 %v1394_v13, %v135_v34 }
  0x75   :  { %v253_v21 = vmax.f32 %v189_v17, 0.0  ;;  %v394_v30 = vadd.f32 %v330_v27, %v266_v26  ;;  %v347_v27 = vld [vmem:[%s2514_s1 + $0x1e8] sm:$0xff] }
  0x76   :  { %v267_v40 = vmax.f32 %v203_v36, 0.0  ;;  %v348_v36 = vld [vmem:[%s2514_s1 + $0x1f0] sm:$0xff] }
  0x77   :  { %v381_v25 = vadd.f32 %v317_v24, %v253_v21 }
  0x79   :  { %479 = vmatmul.f32.gmra.mxu0 %v361_v51  ;;  %527 = vmatmul.f32.gmra.mxu1 %v377_v60  ;;  %v105_v51 = vmul.f32 %v1379_v8, %v37_v41  ;;  %v364_v60 = vadd.f32 %v300_v50, %v236_v48  ;;  %v331_v41 = vld [vmem:[%s2514_s1 + $0x168] sm:$0xff]  ;;  %v136_v48 = vmul.f32 %v1379_v8, %v68_v46 }
  0x7a   :  { %608 = vmatmul.f32.gmra.mxu3 %v404_v53  ;;  %v395_v44 = vadd.f32 %v331_v41, %v267_v40  ;;  %v1315_v41 = vld [vmem:[%s2512_s3] ss:$0 sm:$0xff] }
  0x7b   :  { %572 = vmatmul.f32.gmra.mxu2 %v392_v52  ;;  %v173_v61 = vadd.f32 %v1394_v13, %v105_v51  ;;  %v204_v50 = vadd.f32 %v1394_v13, %v136_v48  ;;  %v216_v51 = vadd.f32 %v1394_v13, %v148_v49 }
  0x7d   :  { %v237_v9 = vmax.f32 %v173_v61, 0.0  ;;  %v268_v54 = vmax.f32 %v204_v50, 0.0  ;;  %v280_v56 = vmax.f32 %v216_v51, 0.0  ;;  %v81_v61 = vld [vmem:[%s2513_s0 + $0x1d8] sm:$0xff] }
  0x7e   :  { %v149_v63 = vmul.f32 %v1379_v8, %v81_v61 }
  0x7f   :  { %v365_v20 = vadd.f32 %v301_v14, %v237_v9  ;;  %v396_v58 = vadd.f32 %v332_v55, %v268_v54  ;;  %v408_v59 = vadd.f32 %v344_v57, %v280_v56 }
  0x80   :  { %v217_v1 = vadd.f32 %v1394_v13, %v149_v63 }
  0x81   :  { %482 = vmatmul.f32.gmra.mxu0 %v362_v11  ;;  %530 = vmatmul.f32.gmra.mxu1 %v378_v19  ;;  %v405_v11 = vadd.f32 %v341_v6, %v277_v5  ;;  %v146_v19 = vmul.f32 %v1379_v8, %v78_v16  ;;  %v333_v5 = vld [vmem:[%s2514_s1 + $0x178] sm:$0xff] }
  0x82   :  { %v281_v6 = vmax.f32 %v217_v1, 0.0 }
  0x83   :  { %575 = vmatmul.f32.gmra.mxu2 %v393_v10  ;;  %611 = vmatmul.f32.gmra.mxu3 %v405_v11  ;;  %v214_v23 = vadd.f32 %v1394_v13, %v146_v19  ;;  %v82_v11 = vld [vmem:[%s2513_s0 + $0x1e0] sm:$0xff] }
  0x84   :  { %v409_v10 = vadd.f32 %v345_v7, %v281_v6  ;;  %v150_v12 = vmul.f32 %v1379_v8, %v82_v11 }
  0x85   :  { %v278_v28 = vmax.f32 %v214_v23, 0.0 }
  0x86   :  { %v218_v14 = vadd.f32 %v1394_v13, %v150_v12 }
  0x87   :  { %v406_v31 = vadd.f32 %v342_v29, %v278_v28  ;;  %v84_v29 = vld [vmem:[%s2513_s0 + $0x1f0] sm:$0xff] }
  0x88   :  { %v282_v17 = vmax.f32 %v218_v14, 0.0 }
  0x89   :  { %485 = vmatmul.f32.gmra.mxu0 %v363_v37  ;;  %533 = vmatmul.f32.gmra.mxu1 %v379_v43  ;;  %v215_v37 = vadd.f32 %v1394_v13, %v147_v35  ;;  %v343_v43 = vld [vmem:[%s2514_s1 + $0x1c8] sm:$0xff] }
  0x8a   :  { %v410_v19 = vadd.f32 %v346_v18, %v282_v17 }
  0x8b   :  { %578 = vmatmul.f32.gmra.mxu2 %v394_v30  ;;  %614 = vmatmul.f32.gmra.mxu3 %v406_v31  ;;  %v279_v42 = vmax.f32 %v215_v37, 0.0  ;;  %v152_v30 = vmul.f32 %v1379_v8, %v84_v29  ;;  %v1314_v37 = vld [vmem:[%s2511_s2] ss:$0 sm:$0xff] }
  0x8d   :  { %v407_v45 = vadd.f32 %v343_v43, %v279_v42  ;;  %v220_v31 = vadd.f32 %v1394_v13, %v152_v30 }
  0x8f   :  { %v284_v35 = vmax.f32 %v220_v31, 0.0 }
  0x91   :  { %488 = vmatmul.f32.gmra.mxu0 %v364_v60  ;;  %536 = vmatmul.f32.gmra.mxu1 %v380_v2  ;;  %v69_v60 = vld [vmem:[%s2513_s0 + $0x178] sm:$0xff] }
  0x92   :  { %v137_v62 = vmul.f32 %v1379_v8, %v69_v60 }
  0x93   :  { %581 = vmatmul.f32.gmra.mxu2 %v395_v44  ;;  %617 = vmatmul.f32.gmra.mxu3 %v407_v45 }
  0x94   :  { %v205_v0 = vadd.f32 %v1394_v13, %v137_v62 }
  0x96   :  { %v269_v4 = vmax.f32 %v205_v0, 0.0 }
  0x98   :  { %v397_v9 = vadd.f32 %v333_v5, %v269_v4 }
  0x99   :  { %491 = vmatmul.f32.gmra.mxu0 %v365_v20  ;;  %539 = vmatmul.f32.gmra.mxu1 %v381_v25  ;;  %v83_v20 = vld [vmem:[%s2513_s0 + $0x1e8] sm:$0xff] }
  0x9a   :  { %v151_v21 = vmul.f32 %v1379_v8, %v83_v20  ;;  %v412_v8 = vadd.f32 %v348_v36, %v284_v35 }
  0x9b   :  { %584 = vmatmul.f32.gmra.mxu2 %v396_v58  ;;  %620 = vmatmul.f32.gmra.mxu3 %v408_v59 }
  0x9c   :  { %v219_v22 = vadd.f32 %v1394_v13, %v151_v21  ;;  %v85_v13 = vld [vmem:[%s2513_s0 + $0x1f8] sm:$0xff] }
  0x9d   :  { %v153_v40 = vmul.f32 %v1314_v37, %v85_v13 }
  0x9e   :  { %v1852_v38 = vpop.f32.mrf.mxu0  ;;  %v1854_v39 = vpop.f32.mrf.mxu1  ;;  %v283_v26 = vmax.f32 %v219_v22, 0.0 }
  0x9f   :  { %639 = vst [vmem:[%s2515_s5] sm:$0xff] %v1852_v38  ;;  %v221_v42 = vadd.f32 %v1315_v41, %v153_v40 }
  0xa0   :  { %655 = vst [vmem:[%s2515_s5 + $0x80] sm:$0xff] %v1854_v39  ;;  %v411_v28 = vadd.f32 %v347_v27, %v283_v26 }
  0xa1   :  { %v285_v46 = vmax.f32 %v221_v42, 0.0 }
  0xa3   :  { %587 = vmatmul.f32.gmra.mxu2 %v397_v9  ;;  %623 = vmatmul.f32.gmra.mxu3 %v409_v10  ;;  %v413_v48 = vadd.f32 %v349_v47, %v285_v46 }
  0xa6   :  { %v1880_v52 = vpop.f32.mrf.mxu0  ;;  %v1882_v53 = vpop.f32.mrf.mxu1 }
  0xa7   :  { %640 = vst [vmem:[%s2515_s5 + $0x8] sm:$0xff] %v1880_v52  ;;  %v1959_v25 = vpop.f32.mrf.mxu2  ;;  %v901_v9 = vadd.f32 %v1880_v52, %v1852_v38 }
  0xa8   :  { %656 = vst [vmem:[%s2515_s5 + $0x88] sm:$0xff] %v1882_v53 }
  0xa9   :  { %671 = vst [vmem:[%s2515_s5 + $0x100] sm:$0xff] %v1959_v25  ;;  %v2048_v55 = vpop.f32.mrf.mxu3 }
  0xaa   :  { %687 = vst [vmem:[%s2515_s5 + $0x180] sm:$0xff] %v2048_v55 }
  0xab   :  { %626 = vmatmul.f32.gmra.mxu3 %v410_v19 }
  0xae   :  { %v1908_v2 = vpop.f32.mrf.mxu0  ;;  %v1910_v3 = vpop.f32.mrf.mxu1 }
  0xaf   :  { %641 = vst [vmem:[%s2515_s5 + $0x10] sm:$0xff] %v1908_v2  ;;  %v1985_v34 = vpop.f32.mrf.mxu2  ;;  %v902_v10 = vadd.f32 %v901_v9, %v1908_v2 }
  0xb0   :  { %657 = vst [vmem:[%s2515_s5 + $0x90] sm:$0xff] %v1910_v3 }
  0xb1   :  { %672 = vst [vmem:[%s2515_s5 + $0x108] sm:$0xff] %v1985_v34 }
  0xb3   :  { %629 = vmatmul.f32.gmra.mxu3 %v411_v28 }
  0xb6   :  { %v1931_v15 = vpop.f32.mrf.mxu0  ;;  %v1933_v16 = vpop.f32.mrf.mxu1 }
  0xb7   :  { %642 = vst [vmem:[%s2515_s5 + $0x18] sm:$0xff] %v1931_v15  ;;  %v2015_v45 = vpop.f32.mrf.mxu2  ;;  %v2072_v59 = vpop.f32.mrf.mxu3  ;;  %v903_v14 = vadd.f32 %v902_v10, %v1931_v15 }
  0xb8   :  { %658 = vst [vmem:[%s2515_s5 + $0x98] sm:$0xff] %v1933_v16 }
  0xb9   :  { %673 = vst [vmem:[%s2515_s5 + $0x110] sm:$0xff] %v2015_v45 }
  0xba   :  { %688 = vst [vmem:[%s2515_s5 + $0x188] sm:$0xff] %v2072_v59 }
  0xbb   :  { %632 = vmatmul.f32.gmra.mxu3 %v412_v8 }
  0xbe   :  { %v1951_v23 = vpop.f32.mrf.mxu0  ;;  %v1953_v24 = vpop.f32.mrf.mxu1 }
  0xbf   :  { %643 = vst [vmem:[%s2515_s5 + $0x20] sm:$0xff] %v1951_v23  ;;  %v2036_v51 = vpop.f32.mrf.mxu2  ;;  %v904_v19 = vadd.f32 %v903_v14, %v1951_v23 }
  0xc0   :  { %659 = vst [vmem:[%s2515_s5 + $0xa0] sm:$0xff] %v1953_v24 }
  0xc1   :  { %2534 = vst [vmem:[#allocation2_spill] sm:$0xff] %v2036_v51 }
  0xc2   :  { %674 = vst [vmem:[%s2515_s5 + $0x118] sm:$0xff] %v2036_v51 }
  0xc3   :  { %635 = vmatmul.f32.gmra.mxu3 %v413_v48 }
  0xc6   :  { %v1977_v32 = vpop.f32.mrf.mxu0  ;;  %v1979_v33 = vpop.f32.mrf.mxu1 }
  0xc7   :  { %644 = vst [vmem:[%s2515_s5 + $0x28] sm:$0xff] %v1977_v32  ;;  %v2056_v57 = vpop.f32.mrf.mxu2  ;;  %v2096_v63 = vpop.f32.mrf.mxu3  ;;  %v905_v20 = vadd.f32 %v904_v19, %v1977_v32 }
  0xc8   :  { %660 = vst [vmem:[%s2515_s5 + $0xa8] sm:$0xff] %v1979_v33 }
  0xc9   :  { %675 = vst [vmem:[%s2515_s5 + $0x120] sm:$0xff] %v2056_v57 }
  0xca   :  { %689 = vst [vmem:[%s2515_s5 + $0x190] sm:$0xff] %v2096_v63 }
  0xce   :  { %v2007_v43 = vpop.f32.mrf.mxu0  ;;  %v2009_v44 = vpop.f32.mrf.mxu1 }
  0xcf   :  { %645 = vst [vmem:[%s2515_s5 + $0x30] sm:$0xff] %v2007_v43  ;;  %v2080_v61 = vpop.f32.mrf.mxu2  ;;  %v2120_v5 = vpop.f32.mrf.mxu3  ;;  %v906_v21 = vadd.f32 %v905_v20, %v2007_v43 }
  0xd0   :  { %661 = vst [vmem:[%s2515_s5 + $0xb0] sm:$0xff] %v2009_v44 }
  0xd1   :  { %676 = vst [vmem:[%s2515_s5 + $0x128] sm:$0xff] %v2080_v61 }
  0xd2   :  { %690 = vst [vmem:[%s2515_s5 + $0x198] sm:$0xff] %v2120_v5 }
  0xd6   :  { %v2028_v49 = vpop.f32.mrf.mxu0  ;;  %v2030_v50 = vpop.f32.mrf.mxu1 }
  0xd7   :  { %646 = vst [vmem:[%s2515_s5 + $0x38] sm:$0xff] %v2028_v49  ;;  %v907_v27 = vadd.f32 %v906_v21, %v2028_v49 }
  0xd8   :  { %662 = vst [vmem:[%s2515_s5 + $0xb8] sm:$0xff] %v2030_v50  ;;  %v2147_v12 = vpop.f32.mrf.mxu3 }
  0xd9   :  { %2537 = vst [vmem:[#allocation5_spill] sm:$0xff] %v2147_v12 }
  0xda   :  { %691 = vst [vmem:[%s2515_s5 + $0x1a0] sm:$0xff] %v2147_v12 }
  0xde   :  { %v2046_v54 = vpop.f32.mrf.mxu0  ;;  %v2054_v56 = vpop.f32.mrf.mxu1 }
  0xdf   :  { %647 = vst [vmem:[%s2515_s5 + $0x40] sm:$0xff] %v2046_v54  ;;  %v2104_v1 = vpop.f32.mrf.mxu2  ;;  %v908_v30 = vadd.f32 %v907_v27, %v2046_v54 }
  0xe0   :  { %663 = vst [vmem:[%s2515_s5 + $0xc0] sm:$0xff] %v2054_v56 }
  0xe1   :  { %677 = vst [vmem:[%s2515_s5 + $0x130] sm:$0xff] %v2104_v1 }
  0xe6   :  { %v2070_v58 = vpop.f32.mrf.mxu0  ;;  %v2078_v60 = vpop.f32.mrf.mxu1 }
  0xe7   :  { %648 = vst [vmem:[%s2515_s5 + $0x48] sm:$0xff] %v2070_v58  ;;  %v2128_v7 = vpop.f32.mrf.mxu2  ;;  %v909_v31 = vadd.f32 %v908_v30, %v2070_v58 }
  0xe8   :  { %664 = vst [vmem:[%s2515_s5 + $0xc8] sm:$0xff] %v2078_v60 }
  0xe9   :  { %2536 = vst [vmem:[#allocation4_spill] sm:$0xff] %v2128_v7 }
  0xea   :  { %678 = vst [vmem:[%s2515_s5 + $0x138] sm:$0xff] %v2128_v7 }
  0xee   :  { %v2094_v62 = vpop.f32.mrf.mxu0  ;;  %v2102_v0 = vpop.f32.mrf.mxu1 }
  0xef   :  { %649 = vst [vmem:[%s2515_s5 + $0x50] sm:$0xff] %v2094_v62  ;;  %v2156_v18 = vpop.f32.mrf.mxu2  ;;  %v910_v35 = vadd.f32 %v909_v31, %v2094_v62 }
  0xf0   :  { %665 = vst [vmem:[%s2515_s5 + $0xd0] sm:$0xff] %v2102_v0 }
  0xf1   :  { %679 = vst [vmem:[%s2515_s5 + $0x140] sm:$0xff] %v2156_v18 }
  0xf5   :  { %v2175_v26 = vpop.f32.mrf.mxu3 }
  0xf6   :  { %v2118_v4 = vpop.f32.mrf.mxu0  ;;  %v2126_v6 = vpop.f32.mrf.mxu1  ;;  %692 = vst [vmem:[%s2515_s5 + $0x1a8] sm:$0xff] %v2175_v26 }
  0xf7   :  { %650 = vst [vmem:[%s2515_s5 + $0x58] sm:$0xff] %v2118_v4  ;;  %v2184_v29 = vpop.f32.mrf.mxu2  ;;  %v911_v13 = vadd.f32 %v910_v35, %v2118_v4 }
  0xf8   :  { %2535 = vst [vmem:[#allocation3_spill] sm:$0xff] %v2126_v6 }
  0xf9   :  { %666 = vst [vmem:[%s2515_s5 + $0xd8] sm:$0xff] %v2126_v6 }
  0xfa   :  { %680 = vst [vmem:[%s2515_s5 + $0x148] sm:$0xff] %v2184_v29 }
  0xfd   :  { %v2203_v8 = vpop.f32.mrf.mxu3 }
  0xfe   :  { %v2145_v11 = vpop.f32.mrf.mxu0  ;;  %v2154_v17 = vpop.f32.mrf.mxu1  ;;  %2540 = vst [vmem:[#allocation8_spill] sm:$0xff] %v2203_v8 }
  0xff   :  { %651 = vst [vmem:[%s2515_s5 + $0x60] sm:$0xff] %v2145_v11  ;;  %v2212_v40 = vpop.f32.mrf.mxu2  ;;  %v912_v41 = vadd.f32 %v911_v13, %v2145_v11 }
 0x100   :  { %2538 = vst [vmem:[#allocation6_spill] sm:$0xff] %v2154_v17 }
 0x101   :  { %667 = vst [vmem:[%s2515_s5 + $0xe0] sm:$0xff] %v2154_v17 }
 0x102   :  { %2542 = vst [vmem:[#allocation10_spill] sm:$0xff] %v2212_v40 }
 0x103   :  { %681 = vst [vmem:[%s2515_s5 + $0x150] sm:$0xff] %v2212_v40 }
 0x104   :  { %693 = vst [vmem:[%s2515_s5 + $0x1b0] sm:$0xff] %v2203_v8 }
 0x106   :  { %v2173_v22 = vpop.f32.mrf.mxu0  ;;  %v2182_v28 = vpop.f32.mrf.mxu1 }
 0x107   :  { %652 = vst [vmem:[%s2515_s5 + $0x68] sm:$0xff] %v2173_v22  ;;  %v913_v42 = vadd.f32 %v912_v41, %v2173_v22  ;;  %v2231_v48 = vpop.f32.mrf.mxu3  ;;  %v2240_v14 = vpop.f32.mrf.mxu2 }
 0x108   :  { %2539 = vst [vmem:[#allocation7_spill] sm:$0xff] %v2182_v28 }
 0x109   :  { %668 = vst [vmem:[%s2515_s5 + $0xe8] sm:$0xff] %v2182_v28 }
 0x10a   :  { %2543 = vst [vmem:[#allocation11_spill] sm:$0xff] %v2231_v48 }
 0x10b   :  { %2545 = vst [vmem:[#allocation13_spill] sm:$0xff] %v2240_v14 }
 0x10c   :  { %682 = vst [vmem:[%s2515_s5 + $0x158] sm:$0xff] %v2240_v14 }
 0x10d   :  { %694 = vst [vmem:[%s2515_s5 + $0x1b8] sm:$0xff] %v2231_v48 }
 0x10e   :  { %v2201_v36 = vpop.f32.mrf.mxu0  ;;  %v2210_v37 = vpop.f32.mrf.mxu1 }
 0x10f   :  { %653 = vst [vmem:[%s2515_s5 + $0x70] sm:$0xff] %v2201_v36  ;;  %v914_v46 = vadd.f32 %v913_v42, %v2201_v36  ;;  %v2257_v27 = vpop.f32.mrf.mxu3  ;;  %v2260_v31 = vpop.f32.mrf.mxu2 }
 0x110   :  { %2541 = vst [vmem:[#allocation9_spill] sm:$0xff] %v2210_v37 }
 0x111   :  { %669 = vst [vmem:[%s2515_s5 + $0xf0] sm:$0xff] %v2210_v37 }
 0x112   :  { %2546 = vst [vmem:[#allocation14_spill] sm:$0xff] %v2257_v27 }
 0x113   :  { %695 = vst [vmem:[%s2515_s5 + $0x1c0] sm:$0xff] %v2257_v27 }
 0x114   :  { %683 = vst [vmem:[%s2515_s5 + $0x160] sm:$0xff] %v2260_v31 }
 0x116   :  { %v2229_v47 = vpop.f32.mrf.mxu0  ;;  %v2238_v10 = vpop.f32.mrf.mxu1 }
 0x117   :  { %654 = vst [vmem:[%s2515_s5 + $0x78] sm:$0xff] %v2229_v47  ;;  %v915_v9 = vadd.f32 %v914_v46, %v2229_v47  ;;  %v2273_v42 = vpop.f32.mrf.mxu3 }
 0x118   :  { %2544 = vst [vmem:[#allocation12_spill] sm:$0xff] %v2238_v10 }
 0x119   :  { %670 = vst [vmem:[%s2515_s5 + $0xf8] sm:$0xff] %v2238_v10  ;;  %v916_v19 = vadd.f32 %v915_v9, %v1854_v39  ;;  %v2276_v9 = vpop.f32.mrf.mxu2 }
 0x11a   :  { %2547 = vst [vmem:[#allocation15_spill] sm:$0xff] %v2273_v42 }
 0x11b   :  { %v917_v20 = vadd.f32 %v916_v19, %v1882_v53  ;;  %696 = vst [vmem:[%s2515_s5 + $0x1c8] sm:$0xff] %v2273_v42 }
 0x11c   :  { %684 = vst [vmem:[%s2515_s5 + $0x168] sm:$0xff] %v2276_v9 }
 0x11d   :  { %v918_v21 = vadd.f32 %v917_v20, %v1910_v3 }
 0x11f   :  { %v919_v30 = vadd.f32 %v918_v21, %v1933_v16 }
 0x121   :  { %v920_v35 = vadd.f32 %v919_v30, %v1953_v24  ;;  %v2289_v30 = vpop.f32.mrf.mxu3 }
 0x122   :  { %2548 = vst [vmem:[#allocation16_spill] sm:$0xff] %v2289_v30 }
 0x123   :  { %v921_v13 = vadd.f32 %v920_v35, %v1979_v33  ;;  %697 = vst [vmem:[%s2515_s5 + $0x1d0] sm:$0xff] %v2289_v30 }
 0x125   :  { %v922_v41 = vadd.f32 %v921_v13, %v2009_v44  ;;  %v2292_v13 = vpop.f32.mrf.mxu2 }
 0x126   :  { %2549 = vst [vmem:[#allocation17_spill] sm:$0xff] %v2292_v13 }
 0x127   :  { %v923_v46 = vadd.f32 %v922_v41, %v2030_v50  ;;  %685 = vst [vmem:[%s2515_s5 + $0x170] sm:$0xff] %v2292_v13 }
 0x129   :  { %v924_v19 = vadd.f32 %v923_v46, %v2054_v56 }
 0x12b   :  { %v925_v20 = vadd.f32 %v924_v19, %v2078_v60 }
 0x12d   :  { %v926_v21 = vadd.f32 %v925_v20, %v2102_v0  ;;  %v2305_v20 = vpop.f32.mrf.mxu3 }
 0x12e   :  { %698 = vst [vmem:[%s2515_s5 + $0x1d8] sm:$0xff] %v2305_v20 }
 0x12f   :  { %v927_v35 = vadd.f32 %v926_v21, %v2126_v6  ;;  %v2308_v6 = vpop.f32.mrf.mxu2 }
 0x130   :  { %2550 = vst [vmem:[#allocation18_spill] sm:$0xff] %v2308_v6 }
 0x131   :  { %v928_v41 = vadd.f32 %v927_v35, %v2154_v17  ;;  %686 = vst [vmem:[%s2515_s5 + $0x178] sm:$0xff] %v2308_v6 }
 0x133   :  { %v929_v46 = vadd.f32 %v928_v41, %v2182_v28 }
 0x135   :  { %v930_v19 = vadd.f32 %v929_v46, %v2210_v37  ;;  %v2321_v37 = vpop.f32.mrf.mxu3 }
 0x136   :  { %699 = vst [vmem:[%s2515_s5 + $0x1e0] sm:$0xff] %v2321_v37 }
 0x137   :  { %v931_v21 = vadd.f32 %v930_v19, %v2238_v10 }
 0x139   :  { %v932_v35 = vadd.f32 %v931_v21, %v1959_v25 }
 0x13b   :  { %v933_v41 = vadd.f32 %v932_v35, %v1985_v34 }
 0x13d   :  { %v934_v46 = vadd.f32 %v933_v41, %v2015_v45  ;;  %v2331_v21 = vpop.f32.mrf.mxu3 }
 0x13e   :  { %700 = vst [vmem:[%s2515_s5 + $0x1e8] sm:$0xff] %v2331_v21 }
 0x13f   :  { %v935_v19 = vadd.f32 %v934_v46, %v2036_v51 }
 0x141   :  { %v936_v10 = vadd.f32 %v935_v19, %v2056_v57 }
 0x143   :  { %v937_v28 = vadd.f32 %v936_v10, %v2080_v61 }
 0x145   :  { %v938_v17 = vadd.f32 %v937_v28, %v2104_v1  ;;  %v2341_v19 = vpop.f32.mrf.mxu3 }
 0x146   :  { %701 = vst [vmem:[%s2515_s5 + $0x1f0] sm:$0xff] %v2341_v19 }
 0x147   :  { %v939_v35 = vadd.f32 %v938_v17, %v2128_v7 }
 0x149   :  { %v940_v41 = vadd.f32 %v939_v35, %v2156_v18 }
 0x14b   :  { %v941_v46 = vadd.f32 %v940_v41, %v2184_v29 }
 0x14d   :  { %v942_v51 = vadd.f32 %v941_v46, %v2212_v40  ;;  %v636_v35 = vpop.f32.mrf.mxu3 }
 0x14e   :  { %702 = vst [vmem:[%s2515_s5 + $0x1f8] sm:$0xff] %v636_v35 }
 0x14f   :  { %v943_v10 = vadd.f32 %v942_v51, %v2240_v14 }
 0x151   :  { %v944_v17 = vadd.f32 %v943_v10, %v2260_v31 }
 0x153   :  { %v945_v28 = vadd.f32 %v944_v17, %v2276_v9 }
 0x155   :  { %v946_v7 = vadd.f32 %v945_v28, %v2292_v13 }
 0x157   :  { %v947_v41 = vadd.f32 %v946_v7, %v2308_v6 }
 0x159   :  { %v948_v51 = vadd.f32 %v947_v41, %v2048_v55 }
 0x15b   :  { %v949_v46 = vadd.f32 %v948_v51, %v2072_v59 }
 0x15d   :  { %v950_v14 = vadd.f32 %v949_v46, %v2096_v63 }
 0x15f   :  { %v951_v40 = vadd.f32 %v950_v14, %v2120_v5 }
 0x161   :  { %v952_v10 = vadd.f32 %v951_v40, %v2147_v12  ;;  %v1316_v12 = vmov 512.0  }
 0x162   :  { %1312 = vrcp.f32 %v1316_v12 }
 0x163   :  { %v953_v17 = vadd.f32 %v952_v10, %v2175_v26 }
 0x165   :  { %v954_v28 = vadd.f32 %v953_v17, %v2203_v8 }
 0x167   :  { %v955_v7 = vadd.f32 %v954_v28, %v2231_v48 }
 0x168   :  { %v1313_v8 = vpop.eup %1312 }
 0x169   :  { %v956_v6 = vadd.f32 %v955_v7, %v2257_v27  ;;  %v973_v48 = vmul.f32 512.0, %v1313_v8  ;;  %vm978_vm0 = vweird.f32 %v1313_v8 }
 0x16b   :  { %v957_v13 = vadd.f32 %v956_v6, %v2273_v42  ;;  %v974_v27 = vsub.f32 1.0, %v973_v48 }
 0x16d   :  { %v958_v41 = vadd.f32 %v957_v13, %v2289_v30  ;;  %v975_v42 = vmul.f32 %v1313_v8, %v974_v27 }
 0x16f   :  { %v959_v51 = vadd.f32 %v958_v41, %v2305_v20  ;;  %v976_v30 = vadd.f32 %v1313_v8, %v975_v42 }
 0x171   :  { %v960_v46 = vadd.f32 %v959_v51, %v2321_v37  ;;  %v980_v51 = vsel %vm978_vm0, %v1313_v8, %v976_v30 }
 0x173   :  { %v961_v14 = vadd.f32 %v960_v46, %v2331_v21 }
 0x175   :  { %v962_v40 = vadd.f32 %v961_v14, %v2341_v19 }
 0x177   :  { %v963_v10 = vadd.f32 %v962_v40, %v636_v35 }
 0x179   :  { %v964_v17 = vrot.slane %v963_v10, 4 }
 0x17b   :  { %v965_v28 = vadd.f32 %v964_v17, %v963_v10 }
 0x17d   :  { %v966_v7 = vrot.slane %v965_v28, 2 }
 0x17f   :  { %v967_v6 = vadd.f32 %v966_v7, %v965_v28 }
 0x181   :  { %v968_v13 = vrot.slane %v967_v6, 1 }
 0x183   :  { %v2370_v41 = vadd.f32 %v968_v13, %v967_v6 }
 0x185   :  { %v2373_v46 = vmul.f32 %v980_v51, %v2370_v41 }
 0x187   :  { %v2376_v12 = vsub.f32 %v636_v35, %v2373_v46  ;;  %v987_v14 = vsub.f32 %v1852_v38, %v2373_v46  ;;  %v988_v48 = vsub.f32 %v1880_v52, %v2373_v46  ;;  %v989_v27 = vsub.f32 %v1908_v2, %v2373_v46 }
 0x188   :  { %v990_v8 = vsub.f32 %v1931_v15, %v2373_v46  ;;  %v991_v30 = vsub.f32 %v1951_v23, %v2373_v46  ;;  %v992_v17 = vsub.f32 %v1977_v32, %v2373_v46  ;;  %v993_v52 = vsub.f32 %v2007_v43, %v2373_v46 }
 0x189   :  { %v1115_v42 = vmul.f32 %v987_v14, %v987_v14  ;;  %v1116_v40 = vmul.f32 %v988_v48, %v988_v48  ;;  %v1117_v10 = vmul.f32 %v989_v27, %v989_v27  ;;  %v994_v6 = vsub.f32 %v2028_v49, %v2373_v46 }
 0x18a   :  { %v1118_v38 = vmul.f32 %v990_v8, %v990_v8  ;;  %v1119_v7 = vmul.f32 %v991_v30, %v991_v30  ;;  %v1120_v13 = vmul.f32 %v992_v17, %v992_v17  ;;  %v995_v23 = vsub.f32 %v2046_v54, %v2373_v46 }
 0x18b   :  { %v1179_v35 = vadd.f32 %v1116_v40, %v1115_v42  ;;  %v1121_v51 = vmul.f32 %v993_v52, %v993_v52  ;;  %v996_v32 = vsub.f32 %v2070_v58, %v2373_v46  ;;  %v1122_v48 = vmul.f32 %v994_v6, %v994_v6 }
 0x18c   :  { %v997_v43 = vsub.f32 %v2094_v62, %v2373_v46  ;;  %v1123_v42 = vmul.f32 %v995_v23, %v995_v23  ;;  %v998_v49 = vsub.f32 %v2118_v4, %v2373_v46  ;;  %v999_v54 = vsub.f32 %v2145_v11, %v2373_v46 }
 0x18d   :  { %v1180_v28 = vadd.f32 %v1179_v35, %v1117_v10  ;;  %v1124_v8 = vmul.f32 %v996_v32, %v996_v32  ;;  %v1000_v58 = vsub.f32 %v2173_v22, %v2373_v46  ;;  %v1001_v62 = vsub.f32 %v2201_v36, %v2373_v46 }
 0x18e   :  { %v1125_v10 = vmul.f32 %v997_v43, %v997_v43  ;;  %v1126_v17 = vmul.f32 %v998_v49, %v998_v49  ;;  %v1002_v4 = vsub.f32 %v2229_v47, %v2373_v46  ;;  %v1003_v11 = vsub.f32 %v1854_v39, %v2373_v46 }
 0x18f   :  { %v1181_v2 = vadd.f32 %v1180_v28, %v1118_v38  ;;  %v1127_v28 = vmul.f32 %v999_v54, %v999_v54  ;;  %v1129_v6 = vmul.f32 %v1001_v62, %v1001_v62  ;;  %v1004_v22 = vsub.f32 %v1882_v53, %v2373_v46 }
 0x190   :  { %v1005_v36 = vsub.f32 %v1910_v3, %v2373_v46  ;;  %v1006_v47 = vsub.f32 %v1933_v16, %v2373_v46  ;;  %v1007_v39 = vsub.f32 %v1953_v24, %v2373_v46  ;;  %v1008_v53 = vsub.f32 %v1979_v33, %v2373_v46 }
 0x191   :  { %v1182_v15 = vadd.f32 %v1181_v2, %v1119_v7  ;;  %v1128_v7 = vmul.f32 %v1000_v58, %v1000_v58  ;;  %v1132_v32 = vmul.f32 %v1004_v22, %v1004_v22  ;;  %v1009_v3 = vsub.f32 %v2009_v44, %v2373_v46 }
 0x192   :  { %v1135_v49 = vmul.f32 %v1007_v39, %v1007_v39  ;;  %v1010_v16 = vsub.f32 %v2030_v50, %v2373_v46  ;;  %v1011_v24 = vsub.f32 %v2054_v56, %v2373_v46  ;;  %v1012_v33 = vsub.f32 %v2078_v60, %v2373_v46 }
 0x193   :  { %v1183_v14 = vadd.f32 %v1182_v15, %v1120_v13  ;;  %v1130_v15 = vmul.f32 %v1002_v4, %v1002_v4  ;;  %v1013_v44 = vsub.f32 %v2102_v0, %v2373_v46 }
 0x194   :  { %v1138_v58 = vmul.f32 %v1010_v16, %v1010_v16 }
 0x195   :  { %v1184_v27 = vadd.f32 %v1183_v14, %v1121_v51  ;;  %v1131_v51 = vmul.f32 %v1003_v11, %v1003_v11 }
 0x197   :  { %v1185_v40 = vadd.f32 %v1184_v27, %v1122_v48  ;;  %v1133_v27 = vmul.f32 %v1005_v36, %v1005_v36 }
 0x199   :  { %v1186_v30 = vadd.f32 %v1185_v40, %v1123_v42  ;;  %v1134_v42 = vmul.f32 %v1006_v47, %v1006_v47 }
 0x19b   :  { %v1187_v35 = vadd.f32 %v1186_v30, %v1124_v8  ;;  %v1136_v30 = vmul.f32 %v1008_v53, %v1008_v53 }
 0x19d   :  { %v1188_v38 = vadd.f32 %v1187_v35, %v1125_v10  ;;  %v1137_v10 = vmul.f32 %v1009_v3, %v1009_v3 }
 0x19f   :  { %v1189_v52 = vadd.f32 %v1188_v38, %v1126_v17  ;;  %v1139_v38 = vmul.f32 %v1011_v24, %v1011_v24 }
 0x1a1   :  { %v1190_v2 = vadd.f32 %v1189_v52, %v1127_v28  ;;  %v2551_v28 = vld [vmem:[#allocation3_spill] sm:$0xff]  ;;  %v1140_v52 = vmul.f32 %v1012_v33, %v1012_v33 }
 0x1a2   :  { %v1014_v50 = vsub.f32 %v2551_v28, %v2373_v46 }
 0x1a3   :  { %v1191_v13 = vadd.f32 %v1190_v2, %v1128_v7  ;;  %v2552_v7 = vld [vmem:[#allocation6_spill] sm:$0xff]  ;;  %v1141_v2 = vmul.f32 %v1013_v44, %v1013_v44  ;;  %v2557_v44 = vld [vmem:[#allocation4_spill] sm:$0xff] }
 0x1a4   :  { %v1015_v56 = vsub.f32 %v2552_v7, %v2373_v46 }
 0x1a5   :  { %v1192_v23 = vadd.f32 %v1191_v13, %v1129_v6  ;;  %v2553_v6 = vld [vmem:[#allocation7_spill] sm:$0xff]  ;;  %v1142_v13 = vmul.f32 %v1014_v50, %v1014_v50 }
 0x1a6   :  { %v1016_v60 = vsub.f32 %v2553_v6, %v2373_v46  ;;  %v2559_v6 = vld [vmem:[#allocation13_spill] sm:$0xff] }
 0x1a7   :  { %v1193_v14 = vadd.f32 %v1192_v23, %v1130_v15  ;;  %v2554_v15 = vld [vmem:[#allocation9_spill] sm:$0xff]  ;;  %v1143_v23 = vmul.f32 %v1015_v56, %v1015_v56  ;;  %v2558_v56 = vld [vmem:[#allocation10_spill] sm:$0xff] }
 0x1a8   :  { %v1017_v0 = vsub.f32 %v2554_v15, %v2373_v46  ;;  %v1144_v47 = vmul.f32 %v1016_v60, %v1016_v60  ;;  %v1030_v60 = vsub.f32 %v2559_v6, %v2373_v46  ;;  %v1046_v6 = vsub.f32 %v2305_v20, %v2373_v46 }
 0x1a9   :  { %v1194_v48 = vadd.f32 %v1193_v14, %v1131_v51  ;;  %v2555_v51 = vld [vmem:[#allocation12_spill] sm:$0xff] }
 0x1aa   :  { %v1018_v14 = vsub.f32 %v2555_v51, %v2373_v46  ;;  %v1145_v39 = vmul.f32 %v1017_v0, %v1017_v0  ;;  %v2560_v51 = vld [vmem:[#allocation17_spill] sm:$0xff] }
 0x1ab   :  { %v1195_v43 = vadd.f32 %v1194_v48, %v1132_v32  ;;  %v1019_v48 = vsub.f32 %v1959_v25, %v2373_v46  ;;  %v1023_v25 = vsub.f32 %v2056_v57, %v2373_v46  ;;  %v1027_v57 = vsub.f32 %v2156_v18, %v2373_v46 }
 0x1ac   :  { %v1146_v53 = vmul.f32 %v1018_v14, %v1018_v14  ;;  %v1031_v18 = vsub.f32 %v2260_v31, %v2373_v46  ;;  %v1033_v14 = vsub.f32 %v2560_v51, %v2373_v46  ;;  %v1035_v31 = vsub.f32 %v2048_v55, %v2373_v46 }
 0x1ad   :  { %v1196_v40 = vadd.f32 %v1195_v43, %v1133_v27  ;;  %v1020_v43 = vsub.f32 %v1985_v34, %v2373_v46  ;;  %v1147_v3 = vmul.f32 %v1019_v48, %v1019_v48  ;;  %v1024_v34 = vsub.f32 %v2080_v61, %v2373_v46  ;;  %v2561_v48 = vld [vmem:[#allocation18_spill] sm:$0xff] }
 0x1ae   :  { %v1028_v61 = vsub.f32 %v2184_v29, %v2373_v46  ;;  %v1032_v29 = vsub.f32 %v2276_v9, %v2373_v46  ;;  %v1036_v9 = vsub.f32 %v2072_v59, %v2373_v46  ;;  %v1040_v59 = vsub.f32 %v2175_v26, %v2373_v46 }
 0x1af   :  { %v1197_v8 = vadd.f32 %v1196_v40, %v1134_v42  ;;  %v1021_v40 = vsub.f32 %v2015_v45, %v2373_v46  ;;  %v1025_v45 = vsub.f32 %v2104_v1, %v2373_v46  ;;  %v1029_v1 = vsub.f32 %v2558_v56, %v2373_v46  ;;  %v2567_v56 = vld [vmem:[#allocation16_spill] sm:$0xff] }
 0x1b1   :  { %v1198_v54 = vadd.f32 %v1197_v8, %v1135_v49  ;;  %v2556_v8 = vld [vmem:[#allocation2_spill] sm:$0xff]  ;;  %v1149_v24 = vmul.f32 %v1021_v40, %v1021_v40  ;;  %v1153_v50 = vmul.f32 %v1025_v45, %v1025_v45  ;;  %v1157_v15 = vmul.f32 %v1029_v1, %v1029_v1  ;;  %v2563_v45 = vld [vmem:[#allocation8_spill] sm:$0xff] }
 0x1b2   :  { %v1022_v16 = vsub.f32 %v2556_v8, %v2373_v46  ;;  %v1163_v8 = vmul.f32 %v1035_v31, %v1035_v31  ;;  %v1045_v1 = vsub.f32 %v2567_v56, %v2373_v46 }
 0x1b3   :  { %v1199_v35 = vadd.f32 %v1198_v54, %v1136_v30  ;;  %v1148_v30 = vmul.f32 %v1020_v43, %v1020_v43 }
 0x1b5   :  { %v1200_v17 = vadd.f32 %v1199_v35, %v1137_v10  ;;  %v1150_v35 = vmul.f32 %v1022_v16, %v1022_v16 }
 0x1b7   :  { %v1201_v62 = vadd.f32 %v1200_v17, %v1138_v58  ;;  %v1151_v58 = vmul.f32 %v1023_v25, %v1023_v25 }
 0x1b9   :  { %v1202_v4 = vadd.f32 %v1201_v62, %v1139_v38  ;;  %v1026_v38 = vsub.f32 %v2557_v44, %v2373_v46  ;;  %v1152_v62 = vmul.f32 %v1024_v34, %v1024_v34  ;;  %v2564_v44 = vld [vmem:[#allocation11_spill] sm:$0xff] }
 0x1bb   :  { %v1203_v11 = vadd.f32 %v1202_v4, %v1140_v52  ;;  %v1154_v4 = vmul.f32 %v1026_v38, %v1026_v38  ;;  %v1168_v38 = vmul.f32 %v1040_v59, %v1040_v59 }
 0x1bd   :  { %v1204_v22 = vadd.f32 %v1203_v11, %v1141_v2  ;;  %v1155_v2 = vmul.f32 %v1027_v57, %v1027_v57 }
 0x1bf   :  { %v1205_v36 = vadd.f32 %v1204_v22, %v1142_v13  ;;  %v1156_v13 = vmul.f32 %v1028_v61, %v1028_v61  ;;  %v2566_v61 = vld [vmem:[#allocation15_spill] sm:$0xff] }
 0x1c0   :  { %v1044_v26 = vsub.f32 %v2566_v61, %v2373_v46 }
 0x1c1   :  { %v1206_v32 = vadd.f32 %v1205_v36, %v1143_v23  ;;  %v1158_v23 = vmul.f32 %v1030_v60, %v1030_v60 }
 0x1c2   :  { %v1172_v60 = vmul.f32 %v1044_v26, %v1044_v26 }
 0x1c3   :  { %v1207_v27 = vadd.f32 %v1206_v32, %v1144_v47  ;;  %v1159_v47 = vmul.f32 %v1031_v18, %v1031_v18  ;;  %v1173_v18 = vmul.f32 %v1045_v1, %v1045_v1 }
 0x1c5   :  { %v1208_v42 = vadd.f32 %v1207_v27, %v1145_v39  ;;  %v1034_v39 = vsub.f32 %v2561_v48, %v2373_v46  ;;  %v1160_v27 = vmul.f32 %v1032_v29, %v1032_v29  ;;  %v1174_v29 = vmul.f32 %v1046_v6, %v1046_v6 }
 0x1c7   :  { %v1209_v49 = vadd.f32 %v1208_v42, %v1146_v53  ;;  %v1161_v53 = vmul.f32 %v1033_v14, %v1033_v14  ;;  %v1162_v40 = vmul.f32 %v1034_v39, %v1034_v39  ;;  %v1178_v39 = vmul.f32 %v2376_v12, %v2376_v12 }
 0x1c9   :  { %v1210_v54 = vadd.f32 %v1209_v49, %v1147_v3  ;;  %v1037_v49 = vsub.f32 %v2096_v63, %v2373_v46  ;;  %v1041_v63 = vsub.f32 %v2563_v45, %v2373_v46 }
 0x1cb   :  { %v1211_v10 = vadd.f32 %v1210_v54, %v1148_v30  ;;  %v1038_v30 = vsub.f32 %v2120_v5, %v2373_v46  ;;  %v1164_v54 = vmul.f32 %v1036_v9, %v1036_v9  ;;  %v1042_v5 = vsub.f32 %v2564_v44, %v2373_v46 }
 0x1cd   :  { %v1212_v33 = vadd.f32 %v1211_v10, %v1149_v24  ;;  %v2562_v24 = vld [vmem:[#allocation5_spill] sm:$0xff]  ;;  %v1165_v10 = vmul.f32 %v1037_v49, %v1037_v49 }
 0x1ce   :  { %v1039_v55 = vsub.f32 %v2562_v24, %v2373_v46 }
 0x1cf   :  { %v1213_v17 = vadd.f32 %v1212_v33, %v1150_v35  ;;  %v1166_v35 = vmul.f32 %v1038_v30, %v1038_v30 }
 0x1d1   :  { %v1214_v28 = vadd.f32 %v1213_v17, %v1151_v58  ;;  %v1167_v58 = vmul.f32 %v1039_v55, %v1039_v55 }
 0x1d3   :  { %v1215_v52 = vadd.f32 %v1214_v28, %v1152_v62  ;;  %v2565_v28 = vld [vmem:[#allocation14_spill] sm:$0xff] }
 0x1d4   :  { %v1043_v57 = vsub.f32 %v2565_v28, %v2373_v46 }
 0x1d5   :  { %v1216_v7 = vadd.f32 %v1215_v52, %v1153_v50  ;;  %v1169_v50 = vmul.f32 %v1041_v63, %v1041_v63 }
 0x1d7   :  { %v1217_v11 = vadd.f32 %v1216_v7, %v1154_v4  ;;  %v1170_v4 = vmul.f32 %v1042_v5, %v1042_v5 }
 0x1d9   :  { %v1218_v22 = vadd.f32 %v1217_v11, %v1155_v2  ;;  %v1171_v2 = vmul.f32 %v1043_v57, %v1043_v57 }
 0x1db   :  { %v1219_v0 = vadd.f32 %v1218_v22, %v1156_v13  ;;  %v1047_v22 = vsub.f32 %v2321_v37, %v2373_v46 }
 0x1dd   :  { %v1220_v36 = vadd.f32 %v1219_v0, %v1157_v15  ;;  %v1048_v0 = vsub.f32 %v2331_v21, %v2373_v46  ;;  %v1175_v51 = vmul.f32 %v1047_v22, %v1047_v22 }
 0x1df   :  { %v1221_v32 = vadd.f32 %v1220_v36, %v1158_v23  ;;  %v1049_v36 = vsub.f32 %v2341_v19, %v2373_v46 }
 0x1e1   :  { %v1222_v43 = vadd.f32 %v1221_v32, %v1159_v47  ;;  %v1176_v47 = vmul.f32 %v1048_v0, %v1048_v0  ;;  %v1177_v20 = vmul.f32 %v1049_v36, %v1049_v36 }
 0x1e3   :  { %v1223_v42 = vadd.f32 %v1222_v43, %v1160_v27 }
 0x1e5   :  { %v1224_v3 = vadd.f32 %v1223_v42, %v1161_v53 }
 0x1e7   :  { %v1225_v16 = vadd.f32 %v1224_v3, %v1162_v40 }
 0x1e9   :  { %v1226_v25 = vadd.f32 %v1225_v16, %v1163_v8 }
 0x1eb   :  { %v1227_v34 = vadd.f32 %v1226_v25, %v1164_v54 }
 0x1ed   :  { %v1228_v33 = vadd.f32 %v1227_v34, %v1165_v10 }
 0x1ef   :  { %v1229_v17 = vadd.f32 %v1228_v33, %v1166_v35 }
 0x1f1   :  { %v1230_v62 = vadd.f32 %v1229_v17, %v1167_v58 }
 0x1f3   :  { %v1231_v52 = vadd.f32 %v1230_v62, %v1168_v38 }
 0x1f5   :  { %v1232_v7 = vadd.f32 %v1231_v52, %v1169_v50 }
 0x1f7   :  { %v1233_v11 = vadd.f32 %v1232_v7, %v1170_v4 }
 0x1f9   :  { %v1234_v13 = vadd.f32 %v1233_v11, %v1171_v2 }
 0x1fb   :  { %v1235_v15 = vadd.f32 %v1234_v13, %v1172_v60 }
 0x1fd   :  { %v1236_v23 = vadd.f32 %v1235_v15, %v1173_v18 }
 0x1ff   :  { %v1237_v14 = vadd.f32 %v1236_v23, %v1174_v29 }
 0x201   :  { %v1238_v32 = vadd.f32 %v1237_v14, %v1175_v51 }
 0x203   :  { %v1239_v48 = vadd.f32 %v1238_v32, %v1176_v47 }
 0x205   :  { %v1240_v37 = vadd.f32 %v1239_v48, %v1177_v20 }
 0x207   :  { %v1241_v27 = vadd.f32 %v1240_v37, %v1178_v39 }
 0x209   :  { %v1242_v43 = vrot.slane %v1241_v27, 4 }
 0x20b   :  { %v1243_v31 = vadd.f32 %v1242_v43, %v1241_v27 }
 0x20d   :  { %v1244_v53 = vrot.slane %v1243_v31, 2 }
 0x20f   :  { %v1245_v21 = vadd.f32 %v1244_v53, %v1243_v31 }
 0x211   :  { %v1246_v42 = vrot.slane %v1245_v21, 1 }
 0x213   :  { %v1247_v9 = vadd.f32 %v1246_v42, %v1245_v21 }
 0x215   :  { %v1249_v19 = vsel %vm1248_vm1, %v2370_v41, %v1247_v9 }
 0x216   :  { %v1251_v46 = vsel %vm1250_vm2, %v1249_v19, 0.0 }
 0x217   :  { %1252 = vst [vmem:[%s2516_s6] sm:$0xff] %v1251_v46 }

</bundles_post_ra>
